<compile_context>
chip_gen: v5e
topology: v5e:2x2
jax: 0.10.0
libtpu: 0.0.40
codegen_flags: <defaults>
</compile_context>

<pallas_src>
import math
import jax
import jax.numpy as jnp
from jax.experimental import pallas as pl
from jax.experimental.pallas import tpu as pltpu  # noqa: F401

# ----- config (small, consistent with the module's forward) -----
B = 2                 # batch
C = 4                 # image channels
IMG = 16              # spatial size
P = 4                 # patch size
GRID = IMG // P
N_PATCH = GRID * GRID          # 16 patches
PATCH_DIM = C * P * P          # 64
D = 32                         # embed dim
HEADS = 4
HD = D // HEADS                # 8
S = N_PATCH + 1                # 17 (cls token prepended)
S_PAD = 24                     # padded sequence (multiple of 8 sublanes)
BS = B * S_PAD                 # 48 stacked rows
MLP_HIDDEN = 64
NUM_LAYERS = 2
CLS_HIDDEN = 64
NUM_CLASSES = 8
NUM_CLASSES_PAD = 128          # lane-dense classifier output (sliced in wrapper)
LN_EPS = 1e-5
NEG_INF = -1e30                # additive key mask for padded positions

# rows of the packed bias/LN/mask slab ([SLAB_ROWS, 128] f32)
R_LN1G, R_LN1B, R_LN2G, R_LN2B = 0, 1, 2, 3
R_BQKV, R_BO, R_B1, R_B2, R_BC1, R_BC2, R_KMASK = 4, 5, 6, 7, 8, 9, 10
SLAB_ROWS = 16


def _layernorm(h, g, b):
    mu = jnp.mean(h, axis=-1, keepdims=True)
    var = jnp.mean(jnp.square(h - mu), axis=-1, keepdims=True)
    return (h - mu) * jax.lax.rsqrt(var + LN_EPS) * g + b


# ---------------- the single fused Pallas kernel ----------------

def _vit_kernel(patches_ref, wp_ref, wqkv_ref, wo_ref, w1_ref, w2_ref,
                wc1_ref, wc2_ref, embb_ref, slab_ref, out_ref):
    f32 = jnp.float32
    bf16 = jnp.bfloat16

    # Hoist all (tiny) weight loads once; reused across layers.
    wp = wp_ref[...]        # [PATCH_DIM, D]   bf16
    wqkv = wqkv_ref[...]    # [D, 3D]          bf16 (Q columns pre-scaled)
    wo = wo_ref[...]        # [D, D]           bf16
    w1 = w1_ref[...]        # [D, MLP_HIDDEN]  bf16
    w2 = w2_ref[...]        # [MLP_HIDDEN, D]  bf16
    wc1 = wc1_ref[...]      # [D, CLS_HIDDEN]  bf16
    wc2 = wc2_ref[...]      # [CLS_HIDDEN, NUM_CLASSES_PAD] bf16
    embb = embb_ref[...]    # [BS, D]          f32 (cls/pos/patch-bias rows, pre-tiled over B)
    slab = slab_ref[...]    # [SLAB_ROWS, 128] f32

    ln1g = slab[R_LN1G:R_LN1G + 1, :D]
    ln1b = slab[R_LN1B:R_LN1B + 1, :D]
    ln2g = slab[R_LN2G:R_LN2G + 1, :D]
    ln2b = slab[R_LN2B:R_LN2B + 1, :D]
    b_qkv = slab[R_BQKV:R_BQKV + 1, :3 * D]
    b_o = slab[R_BO:R_BO + 1, :D]
    b1 = slab[R_B1:R_B1 + 1, :MLP_HIDDEN]
    b2 = slab[R_B2:R_B2 + 1, :D]
    bc1 = slab[R_BC1:R_BC1 + 1, :CLS_HIDDEN]
    bc2 = slab[R_BC2:R_BC2 + 1, :]                 # [1, 128]
    key_mask = slab[R_KMASK:R_KMASK + 1, :S_PAD]   # [1, S_PAD] (0 valid, -1e30 pad)

    # --- patch embedding (batch stacked). cls rows of `patches` are zero, so
    #     the cls token + positional embedding arrive via the precomputed bias.
    h = jnp.dot(patches_ref[...], wp, preferred_element_type=f32) + embb      # [BS, D] f32

    # --- shared-weight encoder applied NUM_LAYERS times ---
    for _ in range(NUM_LAYERS):
        # pre-LN multi-head self-attention, fused QKV projection
        hn = _layernorm(h, ln1g, ln1b)                                        # [BS, D] f32
        qkv = jnp.dot(hn.astype(bf16), wqkv, preferred_element_type=f32) + b_qkv
        qkv = qkv.astype(bf16)                                                # [BS, 3D]

        ctx_rows = []
        for b in range(B):                         # static unroll, sublane-aligned slices
            r0 = b * S_PAD
            head_ctx = []
            for hh in range(HEADS):                # static unroll, 8-lane aligned slices
                q = qkv[r0:r0 + S_PAD, hh * HD:(hh + 1) * HD]                 # [S_PAD, HD]
                k = qkv[r0:r0 + S_PAD, D + hh * HD:D + (hh + 1) * HD]
                v = qkv[r0:r0 + S_PAD, 2 * D + hh * HD:2 * D + (hh + 1) * HD]
                # scores = q @ k.T (Mosaic handles the transposed RHS)
                sc = jax.lax.dot_general(q, k, (((1,), (1,)), ((), ())),
                                         preferred_element_type=f32)          # [S_PAD, S_PAD]
                sc = sc + key_mask                 # mask padded KEY positions
                m = jnp.max(sc, axis=-1, keepdims=True)
                e = jnp.exp(sc - m)
                pr = e * pl.reciprocal(jnp.sum(e, axis=-1, keepdims=True), approx=True)
                head_ctx.append(jnp.dot(pr.astype(bf16), v,
                                        preferred_element_type=f32))          # [S_PAD, HD]
            ctx_rows.append(jnp.concatenate(head_ctx, axis=-1))               # [S_PAD, D]
        ctx = jnp.concatenate(ctx_rows, axis=0)                               # [BS, D] f32

        # single fat output projection (== concat(heads) @ w_o)
        attn = jnp.dot(ctx.astype(bf16), wo, preferred_element_type=f32) + b_o
        h = h + attn                               # residual

        # pre-LN MLP
        hn2 = _layernorm(h, ln2g, ln2b)
        z = jnp.dot(hn2.astype(bf16), w1, preferred_element_type=f32) + b1
        # TODO(synk): PyTorch nn.GELU() defaults to exact erf; tanh approximation used here.
        z = jax.nn.gelu(z, approximate=True)
        z = jnp.dot(z.astype(bf16), w2, preferred_element_type=f32) + b2
        h = h + z                                  # residual

    # --- classifier MLP head on the cls tokens (rows 0 and S_PAD) ---
    cls_tok = jnp.concatenate([h[b * S_PAD:b * S_PAD + 1, :] for b in range(B)],
                              axis=0)                                          # [B, D]
    zc = jnp.dot(cls_tok.astype(bf16), wc1, preferred_element_type=f32) + bc1
    zc = jax.nn.gelu(zc, approximate=True)
    out_ref[...] = jnp.dot(zc.astype(bf16), wc2, preferred_element_type=f32) + bc2


# ---------------- parameter init (deterministic, synthetic) ----------------

def init_params(key):
    ks = jax.random.split(key, 16)
    sd = 0.02

    def rnd(k, shape):
        return (sd * jax.random.normal(k, shape)).astype(jnp.float32)

    return {
        # patch embedding (Conv2d with kernel=stride=P, flattened to a matmul)
        "w_patch": rnd(ks[0], (PATCH_DIM, D)),
        "b_patch": jnp.zeros((D,), jnp.float32),
        "cls": rnd(ks[1], (1, 1, D)),
        "pos": rnd(ks[2], (1, S, D)),
        # shared encoder block
        "ln1_g": jnp.ones((1, D), jnp.float32),
        "ln1_b": jnp.zeros((1, D), jnp.float32),
        "w_qkv": rnd(ks[3], (D, 3 * D)),
        "b_qkv": jnp.zeros((1, 3 * D), jnp.float32),
        "w_o": rnd(ks[4], (D, D)),
        "b_o": jnp.zeros((1, D), jnp.float32),
        "ln2_g": jnp.ones((1, D), jnp.float32),
        "ln2_b": jnp.zeros((1, D), jnp.float32),
        "w_mlp1": rnd(ks[5], (D, MLP_HIDDEN)),
        "b_mlp1": jnp.zeros((1, MLP_HIDDEN), jnp.float32),
        "w_mlp2": rnd(ks[6], (MLP_HIDDEN, D)),
        "b_mlp2": jnp.zeros((1, D), jnp.float32),
        # classifier MLP head
        "w_cls1": rnd(ks[7], (D, CLS_HIDDEN)),
        "b_cls1": jnp.zeros((CLS_HIDDEN,), jnp.float32),
        "w_cls2": rnd(ks[8], (CLS_HIDDEN, NUM_CLASSES)),
        "b_cls2": jnp.zeros((NUM_CLASSES,), jnp.float32),
    }


# ---------------- forward pass ----------------

def vit_forward(x, params):
    f32 = jnp.float32
    bf16 = jnp.bfloat16

    # ---- glue: NCHW image -> row-major patch grid -> stacked [BS, C*P*P] with
    #      a zero row for the cls slot and zero rows for S->S_PAD padding.
    patches = x.reshape(B, C, GRID, P, GRID, P)
    patches = patches.transpose(0, 2, 4, 1, 3, 5).reshape(B, N_PATCH, PATCH_DIM)
    patches_ext = jnp.concatenate(
        [jnp.zeros((B, 1, PATCH_DIM), f32), patches,
         jnp.zeros((B, S_PAD - S, PATCH_DIM), f32)], axis=1)          # [B, S_PAD, PATCH_DIM]
    patches_ext = patches_ext.reshape(BS, PATCH_DIM).astype(bf16)

    # ---- glue: one-time weight re-layouts (folded softmax scale, lane-padded
    #      classifier, bf16 matmul weights). Tiny & fused by XLA.
    scale = 1.0 / math.sqrt(HD)
    w_qkv, b_qkv = params["w_qkv"], params["b_qkv"]
    w_qkv_s = jnp.concatenate([w_qkv[:, :D] * scale, w_qkv[:, D:]], axis=1)   # [D, 3D]
    b_qkv_s = jnp.concatenate([b_qkv[:, :D] * scale, b_qkv[:, D:]], axis=1)   # [1, 3D]

    # combined per-row embedding bias: row0 = cls + pos[0]; rows 1..16 = b_patch + pos[s];
    # padded rows 17..23 = 0.  Tiled across batch to [BS, D].
    emb_bias = jnp.concatenate(
        [params["cls"][0] + params["pos"][0, 0:1],
         params["b_patch"][None, :] + params["pos"][0, 1:S],
         jnp.zeros((S_PAD - S, D), f32)], axis=0)                     # [S_PAD, D]
    emb_bias = jnp.concatenate([emb_bias] * B, axis=0)                # [BS, D]

    wc2_pad = jnp.pad(params["w_cls2"],
                      ((0, 0), (0, NUM_CLASSES_PAD - NUM_CLASSES)))   # [CLS_HIDDEN, 128]

    # ---- packed bias / LayerNorm / key-mask slab: one lane-dense [16,128] operand
    slab = jnp.zeros((SLAB_ROWS, 128), f32)

    def put(sl, row, vec):
        vec = vec.reshape(-1).astype(f32)
        return sl.at[row, :vec.shape[0]].set(vec)

    slab = put(slab, R_LN1G, params["ln1_g"])
    slab = put(slab, R_LN1B, params["ln1_b"])
    slab = put(slab, R_LN2G, params["ln2_g"])
    slab = put(slab, R_LN2B, params["ln2_b"])
    slab = put(slab, R_BQKV, b_qkv_s)
    slab = put(slab, R_BO, params["b_o"])
    slab = put(slab, R_B1, params["b_mlp1"])
    slab = put(slab, R_B2, params["b_mlp2"])
    slab = put(slab, R_BC1, params["b_cls1"])
    slab = put(slab, R_BC2, params["b_cls2"])
    key_mask = jnp.where(jnp.arange(S_PAD) < S, 0.0, NEG_INF).astype(f32)
    slab = put(slab, R_KMASK, key_mask)

    # ---- single fused pallas_call: 10 operands, everything resident in VMEM ----
    logits_pad = pl.pallas_call(
        _vit_kernel,
        out_shape=jax.ShapeDtypeStruct((B, NUM_CLASSES_PAD), jnp.float32),
    )(patches_ext,
      params["w_patch"].astype(bf16),
      w_qkv_s.astype(bf16),
      params["w_o"].astype(bf16),
      params["w_mlp1"].astype(bf16),
      params["w_mlp2"].astype(bf16),
      params["w_cls1"].astype(bf16),
      wc2_pad.astype(bf16),
      emb_bias,
      slab)

    return logits_pad[:, :NUM_CLASSES]


if __name__ == "__main__":
    key = jax.random.PRNGKey(0)
    k_x, k_p = jax.random.split(key)
    x = jax.random.normal(k_x, (B, C, IMG, IMG), dtype=jnp.float32)
    params = init_params(k_p)

    out = jax.jit(vit_forward)(x, params)
    out = jax.block_until_ready(out)
    assert out.shape == (B, NUM_CLASSES), out.shape
    assert bool(jnp.all(jnp.isfinite(out)))
    print("KERNEL_OK")
</pallas_src>

<mosaic_0001>
module attributes {stable_mosaic.version = 11 : i64} {
  func.func @_vit_kernel(%arg0: memref<48x64xbf16, #tpu.memory_space<vmem>>, %arg1: memref<64x32xbf16, #tpu.memory_space<vmem>>, %arg2: memref<32x96xbf16, #tpu.memory_space<vmem>>, %arg3: memref<32x32xbf16, #tpu.memory_space<vmem>>, %arg4: memref<32x64xbf16, #tpu.memory_space<vmem>>, %arg5: memref<64x32xbf16, #tpu.memory_space<vmem>>, %arg6: memref<32x64xbf16, #tpu.memory_space<vmem>>, %arg7: memref<64x128xbf16, #tpu.memory_space<vmem>>, %arg8: memref<48x32xf32, #tpu.memory_space<vmem>>, %arg9: memref<16x128xf32, #tpu.memory_space<vmem>>, %arg10: memref<2x128xf32, #tpu.memory_space<vmem>>) attributes {dimension_semantics = [], scalar_prefetch = 0 : i64, scratch_operands = 0 : i64, tpu.core_type = #tpu.core_type<tc>} {
    %c0 = arith.constant 0 : index
    %c0_0 = arith.constant 0 : index
    %0 = vector.load %arg1[%c0, %c0_0] : memref<64x32xbf16, #tpu.memory_space<vmem>>, vector<64x32xbf16>
    %c0_1 = arith.constant 0 : index
    %c0_2 = arith.constant 0 : index
    %1 = vector.load %arg2[%c0_1, %c0_2] : memref<32x96xbf16, #tpu.memory_space<vmem>>, vector<32x96xbf16>
    %c0_3 = arith.constant 0 : index
    %c0_4 = arith.constant 0 : index
    %2 = vector.load %arg3[%c0_3, %c0_4] : memref<32x32xbf16, #tpu.memory_space<vmem>>, vector<32x32xbf16>
    %c0_5 = arith.constant 0 : index
    %c0_6 = arith.constant 0 : index
    %3 = vector.load %arg4[%c0_5, %c0_6] : memref<32x64xbf16, #tpu.memory_space<vmem>>, vector<32x64xbf16>
    %c0_7 = arith.constant 0 : index
    %c0_8 = arith.constant 0 : index
    %4 = vector.load %arg5[%c0_7, %c0_8] : memref<64x32xbf16, #tpu.memory_space<vmem>>, vector<64x32xbf16>
    %c0_9 = arith.constant 0 : index
    %c0_10 = arith.constant 0 : index
    %5 = vector.load %arg6[%c0_9, %c0_10] : memref<32x64xbf16, #tpu.memory_space<vmem>>, vector<32x64xbf16>
    %c0_11 = arith.constant 0 : index
    %c0_12 = arith.constant 0 : index
    %6 = vector.load %arg7[%c0_11, %c0_12] : memref<64x128xbf16, #tpu.memory_space<vmem>>, vector<64x128xbf16>
    %c0_13 = arith.constant 0 : index
    %c0_14 = arith.constant 0 : index
    %7 = vector.load %arg8[%c0_13, %c0_14] : memref<48x32xf32, #tpu.memory_space<vmem>>, vector<48x32xf32>
    %c0_15 = arith.constant 0 : index
    %c0_16 = arith.constant 0 : index
    %8 = vector.load %arg9[%c0_15, %c0_16] : memref<16x128xf32, #tpu.memory_space<vmem>>, vector<16x128xf32>
    %9 = vector.extract_strided_slice %8 {offsets = [0, 0], sizes = [1, 32], strides = [1, 1]} : vector<16x128xf32> to vector<1x32xf32>
    %10 = vector.extract_strided_slice %8 {offsets = [1, 0], sizes = [1, 32], strides = [1, 1]} : vector<16x128xf32> to vector<1x32xf32>
    %11 = vector.extract_strided_slice %8 {offsets = [2, 0], sizes = [1, 32], strides = [1, 1]} : vector<16x128xf32> to vector<1x32xf32>
    %12 = vector.extract_strided_slice %8 {offsets = [3, 0], sizes = [1, 32], strides = [1, 1]} : vector<16x128xf32> to vector<1x32xf32>
    %13 = vector.extract_strided_slice %8 {offsets = [4, 0], sizes = [1, 96], strides = [1, 1]} : vector<16x128xf32> to vector<1x96xf32>
    %14 = vector.extract_strided_slice %8 {offsets = [5, 0], sizes = [1, 32], strides = [1, 1]} : vector<16x128xf32> to vector<1x32xf32>
    %15 = vector.extract_strided_slice %8 {offsets = [6, 0], sizes = [1, 64], strides = [1, 1]} : vector<16x128xf32> to vector<1x64xf32>
    %16 = vector.extract_strided_slice %8 {offsets = [7, 0], sizes = [1, 32], strides = [1, 1]} : vector<16x128xf32> to vector<1x32xf32>
    %17 = vector.extract_strided_slice %8 {offsets = [8, 0], sizes = [1, 64], strides = [1, 1]} : vector<16x128xf32> to vector<1x64xf32>
    %18 = vector.extract_strided_slice %8 {offsets = [9, 0], sizes = [1, 128], strides = [1, 1]} : vector<16x128xf32> to vector<1x128xf32>
    %19 = vector.extract_strided_slice %8 {offsets = [10, 0], sizes = [1, 24], strides = [1, 1]} : vector<16x128xf32> to vector<1x24xf32>
    %c0_17 = arith.constant 0 : index
    %c0_18 = arith.constant 0 : index
    %20 = vector.load %arg0[%c0_17, %c0_18] : memref<48x64xbf16, #tpu.memory_space<vmem>>, vector<48x64xbf16>
    %cst = arith.constant dense<0.000000e+00> : vector<48x32xf32>
    %21 = tpu.matmul %20, %0, %cst {dimension_numbers = #tpu.dot_dimension_numbers<[1], [0], [0], [1], [0, 0, 1, 1], [], []>} : vector<48x64xbf16>, vector<64x32xbf16>, vector<48x32xf32> -> vector<48x32xf32>
    %22 = arith.addf %21, %7 : vector<48x32xf32>
    %cst_19 = arith.constant dense<0.000000e+00> : vector<48xf32>
    %23 = vector.multi_reduction <add>, %22, %cst_19 [1] : vector<48x32xf32> to vector<48xf32>
    %24 = vector.shape_cast %23 : vector<48xf32> to vector<48x1xf32>
    %cst_20 = arith.constant 3.200000e+01 : f32
    %25 = vector.broadcast %cst_20 : f32 to vector<48x1xf32>
    %26 = arith.divf %24, %25 : vector<48x1xf32>
    %27 = vector.broadcast %26 : vector<48x1xf32> to vector<48x32xf32>
    %28 = arith.subf %22, %27 : vector<48x32xf32>
    %29 = arith.mulf %28, %28 : vector<48x32xf32>
    %cst_21 = arith.constant dense<0.000000e+00> : vector<48xf32>
    %30 = vector.multi_reduction <add>, %29, %cst_21 [1] : vector<48x32xf32> to vector<48xf32>
    %31 = vector.shape_cast %30 : vector<48xf32> to vector<48x1xf32>
    %cst_22 = arith.constant 3.200000e+01 : f32
    %32 = vector.broadcast %cst_22 : f32 to vector<48x1xf32>
    %33 = arith.divf %31, %32 : vector<48x1xf32>
    %34 = vector.broadcast %26 : vector<48x1xf32> to vector<48x32xf32>
    %35 = arith.subf %22, %34 : vector<48x32xf32>
    %cst_23 = arith.constant 9.99999974E-6 : f32
    %36 = vector.broadcast %cst_23 : f32 to vector<48x1xf32>
    %37 = arith.addf %33, %36 : vector<48x1xf32>
    %38 = math.rsqrt %37 : vector<48x1xf32>
    %39 = vector.broadcast %38 : vector<48x1xf32> to vector<48x32xf32>
    %40 = arith.mulf %35, %39 : vector<48x32xf32>
    %41 = vector.broadcast %9 : vector<1x32xf32> to vector<48x32xf32>
    %42 = arith.mulf %40, %41 : vector<48x32xf32>
    %43 = vector.broadcast %10 : vector<1x32xf32> to vector<48x32xf32>
    %44 = arith.addf %42, %43 : vector<48x32xf32>
    %45 = arith.truncf %44 : vector<48x32xf32> to vector<48x32xbf16>
    %cst_24 = arith.constant dense<0.000000e+00> : vector<48x96xf32>
    %46 = tpu.matmul %45, %1, %cst_24 {dimension_numbers = #tpu.dot_dimension_numbers<[1], [0], [0], [1], [0, 0, 1, 1], [], []>} : vector<48x32xbf16>, vector<32x96xbf16>, vector<48x96xf32> -> vector<48x96xf32>
    %47 = vector.broadcast %13 : vector<1x96xf32> to vector<48x96xf32>
    %48 = arith.addf %46, %47 : vector<48x96xf32>
    %49 = arith.truncf %48 : vector<48x96xf32> to vector<48x96xbf16>
    %50 = vector.extract_strided_slice %49 {offsets = [0, 0], sizes = [24, 8], strides = [1, 1]} : vector<48x96xbf16> to vector<24x8xbf16>
    %51 = vector.extract_strided_slice %49 {offsets = [0, 32], sizes = [24, 8], strides = [1, 1]} : vector<48x96xbf16> to vector<24x8xbf16>
    %52 = vector.extract_strided_slice %49 {offsets = [0, 64], sizes = [24, 8], strides = [1, 1]} : vector<48x96xbf16> to vector<24x8xbf16>
    %cst_25 = arith.constant dense<0.000000e+00> : vector<24x24xf32>
    %53 = tpu.matmul %50, %51, %cst_25 {dimension_numbers = #tpu.dot_dimension_numbers<[1], [1], [0], [0], [0, 0, 1, 0], [], []>} : vector<24x8xbf16>, vector<24x8xbf16>, vector<24x24xf32> -> vector<24x24xf32>
    %54 = vector.broadcast %19 : vector<1x24xf32> to vector<24x24xf32>
    %55 = arith.addf %53, %54 : vector<24x24xf32>
    %cst_26 = arith.constant dense<0xFF800000> : vector<24xf32>
    %56 = vector.multi_reduction <maximumf>, %55, %cst_26 [1] : vector<24x24xf32> to vector<24xf32>
    %57 = vector.shape_cast %56 : vector<24xf32> to vector<24x1xf32>
    %58 = vector.broadcast %57 : vector<24x1xf32> to vector<24x24xf32>
    %59 = arith.subf %55, %58 : vector<24x24xf32>
    %60 = math.exp %59 : vector<24x24xf32>
    %cst_27 = arith.constant dense<0.000000e+00> : vector<24xf32>
    %61 = vector.multi_reduction <add>, %60, %cst_27 [1] : vector<24x24xf32> to vector<24xf32>
    %62 = vector.shape_cast %61 : vector<24xf32> to vector<24x1xf32>
    %63 = tpu.reciprocal %62 {approx = true} : vector<24x1xf32> -> vector<24x1xf32>
    %64 = vector.broadcast %63 : vector<24x1xf32> to vector<24x24xf32>
    %65 = arith.mulf %60, %64 : vector<24x24xf32>
    %66 = arith.truncf %65 : vector<24x24xf32> to vector<24x24xbf16>
    %cst_28 = arith.constant dense<0.000000e+00> : vector<24x8xf32>
    %67 = tpu.matmul %66, %52, %cst_28 {dimension_numbers = #tpu.dot_dimension_numbers<[1], [0], [0], [1], [0, 0, 1, 1], [], []>} : vector<24x24xbf16>, vector<24x8xbf16>, vector<24x8xf32> -> vector<24x8xf32>
    %68 = vector.extract_strided_slice %49 {offsets = [0, 8], sizes = [24, 8], strides = [1, 1]} : vector<48x96xbf16> to vector<24x8xbf16>
    %69 = vector.extract_strided_slice %49 {offsets = [0, 40], sizes = [24, 8], strides = [1, 1]} : vector<48x96xbf16> to vector<24x8xbf16>
    %70 = vector.extract_strided_slice %49 {offsets = [0, 72], sizes = [24, 8], strides = [1, 1]} : vector<48x96xbf16> to vector<24x8xbf16>
    %cst_29 = arith.constant dense<0.000000e+00> : vector<24x24xf32>
    %71 = tpu.matmul %68, %69, %cst_29 {dimension_numbers = #tpu.dot_dimension_numbers<[1], [1], [0], [0], [0, 0, 1, 0], [], []>} : vector<24x8xbf16>, vector<24x8xbf16>, vector<24x24xf32> -> vector<24x24xf32>
    %72 = vector.broadcast %19 : vector<1x24xf32> to vector<24x24xf32>
    %73 = arith.addf %71, %72 : vector<24x24xf32>
    %cst_30 = arith.constant dense<0xFF800000> : vector<24xf32>
    %74 = vector.multi_reduction <maximumf>, %73, %cst_30 [1] : vector<24x24xf32> to vector<24xf32>
    %75 = vector.shape_cast %74 : vector<24xf32> to vector<24x1xf32>
    %76 = vector.broadcast %75 : vector<24x1xf32> to vector<24x24xf32>
    %77 = arith.subf %73, %76 : vector<24x24xf32>
    %78 = math.exp %77 : vector<24x24xf32>
    %cst_31 = arith.constant dense<0.000000e+00> : vector<24xf32>
    %79 = vector.multi_reduction <add>, %78, %cst_31 [1] : vector<24x24xf32> to vector<24xf32>
    %80 = vector.shape_cast %79 : vector<24xf32> to vector<24x1xf32>
    %81 = tpu.reciprocal %80 {approx = true} : vector<24x1xf32> -> vector<24x1xf32>
    %82 = vector.broadcast %81 : vector<24x1xf32> to vector<24x24xf32>
    %83 = arith.mulf %78, %82 : vector<24x24xf32>
    %84 = arith.truncf %83 : vector<24x24xf32> to vector<24x24xbf16>
    %cst_32 = arith.constant dense<0.000000e+00> : vector<24x8xf32>
    %85 = tpu.matmul %84, %70, %cst_32 {dimension_numbers = #tpu.dot_dimension_numbers<[1], [0], [0], [1], [0, 0, 1, 1], [], []>} : vector<24x24xbf16>, vector<24x8xbf16>, vector<24x8xf32> -> vector<24x8xf32>
    %86 = vector.extract_strided_slice %49 {offsets = [0, 16], sizes = [24, 8], strides = [1, 1]} : vector<48x96xbf16> to vector<24x8xbf16>
    %87 = vector.extract_strided_slice %49 {offsets = [0, 48], sizes = [24, 8], strides = [1, 1]} : vector<48x96xbf16> to vector<24x8xbf16>
    %88 = vector.extract_strided_slice %49 {offsets = [0, 80], sizes = [24, 8], strides = [1, 1]} : vector<48x96xbf16> to vector<24x8xbf16>
    %cst_33 = arith.constant dense<0.000000e+00> : vector<24x24xf32>
    %89 = tpu.matmul %86, %87, %cst_33 {dimension_numbers = #tpu.dot_dimension_numbers<[1], [1], [0], [0], [0, 0, 1, 0], [], []>} : vector<24x8xbf16>, vector<24x8xbf16>, vector<24x24xf32> -> vector<24x24xf32>
    %90 = vector.broadcast %19 : vector<1x24xf32> to vector<24x24xf32>
    %91 = arith.addf %89, %90 : vector<24x24xf32>
    %cst_34 = arith.constant dense<0xFF800000> : vector<24xf32>
    %92 = vector.multi_reduction <maximumf>, %91, %cst_34 [1] : vector<24x24xf32> to vector<24xf32>
    %93 = vector.shape_cast %92 : vector<24xf32> to vector<24x1xf32>
    %94 = vector.broadcast %93 : vector<24x1xf32> to vector<24x24xf32>
    %95 = arith.subf %91, %94 : vector<24x24xf32>
    %96 = math.exp %95 : vector<24x24xf32>
    %cst_35 = arith.constant dense<0.000000e+00> : vector<24xf32>
    %97 = vector.multi_reduction <add>, %96, %cst_35 [1] : vector<24x24xf32> to vector<24xf32>
    %98 = vector.shape_cast %97 : vector<24xf32> to vector<24x1xf32>
    %99 = tpu.reciprocal %98 {approx = true} : vector<24x1xf32> -> vector<24x1xf32>
    %100 = vector.broadcast %99 : vector<24x1xf32> to vector<24x24xf32>
    %101 = arith.mulf %96, %100 : vector<24x24xf32>
    %102 = arith.truncf %101 : vector<24x24xf32> to vector<24x24xbf16>
    %cst_36 = arith.constant dense<0.000000e+00> : vector<24x8xf32>
    %103 = tpu.matmul %102, %88, %cst_36 {dimension_numbers = #tpu.dot_dimension_numbers<[1], [0], [0], [1], [0, 0, 1, 1], [], []>} : vector<24x24xbf16>, vector<24x8xbf16>, vector<24x8xf32> -> vector<24x8xf32>
    %104 = vector.extract_strided_slice %49 {offsets = [0, 24], sizes = [24, 8], strides = [1, 1]} : vector<48x96xbf16> to vector<24x8xbf16>
    %105 = vector.extract_strided_slice %49 {offsets = [0, 56], sizes = [24, 8], strides = [1, 1]} : vector<48x96xbf16> to vector<24x8xbf16>
    %106 = vector.extract_strided_slice %49 {offsets = [0, 88], sizes = [24, 8], strides = [1, 1]} : vector<48x96xbf16> to vector<24x8xbf16>
    %cst_37 = arith.constant dense<0.000000e+00> : vector<24x24xf32>
    %107 = tpu.matmul %104, %105, %cst_37 {dimension_numbers = #tpu.dot_dimension_numbers<[1], [1], [0], [0], [0, 0, 1, 0], [], []>} : vector<24x8xbf16>, vector<24x8xbf16>, vector<24x24xf32> -> vector<24x24xf32>
    %108 = vector.broadcast %19 : vector<1x24xf32> to vector<24x24xf32>
    %109 = arith.addf %107, %108 : vector<24x24xf32>
    %cst_38 = arith.constant dense<0xFF800000> : vector<24xf32>
    %110 = vector.multi_reduction <maximumf>, %109, %cst_38 [1] : vector<24x24xf32> to vector<24xf32>
    %111 = vector.shape_cast %110 : vector<24xf32> to vector<24x1xf32>
    %112 = vector.broadcast %111 : vector<24x1xf32> to vector<24x24xf32>
    %113 = arith.subf %109, %112 : vector<24x24xf32>
    %114 = math.exp %113 : vector<24x24xf32>
    %cst_39 = arith.constant dense<0.000000e+00> : vector<24xf32>
    %115 = vector.multi_reduction <add>, %114, %cst_39 [1] : vector<24x24xf32> to vector<24xf32>
    %116 = vector.shape_cast %115 : vector<24xf32> to vector<24x1xf32>
    %117 = tpu.reciprocal %116 {approx = true} : vector<24x1xf32> -> vector<24x1xf32>
    %118 = vector.broadcast %117 : vector<24x1xf32> to vector<24x24xf32>
    %119 = arith.mulf %114, %118 : vector<24x24xf32>
    %120 = arith.truncf %119 : vector<24x24xf32> to vector<24x24xbf16>
    %cst_40 = arith.constant dense<0.000000e+00> : vector<24x8xf32>
    %121 = tpu.matmul %120, %106, %cst_40 {dimension_numbers = #tpu.dot_dimension_numbers<[1], [0], [0], [1], [0, 0, 1, 1], [], []>} : vector<24x24xbf16>, vector<24x8xbf16>, vector<24x8xf32> -> vector<24x8xf32>
    %122 = tpu.concatenate %67, %85, %103, %121 in 1 : vector<24x8xf32>, vector<24x8xf32>, vector<24x8xf32>, vector<24x8xf32> -> vector<24x32xf32>
    %123 = vector.extract_strided_slice %49 {offsets = [24, 0], sizes = [24, 8], strides = [1, 1]} : vector<48x96xbf16> to vector<24x8xbf16>
    %124 = vector.extract_strided_slice %49 {offsets = [24, 32], sizes = [24, 8], strides = [1, 1]} : vector<48x96xbf16> to vector<24x8xbf16>
    %125 = vector.extract_strided_slice %49 {offsets = [24, 64], sizes = [24, 8], strides = [1, 1]} : vector<48x96xbf16> to vector<24x8xbf16>
    %cst_41 = arith.constant dense<0.000000e+00> : vector<24x24xf32>
    %126 = tpu.matmul %123, %124, %cst_41 {dimension_numbers = #tpu.dot_dimension_numbers<[1], [1], [0], [0], [0, 0, 1, 0], [], []>} : vector<24x8xbf16>, vector<24x8xbf16>, vector<24x24xf32> -> vector<24x24xf32>
    %127 = vector.broadcast %19 : vector<1x24xf32> to vector<24x24xf32>
    %128 = arith.addf %126, %127 : vector<24x24xf32>
    %cst_42 = arith.constant dense<0xFF800000> : vector<24xf32>
    %129 = vector.multi_reduction <maximumf>, %128, %cst_42 [1] : vector<24x24xf32> to vector<24xf32>
    %130 = vector.shape_cast %129 : vector<24xf32> to vector<24x1xf32>
    %131 = vector.broadcast %130 : vector<24x1xf32> to vector<24x24xf32>
    %132 = arith.subf %128, %131 : vector<24x24xf32>
    %133 = math.exp %132 : vector<24x24xf32>
    %cst_43 = arith.constant dense<0.000000e+00> : vector<24xf32>
    %134 = vector.multi_reduction <add>, %133, %cst_43 [1] : vector<24x24xf32> to vector<24xf32>
    %135 = vector.shape_cast %134 : vector<24xf32> to vector<24x1xf32>
    %136 = tpu.reciprocal %135 {approx = true} : vector<24x1xf32> -> vector<24x1xf32>
    %137 = vector.broadcast %136 : vector<24x1xf32> to vector<24x24xf32>
    %138 = arith.mulf %133, %137 : vector<24x24xf32>
    %139 = arith.truncf %138 : vector<24x24xf32> to vector<24x24xbf16>
    %cst_44 = arith.constant dense<0.000000e+00> : vector<24x8xf32>
    %140 = tpu.matmul %139, %125, %cst_44 {dimension_numbers = #tpu.dot_dimension_numbers<[1], [0], [0], [1], [0, 0, 1, 1], [], []>} : vector<24x24xbf16>, vector<24x8xbf16>, vector<24x8xf32> -> vector<24x8xf32>
    %141 = vector.extract_strided_slice %49 {offsets = [24, 8], sizes = [24, 8], strides = [1, 1]} : vector<48x96xbf16> to vector<24x8xbf16>
    %142 = vector.extract_strided_slice %49 {offsets = [24, 40], sizes = [24, 8], strides = [1, 1]} : vector<48x96xbf16> to vector<24x8xbf16>
    %143 = vector.extract_strided_slice %49 {offsets = [24, 72], sizes = [24, 8], strides = [1, 1]} : vector<48x96xbf16> to vector<24x8xbf16>
    %cst_45 = arith.constant dense<0.000000e+00> : vector<24x24xf32>
    %144 = tpu.matmul %141, %142, %cst_45 {dimension_numbers = #tpu.dot_dimension_numbers<[1], [1], [0], [0], [0, 0, 1, 0], [], []>} : vector<24x8xbf16>, vector<24x8xbf16>, vector<24x24xf32> -> vector<24x24xf32>
    %145 = vector.broadcast %19 : vector<1x24xf32> to vector<24x24xf32>
    %146 = arith.addf %144, %145 : vector<24x24xf32>
    %cst_46 = arith.constant dense<0xFF800000> : vector<24xf32>
    %147 = vector.multi_reduction <maximumf>, %146, %cst_46 [1] : vector<24x24xf32> to vector<24xf32>
    %148 = vector.shape_cast %147 : vector<24xf32> to vector<24x1xf32>
    %149 = vector.broadcast %148 : vector<24x1xf32> to vector<24x24xf32>
    %150 = arith.subf %146, %149 : vector<24x24xf32>
    %151 = math.exp %150 : vector<24x24xf32>
    %cst_47 = arith.constant dense<0.000000e+00> : vector<24xf32>
    %152 = vector.multi_reduction <add>, %151, %cst_47 [1] : vector<24x24xf32> to vector<24xf32>
    %153 = vector.shape_cast %152 : vector<24xf32> to vector<24x1xf32>
    %154 = tpu.reciprocal %153 {approx = true} : vector<24x1xf32> -> vector<24x1xf32>
    %155 = vector.broadcast %154 : vector<24x1xf32> to vector<24x24xf32>
    %156 = arith.mulf %151, %155 : vector<24x24xf32>
    %157 = arith.truncf %156 : vector<24x24xf32> to vector<24x24xbf16>
    %cst_48 = arith.constant dense<0.000000e+00> : vector<24x8xf32>
    %158 = tpu.matmul %157, %143, %cst_48 {dimension_numbers = #tpu.dot_dimension_numbers<[1], [0], [0], [1], [0, 0, 1, 1], [], []>} : vector<24x24xbf16>, vector<24x8xbf16>, vector<24x8xf32> -> vector<24x8xf32>
    %159 = vector.extract_strided_slice %49 {offsets = [24, 16], sizes = [24, 8], strides = [1, 1]} : vector<48x96xbf16> to vector<24x8xbf16>
    %160 = vector.extract_strided_slice %49 {offsets = [24, 48], sizes = [24, 8], strides = [1, 1]} : vector<48x96xbf16> to vector<24x8xbf16>
    %161 = vector.extract_strided_slice %49 {offsets = [24, 80], sizes = [24, 8], strides = [1, 1]} : vector<48x96xbf16> to vector<24x8xbf16>
    %cst_49 = arith.constant dense<0.000000e+00> : vector<24x24xf32>
    %162 = tpu.matmul %159, %160, %cst_49 {dimension_numbers = #tpu.dot_dimension_numbers<[1], [1], [0], [0], [0, 0, 1, 0], [], []>} : vector<24x8xbf16>, vector<24x8xbf16>, vector<24x24xf32> -> vector<24x24xf32>
    %163 = vector.broadcast %19 : vector<1x24xf32> to vector<24x24xf32>
    %164 = arith.addf %162, %163 : vector<24x24xf32>
    %cst_50 = arith.constant dense<0xFF800000> : vector<24xf32>
    %165 = vector.multi_reduction <maximumf>, %164, %cst_50 [1] : vector<24x24xf32> to vector<24xf32>
    %166 = vector.shape_cast %165 : vector<24xf32> to vector<24x1xf32>
    %167 = vector.broadcast %166 : vector<24x1xf32> to vector<24x24xf32>
    %168 = arith.subf %164, %167 : vector<24x24xf32>
    %169 = math.exp %168 : vector<24x24xf32>
    %cst_51 = arith.constant dense<0.000000e+00> : vector<24xf32>
    %170 = vector.multi_reduction <add>, %169, %cst_51 [1] : vector<24x24xf32> to vector<24xf32>
    %171 = vector.shape_cast %170 : vector<24xf32> to vector<24x1xf32>
    %172 = tpu.reciprocal %171 {approx = true} : vector<24x1xf32> -> vector<24x1xf32>
    %173 = vector.broadcast %172 : vector<24x1xf32> to vector<24x24xf32>
    %174 = arith.mulf %169, %173 : vector<24x24xf32>
    %175 = arith.truncf %174 : vector<24x24xf32> to vector<24x24xbf16>
    %cst_52 = arith.constant dense<0.000000e+00> : vector<24x8xf32>
    %176 = tpu.matmul %175, %161, %cst_52 {dimension_numbers = #tpu.dot_dimension_numbers<[1], [0], [0], [1], [0, 0, 1, 1], [], []>} : vector<24x24xbf16>, vector<24x8xbf16>, vector<24x8xf32> -> vector<24x8xf32>
    %177 = vector.extract_strided_slice %49 {offsets = [24, 24], sizes = [24, 8], strides = [1, 1]} : vector<48x96xbf16> to vector<24x8xbf16>
    %178 = vector.extract_strided_slice %49 {offsets = [24, 56], sizes = [24, 8], strides = [1, 1]} : vector<48x96xbf16> to vector<24x8xbf16>
    %179 = vector.extract_strided_slice %49 {offsets = [24, 88], sizes = [24, 8], strides = [1, 1]} : vector<48x96xbf16> to vector<24x8xbf16>
    %cst_53 = arith.constant dense<0.000000e+00> : vector<24x24xf32>
    %180 = tpu.matmul %177, %178, %cst_53 {dimension_numbers = #tpu.dot_dimension_numbers<[1], [1], [0], [0], [0, 0, 1, 0], [], []>} : vector<24x8xbf16>, vector<24x8xbf16>, vector<24x24xf32> -> vector<24x24xf32>
    %181 = vector.broadcast %19 : vector<1x24xf32> to vector<24x24xf32>
    %182 = arith.addf %180, %181 : vector<24x24xf32>
    %cst_54 = arith.constant dense<0xFF800000> : vector<24xf32>
    %183 = vector.multi_reduction <maximumf>, %182, %cst_54 [1] : vector<24x24xf32> to vector<24xf32>
    %184 = vector.shape_cast %183 : vector<24xf32> to vector<24x1xf32>
    %185 = vector.broadcast %184 : vector<24x1xf32> to vector<24x24xf32>
    %186 = arith.subf %182, %185 : vector<24x24xf32>
    %187 = math.exp %186 : vector<24x24xf32>
    %cst_55 = arith.constant dense<0.000000e+00> : vector<24xf32>
    %188 = vector.multi_reduction <add>, %187, %cst_55 [1] : vector<24x24xf32> to vector<24xf32>
    %189 = vector.shape_cast %188 : vector<24xf32> to vector<24x1xf32>
    %190 = tpu.reciprocal %189 {approx = true} : vector<24x1xf32> -> vector<24x1xf32>
    %191 = vector.broadcast %190 : vector<24x1xf32> to vector<24x24xf32>
    %192 = arith.mulf %187, %191 : vector<24x24xf32>
    %193 = arith.truncf %192 : vector<24x24xf32> to vector<24x24xbf16>
    %cst_56 = arith.constant dense<0.000000e+00> : vector<24x8xf32>
    %194 = tpu.matmul %193, %179, %cst_56 {dimension_numbers = #tpu.dot_dimension_numbers<[1], [0], [0], [1], [0, 0, 1, 1], [], []>} : vector<24x24xbf16>, vector<24x8xbf16>, vector<24x8xf32> -> vector<24x8xf32>
    %195 = tpu.concatenate %140, %158, %176, %194 in 1 : vector<24x8xf32>, vector<24x8xf32>, vector<24x8xf32>, vector<24x8xf32> -> vector<24x32xf32>
    %196 = tpu.concatenate %122, %195 in 0 : vector<24x32xf32>, vector<24x32xf32> -> vector<48x32xf32>
    %197 = arith.truncf %196 : vector<48x32xf32> to vector<48x32xbf16>
    %cst_57 = arith.constant dense<0.000000e+00> : vector<48x32xf32>
    %198 = tpu.matmul %197, %2, %cst_57 {dimension_numbers = #tpu.dot_dimension_numbers<[1], [0], [0], [1], [0, 0, 1, 1], [], []>} : vector<48x32xbf16>, vector<32x32xbf16>, vector<48x32xf32> -> vector<48x32xf32>
    %199 = vector.broadcast %14 : vector<1x32xf32> to vector<48x32xf32>
    %200 = arith.addf %198, %199 : vector<48x32xf32>
    %201 = arith.addf %22, %200 : vector<48x32xf32>
    %cst_58 = arith.constant dense<0.000000e+00> : vector<48xf32>
    %202 = vector.multi_reduction <add>, %201, %cst_58 [1] : vector<48x32xf32> to vector<48xf32>
    %203 = vector.shape_cast %202 : vector<48xf32> to vector<48x1xf32>
    %cst_59 = arith.constant 3.200000e+01 : f32
    %204 = vector.broadcast %cst_59 : f32 to vector<48x1xf32>
    %205 = arith.divf %203, %204 : vector<48x1xf32>
    %206 = vector.broadcast %205 : vector<48x1xf32> to vector<48x32xf32>
    %207 = arith.subf %201, %206 : vector<48x32xf32>
    %208 = arith.mulf %207, %207 : vector<48x32xf32>
    %cst_60 = arith.constant dense<0.000000e+00> : vector<48xf32>
    %209 = vector.multi_reduction <add>, %208, %cst_60 [1] : vector<48x32xf32> to vector<48xf32>
    %210 = vector.shape_cast %209 : vector<48xf32> to vector<48x1xf32>
    %cst_61 = arith.constant 3.200000e+01 : f32
    %211 = vector.broadcast %cst_61 : f32 to vector<48x1xf32>
    %212 = arith.divf %210, %211 : vector<48x1xf32>
    %213 = vector.broadcast %205 : vector<48x1xf32> to vector<48x32xf32>
    %214 = arith.subf %201, %213 : vector<48x32xf32>
    %cst_62 = arith.constant 9.99999974E-6 : f32
    %215 = vector.broadcast %cst_62 : f32 to vector<48x1xf32>
    %216 = arith.addf %212, %215 : vector<48x1xf32>
    %217 = math.rsqrt %216 : vector<48x1xf32>
    %218 = vector.broadcast %217 : vector<48x1xf32> to vector<48x32xf32>
    %219 = arith.mulf %214, %218 : vector<48x32xf32>
    %220 = vector.broadcast %11 : vector<1x32xf32> to vector<48x32xf32>
    %221 = arith.mulf %219, %220 : vector<48x32xf32>
    %222 = vector.broadcast %12 : vector<1x32xf32> to vector<48x32xf32>
    %223 = arith.addf %221, %222 : vector<48x32xf32>
    %224 = arith.truncf %223 : vector<48x32xf32> to vector<48x32xbf16>
    %cst_63 = arith.constant dense<0.000000e+00> : vector<48x64xf32>
    %225 = tpu.matmul %224, %3, %cst_63 {dimension_numbers = #tpu.dot_dimension_numbers<[1], [0], [0], [1], [0, 0, 1, 1], [], []>} : vector<48x32xbf16>, vector<32x64xbf16>, vector<48x64xf32> -> vector<48x64xf32>
    %226 = vector.broadcast %15 : vector<1x64xf32> to vector<48x64xf32>
    %227 = arith.addf %225, %226 : vector<48x64xf32>
    %228 = arith.mulf %227, %227 : vector<48x64xf32>
    %229 = arith.mulf %227, %228 : vector<48x64xf32>
    %cst_64 = arith.constant 4.471500e-02 : f32
    %230 = vector.broadcast %cst_64 : f32 to vector<48x64xf32>
    %231 = arith.mulf %230, %229 : vector<48x64xf32>
    %232 = arith.addf %227, %231 : vector<48x64xf32>
    %cst_65 = arith.constant 0.797884583 : f32
    %233 = vector.broadcast %cst_65 : f32 to vector<48x64xf32>
    %234 = arith.mulf %233, %232 : vector<48x64xf32>
    %235 = math.tanh %234 : vector<48x64xf32>
    %cst_66 = arith.constant 1.000000e+00 : f32
    %236 = vector.broadcast %cst_66 : f32 to vector<48x64xf32>
    %237 = arith.addf %236, %235 : vector<48x64xf32>
    %cst_67 = arith.constant 5.000000e-01 : f32
    %238 = vector.broadcast %cst_67 : f32 to vector<48x64xf32>
    %239 = arith.mulf %238, %237 : vector<48x64xf32>
    %240 = arith.mulf %227, %239 : vector<48x64xf32>
    %241 = arith.truncf %240 : vector<48x64xf32> to vector<48x64xbf16>
    %cst_68 = arith.constant dense<0.000000e+00> : vector<48x32xf32>
    %242 = tpu.matmul %241, %4, %cst_68 {dimension_numbers = #tpu.dot_dimension_numbers<[1], [0], [0], [1], [0, 0, 1, 1], [], []>} : vector<48x64xbf16>, vector<64x32xbf16>, vector<48x32xf32> -> vector<48x32xf32>
    %243 = vector.broadcast %16 : vector<1x32xf32> to vector<48x32xf32>
    %244 = arith.addf %242, %243 : vector<48x32xf32>
    %245 = arith.addf %201, %244 : vector<48x32xf32>
    %cst_69 = arith.constant dense<0.000000e+00> : vector<48xf32>
    %246 = vector.multi_reduction <add>, %245, %cst_69 [1] : vector<48x32xf32> to vector<48xf32>
    %247 = vector.shape_cast %246 : vector<48xf32> to vector<48x1xf32>
    %cst_70 = arith.constant 3.200000e+01 : f32
    %248 = vector.broadcast %cst_70 : f32 to vector<48x1xf32>
    %249 = arith.divf %247, %248 : vector<48x1xf32>
    %250 = vector.broadcast %249 : vector<48x1xf32> to vector<48x32xf32>
    %251 = arith.subf %245, %250 : vector<48x32xf32>
    %252 = arith.mulf %251, %251 : vector<48x32xf32>
    %cst_71 = arith.constant dense<0.000000e+00> : vector<48xf32>
    %253 = vector.multi_reduction <add>, %252, %cst_71 [1] : vector<48x32xf32> to vector<48xf32>
    %254 = vector.shape_cast %253 : vector<48xf32> to vector<48x1xf32>
    %cst_72 = arith.constant 3.200000e+01 : f32
    %255 = vector.broadcast %cst_72 : f32 to vector<48x1xf32>
    %256 = arith.divf %254, %255 : vector<48x1xf32>
    %257 = vector.broadcast %249 : vector<48x1xf32> to vector<48x32xf32>
    %258 = arith.subf %245, %257 : vector<48x32xf32>
    %cst_73 = arith.constant 9.99999974E-6 : f32
    %259 = vector.broadcast %cst_73 : f32 to vector<48x1xf32>
    %260 = arith.addf %256, %259 : vector<48x1xf32>
    %261 = math.rsqrt %260 : vector<48x1xf32>
    %262 = vector.broadcast %261 : vector<48x1xf32> to vector<48x32xf32>
    %263 = arith.mulf %258, %262 : vector<48x32xf32>
    %264 = vector.broadcast %9 : vector<1x32xf32> to vector<48x32xf32>
    %265 = arith.mulf %263, %264 : vector<48x32xf32>
    %266 = vector.broadcast %10 : vector<1x32xf32> to vector<48x32xf32>
    %267 = arith.addf %265, %266 : vector<48x32xf32>
    %268 = arith.truncf %267 : vector<48x32xf32> to vector<48x32xbf16>
    %cst_74 = arith.constant dense<0.000000e+00> : vector<48x96xf32>
    %269 = tpu.matmul %268, %1, %cst_74 {dimension_numbers = #tpu.dot_dimension_numbers<[1], [0], [0], [1], [0, 0, 1, 1], [], []>} : vector<48x32xbf16>, vector<32x96xbf16>, vector<48x96xf32> -> vector<48x96xf32>
    %270 = vector.broadcast %13 : vector<1x96xf32> to vector<48x96xf32>
    %271 = arith.addf %269, %270 : vector<48x96xf32>
    %272 = arith.truncf %271 : vector<48x96xf32> to vector<48x96xbf16>
    %273 = vector.extract_strided_slice %272 {offsets = [0, 0], sizes = [24, 8], strides = [1, 1]} : vector<48x96xbf16> to vector<24x8xbf16>
    %274 = vector.extract_strided_slice %272 {offsets = [0, 32], sizes = [24, 8], strides = [1, 1]} : vector<48x96xbf16> to vector<24x8xbf16>
    %275 = vector.extract_strided_slice %272 {offsets = [0, 64], sizes = [24, 8], strides = [1, 1]} : vector<48x96xbf16> to vector<24x8xbf16>
    %cst_75 = arith.constant dense<0.000000e+00> : vector<24x24xf32>
    %276 = tpu.matmul %273, %274, %cst_75 {dimension_numbers = #tpu.dot_dimension_numbers<[1], [1], [0], [0], [0, 0, 1, 0], [], []>} : vector<24x8xbf16>, vector<24x8xbf16>, vector<24x24xf32> -> vector<24x24xf32>
    %277 = vector.broadcast %19 : vector<1x24xf32> to vector<24x24xf32>
    %278 = arith.addf %276, %277 : vector<24x24xf32>
    %cst_76 = arith.constant dense<0xFF800000> : vector<24xf32>
    %279 = vector.multi_reduction <maximumf>, %278, %cst_76 [1] : vector<24x24xf32> to vector<24xf32>
    %280 = vector.shape_cast %279 : vector<24xf32> to vector<24x1xf32>
    %281 = vector.broadcast %280 : vector<24x1xf32> to vector<24x24xf32>
    %282 = arith.subf %278, %281 : vector<24x24xf32>
    %283 = math.exp %282 : vector<24x24xf32>
    %cst_77 = arith.constant dense<0.000000e+00> : vector<24xf32>
    %284 = vector.multi_reduction <add>, %283, %cst_77 [1] : vector<24x24xf32> to vector<24xf32>
    %285 = vector.shape_cast %284 : vector<24xf32> to vector<24x1xf32>
    %286 = tpu.reciprocal %285 {approx = true} : vector<24x1xf32> -> vector<24x1xf32>
    %287 = vector.broadcast %286 : vector<24x1xf32> to vector<24x24xf32>
    %288 = arith.mulf %283, %287 : vector<24x24xf32>
    %289 = arith.truncf %288 : vector<24x24xf32> to vector<24x24xbf16>
    %cst_78 = arith.constant dense<0.000000e+00> : vector<24x8xf32>
    %290 = tpu.matmul %289, %275, %cst_78 {dimension_numbers = #tpu.dot_dimension_numbers<[1], [0], [0], [1], [0, 0, 1, 1], [], []>} : vector<24x24xbf16>, vector<24x8xbf16>, vector<24x8xf32> -> vector<24x8xf32>
    %291 = vector.extract_strided_slice %272 {offsets = [0, 8], sizes = [24, 8], strides = [1, 1]} : vector<48x96xbf16> to vector<24x8xbf16>
    %292 = vector.extract_strided_slice %272 {offsets = [0, 40], sizes = [24, 8], strides = [1, 1]} : vector<48x96xbf16> to vector<24x8xbf16>
    %293 = vector.extract_strided_slice %272 {offsets = [0, 72], sizes = [24, 8], strides = [1, 1]} : vector<48x96xbf16> to vector<24x8xbf16>
    %cst_79 = arith.constant dense<0.000000e+00> : vector<24x24xf32>
    %294 = tpu.matmul %291, %292, %cst_79 {dimension_numbers = #tpu.dot_dimension_numbers<[1], [1], [0], [0], [0, 0, 1, 0], [], []>} : vector<24x8xbf16>, vector<24x8xbf16>, vector<24x24xf32> -> vector<24x24xf32>
    %295 = vector.broadcast %19 : vector<1x24xf32> to vector<24x24xf32>
    %296 = arith.addf %294, %295 : vector<24x24xf32>
    %cst_80 = arith.constant dense<0xFF800000> : vector<24xf32>
    %297 = vector.multi_reduction <maximumf>, %296, %cst_80 [1] : vector<24x24xf32> to vector<24xf32>
    %298 = vector.shape_cast %297 : vector<24xf32> to vector<24x1xf32>
    %299 = vector.broadcast %298 : vector<24x1xf32> to vector<24x24xf32>
    %300 = arith.subf %296, %299 : vector<24x24xf32>
    %301 = math.exp %300 : vector<24x24xf32>
    %cst_81 = arith.constant dense<0.000000e+00> : vector<24xf32>
    %302 = vector.multi_reduction <add>, %301, %cst_81 [1] : vector<24x24xf32> to vector<24xf32>
    %303 = vector.shape_cast %302 : vector<24xf32> to vector<24x1xf32>
    %304 = tpu.reciprocal %303 {approx = true} : vector<24x1xf32> -> vector<24x1xf32>
    %305 = vector.broadcast %304 : vector<24x1xf32> to vector<24x24xf32>
    %306 = arith.mulf %301, %305 : vector<24x24xf32>
    %307 = arith.truncf %306 : vector<24x24xf32> to vector<24x24xbf16>
    %cst_82 = arith.constant dense<0.000000e+00> : vector<24x8xf32>
    %308 = tpu.matmul %307, %293, %cst_82 {dimension_numbers = #tpu.dot_dimension_numbers<[1], [0], [0], [1], [0, 0, 1, 1], [], []>} : vector<24x24xbf16>, vector<24x8xbf16>, vector<24x8xf32> -> vector<24x8xf32>
    %309 = vector.extract_strided_slice %272 {offsets = [0, 16], sizes = [24, 8], strides = [1, 1]} : vector<48x96xbf16> to vector<24x8xbf16>
    %310 = vector.extract_strided_slice %272 {offsets = [0, 48], sizes = [24, 8], strides = [1, 1]} : vector<48x96xbf16> to vector<24x8xbf16>
    %311 = vector.extract_strided_slice %272 {offsets = [0, 80], sizes = [24, 8], strides = [1, 1]} : vector<48x96xbf16> to vector<24x8xbf16>
    %cst_83 = arith.constant dense<0.000000e+00> : vector<24x24xf32>
    %312 = tpu.matmul %309, %310, %cst_83 {dimension_numbers = #tpu.dot_dimension_numbers<[1], [1], [0], [0], [0, 0, 1, 0], [], []>} : vector<24x8xbf16>, vector<24x8xbf16>, vector<24x24xf32> -> vector<24x24xf32>
    %313 = vector.broadcast %19 : vector<1x24xf32> to vector<24x24xf32>
    %314 = arith.addf %312, %313 : vector<24x24xf32>
    %cst_84 = arith.constant dense<0xFF800000> : vector<24xf32>
    %315 = vector.multi_reduction <maximumf>, %314, %cst_84 [1] : vector<24x24xf32> to vector<24xf32>
    %316 = vector.shape_cast %315 : vector<24xf32> to vector<24x1xf32>
    %317 = vector.broadcast %316 : vector<24x1xf32> to vector<24x24xf32>
    %318 = arith.subf %314, %317 : vector<24x24xf32>
    %319 = math.exp %318 : vector<24x24xf32>
    %cst_85 = arith.constant dense<0.000000e+00> : vector<24xf32>
    %320 = vector.multi_reduction <add>, %319, %cst_85 [1] : vector<24x24xf32> to vector<24xf32>
    %321 = vector.shape_cast %320 : vector<24xf32> to vector<24x1xf32>
    %322 = tpu.reciprocal %321 {approx = true} : vector<24x1xf32> -> vector<24x1xf32>
    %323 = vector.broadcast %322 : vector<24x1xf32> to vector<24x24xf32>
    %324 = arith.mulf %319, %323 : vector<24x24xf32>
    %325 = arith.truncf %324 : vector<24x24xf32> to vector<24x24xbf16>
    %cst_86 = arith.constant dense<0.000000e+00> : vector<24x8xf32>
    %326 = tpu.matmul %325, %311, %cst_86 {dimension_numbers = #tpu.dot_dimension_numbers<[1], [0], [0], [1], [0, 0, 1, 1], [], []>} : vector<24x24xbf16>, vector<24x8xbf16>, vector<24x8xf32> -> vector<24x8xf32>
    %327 = vector.extract_strided_slice %272 {offsets = [0, 24], sizes = [24, 8], strides = [1, 1]} : vector<48x96xbf16> to vector<24x8xbf16>
    %328 = vector.extract_strided_slice %272 {offsets = [0, 56], sizes = [24, 8], strides = [1, 1]} : vector<48x96xbf16> to vector<24x8xbf16>
    %329 = vector.extract_strided_slice %272 {offsets = [0, 88], sizes = [24, 8], strides = [1, 1]} : vector<48x96xbf16> to vector<24x8xbf16>
    %cst_87 = arith.constant dense<0.000000e+00> : vector<24x24xf32>
    %330 = tpu.matmul %327, %328, %cst_87 {dimension_numbers = #tpu.dot_dimension_numbers<[1], [1], [0], [0], [0, 0, 1, 0], [], []>} : vector<24x8xbf16>, vector<24x8xbf16>, vector<24x24xf32> -> vector<24x24xf32>
    %331 = vector.broadcast %19 : vector<1x24xf32> to vector<24x24xf32>
    %332 = arith.addf %330, %331 : vector<24x24xf32>
    %cst_88 = arith.constant dense<0xFF800000> : vector<24xf32>
    %333 = vector.multi_reduction <maximumf>, %332, %cst_88 [1] : vector<24x24xf32> to vector<24xf32>
    %334 = vector.shape_cast %333 : vector<24xf32> to vector<24x1xf32>
    %335 = vector.broadcast %334 : vector<24x1xf32> to vector<24x24xf32>
    %336 = arith.subf %332, %335 : vector<24x24xf32>
    %337 = math.exp %336 : vector<24x24xf32>
    %cst_89 = arith.constant dense<0.000000e+00> : vector<24xf32>
    %338 = vector.multi_reduction <add>, %337, %cst_89 [1] : vector<24x24xf32> to vector<24xf32>
    %339 = vector.shape_cast %338 : vector<24xf32> to vector<24x1xf32>
    %340 = tpu.reciprocal %339 {approx = true} : vector<24x1xf32> -> vector<24x1xf32>
    %341 = vector.broadcast %340 : vector<24x1xf32> to vector<24x24xf32>
    %342 = arith.mulf %337, %341 : vector<24x24xf32>
    %343 = arith.truncf %342 : vector<24x24xf32> to vector<24x24xbf16>
    %cst_90 = arith.constant dense<0.000000e+00> : vector<24x8xf32>
    %344 = tpu.matmul %343, %329, %cst_90 {dimension_numbers = #tpu.dot_dimension_numbers<[1], [0], [0], [1], [0, 0, 1, 1], [], []>} : vector<24x24xbf16>, vector<24x8xbf16>, vector<24x8xf32> -> vector<24x8xf32>
    %345 = tpu.concatenate %290, %308, %326, %344 in 1 : vector<24x8xf32>, vector<24x8xf32>, vector<24x8xf32>, vector<24x8xf32> -> vector<24x32xf32>
    %346 = vector.extract_strided_slice %272 {offsets = [24, 0], sizes = [24, 8], strides = [1, 1]} : vector<48x96xbf16> to vector<24x8xbf16>
    %347 = vector.extract_strided_slice %272 {offsets = [24, 32], sizes = [24, 8], strides = [1, 1]} : vector<48x96xbf16> to vector<24x8xbf16>
    %348 = vector.extract_strided_slice %272 {offsets = [24, 64], sizes = [24, 8], strides = [1, 1]} : vector<48x96xbf16> to vector<24x8xbf16>
    %cst_91 = arith.constant dense<0.000000e+00> : vector<24x24xf32>
    %349 = tpu.matmul %346, %347, %cst_91 {dimension_numbers = #tpu.dot_dimension_numbers<[1], [1], [0], [0], [0, 0, 1, 0], [], []>} : vector<24x8xbf16>, vector<24x8xbf16>, vector<24x24xf32> -> vector<24x24xf32>
    %350 = vector.broadcast %19 : vector<1x24xf32> to vector<24x24xf32>
    %351 = arith.addf %349, %350 : vector<24x24xf32>
    %cst_92 = arith.constant dense<0xFF800000> : vector<24xf32>
    %352 = vector.multi_reduction <maximumf>, %351, %cst_92 [1] : vector<24x24xf32> to vector<24xf32>
    %353 = vector.shape_cast %352 : vector<24xf32> to vector<24x1xf32>
    %354 = vector.broadcast %353 : vector<24x1xf32> to vector<24x24xf32>
    %355 = arith.subf %351, %354 : vector<24x24xf32>
    %356 = math.exp %355 : vector<24x24xf32>
    %cst_93 = arith.constant dense<0.000000e+00> : vector<24xf32>
    %357 = vector.multi_reduction <add>, %356, %cst_93 [1] : vector<24x24xf32> to vector<24xf32>
    %358 = vector.shape_cast %357 : vector<24xf32> to vector<24x1xf32>
    %359 = tpu.reciprocal %358 {approx = true} : vector<24x1xf32> -> vector<24x1xf32>
    %360 = vector.broadcast %359 : vector<24x1xf32> to vector<24x24xf32>
    %361 = arith.mulf %356, %360 : vector<24x24xf32>
    %362 = arith.truncf %361 : vector<24x24xf32> to vector<24x24xbf16>
    %cst_94 = arith.constant dense<0.000000e+00> : vector<24x8xf32>
    %363 = tpu.matmul %362, %348, %cst_94 {dimension_numbers = #tpu.dot_dimension_numbers<[1], [0], [0], [1], [0, 0, 1, 1], [], []>} : vector<24x24xbf16>, vector<24x8xbf16>, vector<24x8xf32> -> vector<24x8xf32>
    %364 = vector.extract_strided_slice %272 {offsets = [24, 8], sizes = [24, 8], strides = [1, 1]} : vector<48x96xbf16> to vector<24x8xbf16>
    %365 = vector.extract_strided_slice %272 {offsets = [24, 40], sizes = [24, 8], strides = [1, 1]} : vector<48x96xbf16> to vector<24x8xbf16>
    %366 = vector.extract_strided_slice %272 {offsets = [24, 72], sizes = [24, 8], strides = [1, 1]} : vector<48x96xbf16> to vector<24x8xbf16>
    %cst_95 = arith.constant dense<0.000000e+00> : vector<24x24xf32>
    %367 = tpu.matmul %364, %365, %cst_95 {dimension_numbers = #tpu.dot_dimension_numbers<[1], [1], [0], [0], [0, 0, 1, 0], [], []>} : vector<24x8xbf16>, vector<24x8xbf16>, vector<24x24xf32> -> vector<24x24xf32>
    %368 = vector.broadcast %19 : vector<1x24xf32> to vector<24x24xf32>
    %369 = arith.addf %367, %368 : vector<24x24xf32>
    %cst_96 = arith.constant dense<0xFF800000> : vector<24xf32>
    %370 = vector.multi_reduction <maximumf>, %369, %cst_96 [1] : vector<24x24xf32> to vector<24xf32>
    %371 = vector.shape_cast %370 : vector<24xf32> to vector<24x1xf32>
    %372 = vector.broadcast %371 : vector<24x1xf32> to vector<24x24xf32>
    %373 = arith.subf %369, %372 : vector<24x24xf32>
    %374 = math.exp %373 : vector<24x24xf32>
    %cst_97 = arith.constant dense<0.000000e+00> : vector<24xf32>
    %375 = vector.multi_reduction <add>, %374, %cst_97 [1] : vector<24x24xf32> to vector<24xf32>
    %376 = vector.shape_cast %375 : vector<24xf32> to vector<24x1xf32>
    %377 = tpu.reciprocal %376 {approx = true} : vector<24x1xf32> -> vector<24x1xf32>
    %378 = vector.broadcast %377 : vector<24x1xf32> to vector<24x24xf32>
    %379 = arith.mulf %374, %378 : vector<24x24xf32>
    %380 = arith.truncf %379 : vector<24x24xf32> to vector<24x24xbf16>
    %cst_98 = arith.constant dense<0.000000e+00> : vector<24x8xf32>
    %381 = tpu.matmul %380, %366, %cst_98 {dimension_numbers = #tpu.dot_dimension_numbers<[1], [0], [0], [1], [0, 0, 1, 1], [], []>} : vector<24x24xbf16>, vector<24x8xbf16>, vector<24x8xf32> -> vector<24x8xf32>
    %382 = vector.extract_strided_slice %272 {offsets = [24, 16], sizes = [24, 8], strides = [1, 1]} : vector<48x96xbf16> to vector<24x8xbf16>
    %383 = vector.extract_strided_slice %272 {offsets = [24, 48], sizes = [24, 8], strides = [1, 1]} : vector<48x96xbf16> to vector<24x8xbf16>
    %384 = vector.extract_strided_slice %272 {offsets = [24, 80], sizes = [24, 8], strides = [1, 1]} : vector<48x96xbf16> to vector<24x8xbf16>
    %cst_99 = arith.constant dense<0.000000e+00> : vector<24x24xf32>
    %385 = tpu.matmul %382, %383, %cst_99 {dimension_numbers = #tpu.dot_dimension_numbers<[1], [1], [0], [0], [0, 0, 1, 0], [], []>} : vector<24x8xbf16>, vector<24x8xbf16>, vector<24x24xf32> -> vector<24x24xf32>
    %386 = vector.broadcast %19 : vector<1x24xf32> to vector<24x24xf32>
    %387 = arith.addf %385, %386 : vector<24x24xf32>
    %cst_100 = arith.constant dense<0xFF800000> : vector<24xf32>
    %388 = vector.multi_reduction <maximumf>, %387, %cst_100 [1] : vector<24x24xf32> to vector<24xf32>
    %389 = vector.shape_cast %388 : vector<24xf32> to vector<24x1xf32>
    %390 = vector.broadcast %389 : vector<24x1xf32> to vector<24x24xf32>
    %391 = arith.subf %387, %390 : vector<24x24xf32>
    %392 = math.exp %391 : vector<24x24xf32>
    %cst_101 = arith.constant dense<0.000000e+00> : vector<24xf32>
    %393 = vector.multi_reduction <add>, %392, %cst_101 [1] : vector<24x24xf32> to vector<24xf32>
    %394 = vector.shape_cast %393 : vector<24xf32> to vector<24x1xf32>
    %395 = tpu.reciprocal %394 {approx = true} : vector<24x1xf32> -> vector<24x1xf32>
    %396 = vector.broadcast %395 : vector<24x1xf32> to vector<24x24xf32>
    %397 = arith.mulf %392, %396 : vector<24x24xf32>
    %398 = arith.truncf %397 : vector<24x24xf32> to vector<24x24xbf16>
    %cst_102 = arith.constant dense<0.000000e+00> : vector<24x8xf32>
    %399 = tpu.matmul %398, %384, %cst_102 {dimension_numbers = #tpu.dot_dimension_numbers<[1], [0], [0], [1], [0, 0, 1, 1], [], []>} : vector<24x24xbf16>, vector<24x8xbf16>, vector<24x8xf32> -> vector<24x8xf32>
    %400 = vector.extract_strided_slice %272 {offsets = [24, 24], sizes = [24, 8], strides = [1, 1]} : vector<48x96xbf16> to vector<24x8xbf16>
    %401 = vector.extract_strided_slice %272 {offsets = [24, 56], sizes = [24, 8], strides = [1, 1]} : vector<48x96xbf16> to vector<24x8xbf16>
    %402 = vector.extract_strided_slice %272 {offsets = [24, 88], sizes = [24, 8], strides = [1, 1]} : vector<48x96xbf16> to vector<24x8xbf16>
    %cst_103 = arith.constant dense<0.000000e+00> : vector<24x24xf32>
    %403 = tpu.matmul %400, %401, %cst_103 {dimension_numbers = #tpu.dot_dimension_numbers<[1], [1], [0], [0], [0, 0, 1, 0], [], []>} : vector<24x8xbf16>, vector<24x8xbf16>, vector<24x24xf32> -> vector<24x24xf32>
    %404 = vector.broadcast %19 : vector<1x24xf32> to vector<24x24xf32>
    %405 = arith.addf %403, %404 : vector<24x24xf32>
    %cst_104 = arith.constant dense<0xFF800000> : vector<24xf32>
    %406 = vector.multi_reduction <maximumf>, %405, %cst_104 [1] : vector<24x24xf32> to vector<24xf32>
    %407 = vector.shape_cast %406 : vector<24xf32> to vector<24x1xf32>
    %408 = vector.broadcast %407 : vector<24x1xf32> to vector<24x24xf32>
    %409 = arith.subf %405, %408 : vector<24x24xf32>
    %410 = math.exp %409 : vector<24x24xf32>
    %cst_105 = arith.constant dense<0.000000e+00> : vector<24xf32>
    %411 = vector.multi_reduction <add>, %410, %cst_105 [1] : vector<24x24xf32> to vector<24xf32>
    %412 = vector.shape_cast %411 : vector<24xf32> to vector<24x1xf32>
    %413 = tpu.reciprocal %412 {approx = true} : vector<24x1xf32> -> vector<24x1xf32>
    %414 = vector.broadcast %413 : vector<24x1xf32> to vector<24x24xf32>
    %415 = arith.mulf %410, %414 : vector<24x24xf32>
    %416 = arith.truncf %415 : vector<24x24xf32> to vector<24x24xbf16>
    %cst_106 = arith.constant dense<0.000000e+00> : vector<24x8xf32>
    %417 = tpu.matmul %416, %402, %cst_106 {dimension_numbers = #tpu.dot_dimension_numbers<[1], [0], [0], [1], [0, 0, 1, 1], [], []>} : vector<24x24xbf16>, vector<24x8xbf16>, vector<24x8xf32> -> vector<24x8xf32>
    %418 = tpu.concatenate %363, %381, %399, %417 in 1 : vector<24x8xf32>, vector<24x8xf32>, vector<24x8xf32>, vector<24x8xf32> -> vector<24x32xf32>
    %419 = tpu.concatenate %345, %418 in 0 : vector<24x32xf32>, vector<24x32xf32> -> vector<48x32xf32>
    %420 = arith.truncf %419 : vector<48x32xf32> to vector<48x32xbf16>
    %cst_107 = arith.constant dense<0.000000e+00> : vector<48x32xf32>
    %421 = tpu.matmul %420, %2, %cst_107 {dimension_numbers = #tpu.dot_dimension_numbers<[1], [0], [0], [1], [0, 0, 1, 1], [], []>} : vector<48x32xbf16>, vector<32x32xbf16>, vector<48x32xf32> -> vector<48x32xf32>
    %422 = vector.broadcast %14 : vector<1x32xf32> to vector<48x32xf32>
    %423 = arith.addf %421, %422 : vector<48x32xf32>
    %424 = arith.addf %245, %423 : vector<48x32xf32>
    %cst_108 = arith.constant dense<0.000000e+00> : vector<48xf32>
    %425 = vector.multi_reduction <add>, %424, %cst_108 [1] : vector<48x32xf32> to vector<48xf32>
    %426 = vector.shape_cast %425 : vector<48xf32> to vector<48x1xf32>
    %cst_109 = arith.constant 3.200000e+01 : f32
    %427 = vector.broadcast %cst_109 : f32 to vector<48x1xf32>
    %428 = arith.divf %426, %427 : vector<48x1xf32>
    %429 = vector.broadcast %428 : vector<48x1xf32> to vector<48x32xf32>
    %430 = arith.subf %424, %429 : vector<48x32xf32>
    %431 = arith.mulf %430, %430 : vector<48x32xf32>
    %cst_110 = arith.constant dense<0.000000e+00> : vector<48xf32>
    %432 = vector.multi_reduction <add>, %431, %cst_110 [1] : vector<48x32xf32> to vector<48xf32>
    %433 = vector.shape_cast %432 : vector<48xf32> to vector<48x1xf32>
    %cst_111 = arith.constant 3.200000e+01 : f32
    %434 = vector.broadcast %cst_111 : f32 to vector<48x1xf32>
    %435 = arith.divf %433, %434 : vector<48x1xf32>
    %436 = vector.broadcast %428 : vector<48x1xf32> to vector<48x32xf32>
    %437 = arith.subf %424, %436 : vector<48x32xf32>
    %cst_112 = arith.constant 9.99999974E-6 : f32
    %438 = vector.broadcast %cst_112 : f32 to vector<48x1xf32>
    %439 = arith.addf %435, %438 : vector<48x1xf32>
    %440 = math.rsqrt %439 : vector<48x1xf32>
    %441 = vector.broadcast %440 : vector<48x1xf32> to vector<48x32xf32>
    %442 = arith.mulf %437, %441 : vector<48x32xf32>
    %443 = vector.broadcast %11 : vector<1x32xf32> to vector<48x32xf32>
    %444 = arith.mulf %442, %443 : vector<48x32xf32>
    %445 = vector.broadcast %12 : vector<1x32xf32> to vector<48x32xf32>
    %446 = arith.addf %444, %445 : vector<48x32xf32>
    %447 = arith.truncf %446 : vector<48x32xf32> to vector<48x32xbf16>
    %cst_113 = arith.constant dense<0.000000e+00> : vector<48x64xf32>
    %448 = tpu.matmul %447, %3, %cst_113 {dimension_numbers = #tpu.dot_dimension_numbers<[1], [0], [0], [1], [0, 0, 1, 1], [], []>} : vector<48x32xbf16>, vector<32x64xbf16>, vector<48x64xf32> -> vector<48x64xf32>
    %449 = vector.broadcast %15 : vector<1x64xf32> to vector<48x64xf32>
    %450 = arith.addf %448, %449 : vector<48x64xf32>
    %451 = arith.mulf %450, %450 : vector<48x64xf32>
    %452 = arith.mulf %450, %451 : vector<48x64xf32>
    %cst_114 = arith.constant 4.471500e-02 : f32
    %453 = vector.broadcast %cst_114 : f32 to vector<48x64xf32>
    %454 = arith.mulf %453, %452 : vector<48x64xf32>
    %455 = arith.addf %450, %454 : vector<48x64xf32>
    %cst_115 = arith.constant 0.797884583 : f32
    %456 = vector.broadcast %cst_115 : f32 to vector<48x64xf32>
    %457 = arith.mulf %456, %455 : vector<48x64xf32>
    %458 = math.tanh %457 : vector<48x64xf32>
    %cst_116 = arith.constant 1.000000e+00 : f32
    %459 = vector.broadcast %cst_116 : f32 to vector<48x64xf32>
    %460 = arith.addf %459, %458 : vector<48x64xf32>
    %cst_117 = arith.constant 5.000000e-01 : f32
    %461 = vector.broadcast %cst_117 : f32 to vector<48x64xf32>
    %462 = arith.mulf %461, %460 : vector<48x64xf32>
    %463 = arith.mulf %450, %462 : vector<48x64xf32>
    %464 = arith.truncf %463 : vector<48x64xf32> to vector<48x64xbf16>
    %cst_118 = arith.constant dense<0.000000e+00> : vector<48x32xf32>
    %465 = tpu.matmul %464, %4, %cst_118 {dimension_numbers = #tpu.dot_dimension_numbers<[1], [0], [0], [1], [0, 0, 1, 1], [], []>} : vector<48x64xbf16>, vector<64x32xbf16>, vector<48x32xf32> -> vector<48x32xf32>
    %466 = vector.broadcast %16 : vector<1x32xf32> to vector<48x32xf32>
    %467 = arith.addf %465, %466 : vector<48x32xf32>
    %468 = arith.addf %424, %467 : vector<48x32xf32>
    %469 = vector.extract_strided_slice %468 {offsets = [0, 0], sizes = [1, 32], strides = [1, 1]} : vector<48x32xf32> to vector<1x32xf32>
    %470 = vector.extract_strided_slice %468 {offsets = [24, 0], sizes = [1, 32], strides = [1, 1]} : vector<48x32xf32> to vector<1x32xf32>
    %471 = tpu.concatenate %469, %470 in 0 : vector<1x32xf32>, vector<1x32xf32> -> vector<2x32xf32>
    %472 = arith.truncf %471 : vector<2x32xf32> to vector<2x32xbf16>
    %cst_119 = arith.constant dense<0.000000e+00> : vector<2x64xf32>
    %473 = tpu.matmul %472, %5, %cst_119 {dimension_numbers = #tpu.dot_dimension_numbers<[1], [0], [0], [1], [0, 0, 1, 1], [], []>} : vector<2x32xbf16>, vector<32x64xbf16>, vector<2x64xf32> -> vector<2x64xf32>
    %474 = vector.broadcast %17 : vector<1x64xf32> to vector<2x64xf32>
    %475 = arith.addf %473, %474 : vector<2x64xf32>
    %476 = arith.mulf %475, %475 : vector<2x64xf32>
    %477 = arith.mulf %475, %476 : vector<2x64xf32>
    %cst_120 = arith.constant 4.471500e-02 : f32
    %478 = vector.broadcast %cst_120 : f32 to vector<2x64xf32>
    %479 = arith.mulf %478, %477 : vector<2x64xf32>
    %480 = arith.addf %475, %479 : vector<2x64xf32>
    %cst_121 = arith.constant 0.797884583 : f32
    %481 = vector.broadcast %cst_121 : f32 to vector<2x64xf32>
    %482 = arith.mulf %481, %480 : vector<2x64xf32>
    %483 = math.tanh %482 : vector<2x64xf32>
    %cst_122 = arith.constant 1.000000e+00 : f32
    %484 = vector.broadcast %cst_122 : f32 to vector<2x64xf32>
    %485 = arith.addf %484, %483 : vector<2x64xf32>
    %cst_123 = arith.constant 5.000000e-01 : f32
    %486 = vector.broadcast %cst_123 : f32 to vector<2x64xf32>
    %487 = arith.mulf %486, %485 : vector<2x64xf32>
    %488 = arith.mulf %475, %487 : vector<2x64xf32>
    %489 = arith.truncf %488 : vector<2x64xf32> to vector<2x64xbf16>
    %cst_124 = arith.constant dense<0.000000e+00> : vector<2x128xf32>
    %490 = tpu.matmul %489, %6, %cst_124 {dimension_numbers = #tpu.dot_dimension_numbers<[1], [0], [0], [1], [0, 0, 1, 1], [], []>} : vector<2x64xbf16>, vector<64x128xbf16>, vector<2x128xf32> -> vector<2x128xf32>
    %491 = vector.broadcast %18 : vector<1x128xf32> to vector<2x128xf32>
    %492 = arith.addf %490, %491 : vector<2x128xf32>
    %c0_125 = arith.constant 0 : index
    %c0_126 = arith.constant 0 : index
    %493 = vector.load %arg10[%c0_125, %c0_126] : memref<2x128xf32, #tpu.memory_space<vmem>>, vector<2x128xf32>
    tpu.vector_store %arg10[%c0_125, %c0_126], %492 {strides = array<i32>} : memref<2x128xf32, #tpu.memory_space<vmem>>, vector<2x128xf32>,
    return
  }
}

</mosaic_0001>

<bundles_post_ra>
// kernel: vit_forward.1
= control target key start
LH: loop header
LB: loop body
LE: loop exit
PB: predicated region body
PF: predicated region fallthrough
CT: control target
= control target key end

     0   :  { %s5434_s0 = inlined_call_operand.vmem [shape: bf16[48,64], index: 0, kind: input, shape index: {}]   ;;  %s5435_s1 = inlined_call_operand.vmem [shape: bf16[64,32], index: 1, kind: input, shape index: {}]   ;;  %s5436_s2 = inlined_call_operand.vmem [shape: bf16[32,96], index: 2, kind: input, shape index: {}]   ;;  %s5437_s3 = inlined_call_operand.vmem [shape: bf16[32,32], index: 3, kind: input, shape index: {}]   ;;  %s5438_s4 = inlined_call_operand.vmem [shape: bf16[32,64], index: 4, kind: input, shape index: {}]   ;;  %s5439_s5 = inlined_call_operand.vmem [shape: bf16[64,32], index: 5, kind: input, shape index: {}]   ;;  %s5440_s6 = inlined_call_operand.vmem [shape: bf16[32,64], index: 6, kind: input, shape index: {}]   ;;  %s5441_s7 = inlined_call_operand.vmem [shape: bf16[64,128], index: 7, kind: input, shape index: {}]   ;;  %s5442_s8 = inlined_call_operand.vmem [shape: f32[48,32], index: 8, kind: input, shape index: {}]   ;;  %s5443_s9 = inlined_call_operand.vmem [shape: f32[16,128], index: 9, kind: input, shape index: {}]   ;;  %s5444_s10 = inlined_call_operand.hbm [shape: f32[2,128], index: 10, kind: output, shape index: {}]  }
   0x1   :  { %v3412_v0 = vld [vmem:[%s5435_s1 + $0x18] sm:$0xff]  ;;  %v3411_v1 = vld [vmem:[%s5435_s1 + $0x10] sm:$0xff] }
   0x2   :  { %144 = vmatpush.bf16.msra.mxu0 %v3412_v0 }
   0x3   :  { %15 = vsyncpa [#allocation3], 0  ;;  %v3410_v2 = vld [vmem:[%s5435_s1 + $0x8] sm:$0xff]  ;;  %v3409_v3 = vld [vmem:[%s5435_s1] sm:$0xff]  ;;  %vm130_vm0 = vcmask 523264   ;;  %vm164_vm1 = vcmask 261120  }
   0x4   :  { %v3429_v4 = vld [vmem:[%s5434_s0] sm:$0xff]  ;;  %v3430_v5 = vld [vmem:[%s5434_s0 + $0x8] sm:$0xff]  ;;  %v3431_v6 = vld [vmem:[%s5434_s0 + $0x10] sm:$0xff]  ;;  %v3840_v23 = vmov 32.0   ;;  %s3841_s22 = smov 88   ;;  %s3842_s23 = smov 96  }
   0x5   :  { %v77_v7 = vld [vmem:[%s5442_s8] sm:$0xff]  ;;  %v78_v11 = vld [vmem:[%s5442_s8 + $0x8] sm:$0xff]  ;;  %v79_v15 = vld [vmem:[%s5442_s8 + $0x10] sm:$0xff]  ;;  %3538 = vrcp.f32 %v3840_v23  ;;  %s3843_s24 = smov 112   ;;  %s3844_s25 = smov 72   ;;  %vm386_vm15 = vcmask 64512  }
   0x6   :  { %145 = vmatpush.bf16.msra.mxu0 %v3411_v1  ;;  %v80_v19 = vld [vmem:[%s5442_s8 + $0x18] sm:$0xff]  ;;  %v81_v49 = vld [vmem:[%s5442_s8 + $0x20] sm:$0xff]  ;;  %v82_v54 = vld [vmem:[%s5442_s8 + $0x28] sm:$0xff]  ;;  %s3845_s26 = smov 80   ;;  %s3846_s27 = smov 64  }
   0x7   :  { %v3414_v58 = vld [vmem:[%s5436_s2 + $0x8] sm:$0xff]  ;;  %v3413_v61 = vld [vmem:[%s5436_s2] sm:$0xff]  ;;  %s3847_s1 = smov 120   ;;  %s3848_s28 = smov 104  }
   0x8   :  { %349 = vmatpush.bf16.msra.mxu1 %v3414_v58  ;;  %s3849_s30 = smov 56   ;;  %s3850_s11 = smov 40  }
   0x9   :  { %s3851_s12 = smov 48   ;;  %s3852_s13 = smov 16  }
   0xa   :  { %146 = vmatpush.bf16.msra.mxu0 %v3410_v2  ;;  %s3853_s14 = smov 8   ;;  %s3215_s29 = sshll.u32 %s5444_s10, 4  ;;  %s3216_s29 = int_to_ptr.hbm [resolvable:$true] %s3215_s29 }
   0xb   :  { %v3539_v24 = vpop.eup %3538 }
   0xc   :  { %v184_v25 = vmul.f32 32.0, %v3539_v24  ;;  %vm188_vm2 = vweird.f32 %v3539_v24  ;;  %350 = vmatpush.bf16.msra.mxu1 %v3413_v61 }
   0xe   :  { %147 = vmatpush.bf16.msra.mxu0 %v3409_v3  ;;  %v185_v26 = vsub.f32 1.0, %v184_v25 }
  0x10   :  { %v186_v27 = vmul.f32 %v3539_v24, %v185_v26 }
  0x11   :  { %3252 = vmatmul.msk.bf16.vlgmr.msra.gmra.mxu0 %vm130_vm0, %v3429_v4 }
  0x12   :  { %v187_v28 = vadd.f32 %v3539_v24, %v186_v27 }
  0x14   :  { %v3963_v29 = vsel %vm188_vm2, %v3539_v24, %v187_v28  ;;  %vm464_vm2 = vcmask 1043456  }
  0x21   :  { %3253 = vmatmul.msk.bf16.gmra.mxu0 %vm130_vm0, %v3430_v5 }
  0x31   :  { %3254 = vmatmul.msk.bf16.gmra.mxu0 %vm130_vm0, %v3431_v6 }
  0x8e   :  { %v149_v8 = vpop.f32.mrf.mxu0 }
  0x8f   :  { %v3938_v9 = vadd.f32 %v149_v8, %v77_v7 }
  0x91   :  { %v165_v10 = vsel %vm164_vm1, %v3938_v9, 0.0 }
  0x92   :  { %166 = vadd.xlane.f32.xlu0 %v165_v10 }
  0x96   :  { %v151_v12 = vpop.f32.mrf.mxu0 }
  0x97   :  { %v3945_v13 = vadd.f32 %v151_v12, %v78_v11 }
  0x99   :  { %v168_v14 = vsel %vm164_vm1, %v3945_v13, 0.0 }
  0x9a   :  { %169 = vadd.xlane.f32.xlu0 %v168_v14 }
  0x9e   :  { %v154_v16 = vpop.f32.mrf.mxu0 }
  0x9f   :  { %v3952_v17 = vadd.f32 %v154_v16, %v79_v15 }
  0xa1   :  { %v171_v18 = vsel %vm164_vm1, %v3952_v17, 0.0 }
  0xa2   :  { %172 = vadd.xlane.f32.xlu1 %v171_v18 }
  0xa6   :  { %v156_v20 = vpop.f32.mrf.mxu0 }
  0xa7   :  { %v3959_v21 = vadd.f32 %v156_v20, %v80_v19  ;;  %v83_v20 = vld [vmem:[%s5443_s9] sm:$0xff] }
  0xa8   :  { %v4021_v27 = vperm.slane %v83_v20, 0 }
  0xa9   :  { %v174_v22 = vsel %vm164_vm1, %v3959_v21, 0.0 }
  0xaa   :  { %175 = vadd.xlane.f32.xlu1 %v174_v22 }
  0xae   :  { %v159_v50 = vpop.f32.mrf.mxu0 }
  0xaf   :  { %v3996_v52 = vadd.f32 %v159_v50, %v81_v49 }
  0xb1   :  { %v177_v53 = vsel %vm164_vm1, %v3996_v52, 0.0 }
  0xb6   :  { %v161_v55 = vpop.f32.mrf.mxu0 }
  0xb7   :  { %v4003_v56 = vadd.f32 %v161_v55, %v82_v54 }
  0xb9   :  { %v180_v57 = vsel %vm164_vm1, %v4003_v56, 0.0 }
 0x105   :  { %v167_v30 = vpop.xlane.xlu0 %166 }
 0x106   :  { %v190_v31 = vmul.f32 %v3963_v29, %v167_v30 }
 0x108   :  { %v3967_v32 = vsub.f32 %v3938_v9, %v190_v31 }
 0x10a   :  { %v202_v33 = vmul.f32 %v3967_v32, %v3967_v32 }
 0x10c   :  { %v208_v34 = vsel %vm164_vm1, %v202_v33, 0.0 }
 0x10d   :  { %209 = vadd.xlane.f32.xlu2 %v208_v34  ;;  %v170_v35 = vpop.xlane.xlu0 %169 }
 0x10e   :  { %v191_v36 = vmul.f32 %v3963_v29, %v170_v35 }
 0x110   :  { %v3974_v37 = vsub.f32 %v3945_v13, %v191_v36  ;;  %v4025_v36 = vperm.slane %v83_v20, 1 }
 0x112   :  { %v203_v38 = vmul.f32 %v3974_v37, %v3974_v37 }
 0x114   :  { %v211_v39 = vsel %vm164_vm1, %v203_v38, 0.0 }
 0x115   :  { %v173_v40 = vpop.xlane.xlu1 %172  ;;  %212 = vadd.xlane.f32.xlu2 %v211_v39 }
 0x116   :  { %v192_v41 = vmul.f32 %v3963_v29, %v173_v40 }
 0x118   :  { %v3981_v42 = vsub.f32 %v3952_v17, %v192_v41 }
 0x11a   :  { %v204_v43 = vmul.f32 %v3981_v42, %v3981_v42 }
 0x11c   :  { %v214_v44 = vsel %vm164_vm1, %v204_v43, 0.0 }
 0x11d   :  { %v176_v45 = vpop.xlane.xlu1 %175  ;;  %215 = vadd.xlane.f32.xlu0 %v214_v44 }
 0x11e   :  { %v193_v46 = vmul.f32 %v3963_v29, %v176_v45 }
 0x120   :  { %v3988_v47 = vsub.f32 %v3959_v21, %v193_v46 }
 0x122   :  { %v205_v48 = vmul.f32 %v3988_v47, %v3988_v47 }
 0x124   :  { %v217_v51 = vsel %vm164_vm1, %v205_v48, 0.0 }
 0x125   :  { %218 = vadd.xlane.f32.xlu1 %v217_v51 }
 0x12d   :  { %178 = vadd.xlane.f32.xlu1 %v177_v53 }
 0x135   :  { %181 = vadd.xlane.f32.xlu1 %v180_v57 }
 0x180   :  { %v210_v59 = vpop.xlane.xlu2 %209 }
 0x181   :  { %v226_v60 = vmul.f32 %v210_v59, %v3963_v29 }
 0x183   :  { %v232_v62 = vadd.f32 1e-05, %v226_v60 }
 0x185   :  { %3540 = vrsqrt.f32 %v232_v62  ;;  %vm244_vm4 = vweird.f32 %v232_v62 }
 0x188   :  { %v213_v63 = vpop.xlane.xlu2 %212 }
 0x189   :  { %v227_v0 = vmul.f32 %v213_v63, %v3963_v29 }
 0x18b   :  { %v3541_v1 = vpop.eup %3540  ;;  %v233_v2 = vadd.f32 1e-05, %v227_v0 }
 0x18c   :  { %v239_v3 = vmul.f32 %v3541_v1, %v232_v62  ;;  %vm245_vm3 = vweird.f32 %v3541_v1 }
 0x18d   :  { %3542 = vrsqrt.f32 %v233_v2  ;;  %vm246_vm5 = vmor %vm244_vm4, %vm245_vm3  ;;  %vm254_vm7 = vweird.f32 %v233_v2 }
 0x18e   :  { %v240_v4 = vmul.f32 %v3541_v1, %v239_v3 }
 0x190   :  { %v241_v5 = vmul.f32 0.5, %v240_v4  ;;  %v216_v6 = vpop.xlane.xlu0 %215  ;;  %v4045_v4 = vperm.slane %v83_v20, 4 }
 0x191   :  { %v228_v7 = vmul.f32 %v216_v6, %v3963_v29 }
 0x192   :  { %v242_v8 = vsub.f32 1.5, %v241_v5 }
 0x193   :  { %v3543_v10 = vpop.eup %3542  ;;  %v234_v11 = vadd.f32 1e-05, %v228_v7 }
 0x194   :  { %v243_v12 = vmul.f32 %v3541_v1, %v242_v8  ;;  %v249_v14 = vmul.f32 %v3543_v10, %v233_v2  ;;  %vm255_vm6 = vweird.f32 %v3543_v10 }
 0x195   :  { %3544 = vrsqrt.f32 %v234_v11  ;;  %vm256_vm8 = vmor %vm254_vm7, %vm255_vm6  ;;  %vm264_vm10 = vweird.f32 %v234_v11 }
 0x196   :  { %v250_v15 = vmul.f32 %v3543_v10, %v249_v14  ;;  %v247_v16 = vsel %vm246_vm5, %v3541_v1, %v243_v12 }
 0x197   :  { %v298_v26 = vmul.f32 %v247_v16, %v3967_v32 }
 0x198   :  { %v251_v18 = vmul.f32 0.5, %v250_v15  ;;  %v219_v19 = vpop.xlane.xlu1 %218 }
 0x199   :  { %v229_v22 = vmul.f32 %v219_v19, %v3963_v29  ;;  %v305_v35 = vmul.f32 %v4021_v27, %v298_v26 }
 0x19a   :  { %v252_v23 = vsub.f32 1.5, %v251_v18 }
 0x19b   :  { %v3545_v24 = vpop.eup %3544  ;;  %v235_v25 = vadd.f32 1e-05, %v229_v22  ;;  %v312_v45 = vadd.f32 %v4025_v36, %v305_v35 }
 0x19c   :  { %v253_v28 = vmul.f32 %v3543_v10, %v252_v23  ;;  %v259_v30 = vmul.f32 %v3545_v24, %v234_v11  ;;  %vm265_vm9 = vweird.f32 %v3545_v24 }
 0x19d   :  { %3546 = vrsqrt.f32 %v235_v25  ;;  %vm266_vm11 = vmor %vm264_vm10, %vm265_vm9  ;;  %vm274_vm13 = vweird.f32 %v235_v25  ;;  %vm417_vm9 = vcmask 195584   ;;  %vm840_vm10 = vcmask 130048  }
 0x19e   :  { %v257_v31 = vsel %vm256_vm8, %v3543_v10, %v253_v28  ;;  %v260_v33 = vmul.f32 %v3545_v24, %v259_v30 }
 0x19f   :  { %v299_v34 = vmul.f32 %v257_v31, %v3974_v37 }
 0x1a0   :  { %v261_v38 = vmul.f32 0.5, %v260_v33  ;;  %v179_v39 = vpop.xlane.xlu1 %178 }
 0x1a1   :  { %v194_v40 = vmul.f32 %v3963_v29, %v179_v39  ;;  %v306_v32 = vmul.f32 %v4021_v27, %v299_v34 }
 0x1a2   :  { %v262_v41 = vsub.f32 1.5, %v261_v38 }
 0x1a3   :  { %v3547_v43 = vpop.eup %3546  ;;  %v4030_v44 = vsub.f32 %v3996_v52, %v194_v40  ;;  %v313_v46 = vadd.f32 %v4025_v36, %v306_v32 }
 0x1a4   :  { %v263_v37 = vmul.f32 %v3545_v24, %v262_v41  ;;  %v269_v48 = vmul.f32 %v3547_v43, %v235_v25  ;;  %vm275_vm12 = vweird.f32 %v3547_v43 }
 0x1a5   :  { %v318_v49 = vpack.c.bf16 %v313_v46, %v312_v45  ;;  %v206_v50 = vmul.f32 %v4030_v44, %v4030_v44  ;;  %vm276_vm14 = vmor %vm274_vm13, %vm275_vm12 }
 0x1a6   :  { %v270_v51 = vmul.f32 %v3547_v43, %v269_v48  ;;  %v267_v54 = vsel %vm266_vm11, %v3545_v24, %v263_v37 }
 0x1a7   :  { %3263 = vmatmul.msk.bf16.vlgmr.msra.gmra.mxu1 %vm164_vm1, %v318_v49  ;;  %v220_v53 = vsel %vm164_vm1, %v206_v50, 0.0  ;;  %v300_v58 = vmul.f32 %v267_v54, %v3981_v42 }
 0x1a8   :  { %v271_v55 = vmul.f32 0.5, %v270_v51  ;;  %221 = vadd.xlane.f32.xlu1 %v220_v53  ;;  %v182_v19 = vpop.xlane.xlu1 %181 }
 0x1a9   :  { %v307_v62 = vmul.f32 %v4021_v27, %v300_v58  ;;  %v195_v20 = vmul.f32 %v3963_v29, %v182_v19 }
 0x1aa   :  { %v272_v57 = vsub.f32 1.5, %v271_v55 }
 0x1ab   :  { %v314_v0 = vadd.f32 %v4025_v36, %v307_v62  ;;  %v4076_v22 = vsub.f32 %v4003_v56, %v195_v20 }
 0x1ac   :  { %v273_v59 = vmul.f32 %v3547_v43, %v272_v57 }
 0x1ad   :  { %v207_v23 = vmul.f32 %v4076_v22, %v4076_v22 }
 0x1ae   :  { %v277_v60 = vsel %vm276_vm14, %v3547_v43, %v273_v59 }
 0x1af   :  { %v301_v61 = vmul.f32 %v277_v60, %v3988_v47  ;;  %v223_v24 = vsel %vm164_vm1, %v207_v23, 0.0 }
 0x1b1   :  { %v308_v63 = vmul.f32 %v4021_v27, %v301_v61 }
 0x1b3   :  { %v315_v1 = vadd.f32 %v4025_v36, %v308_v63 }
 0x1b5   :  { %v319_v2 = vpack.c.bf16 %v315_v1, %v314_v0 }
 0x1b7   :  { %3264 = vmatmul.msk.bf16.gmra.mxu1 %vm164_vm1, %v319_v2 }
 0x21b   :  { %v222_v28 = vpop.xlane.xlu1 %221 }
 0x21c   :  { %v230_v32 = vmul.f32 %v222_v28, %v3963_v29 }
 0x21e   :  { %v236_v45 = vadd.f32 1e-05, %v230_v32 }
 0x220   :  { %3548 = vrsqrt.f32 %v236_v45  ;;  %vm284_vm3 = vweird.f32 %v236_v45 }
 0x224   :  { %v352_v3 = vpop.f32.mrf.mxu1 }
 0x225   :  { %v353_v42 = vadd.f32 %v352_v3, %v4045_v4 }
 0x226   :  { %v3549_v48 = vpop.eup %3548 }
 0x227   :  { %v367_v6 = vpack.c.bf16 %v353_v42, %v353_v42  ;;  %v279_v49 = vmul.f32 %v3549_v48, %v236_v45  ;;  %vm285_vm4 = vweird.f32 %v3549_v48 }
 0x228   :  { %vm286_vm5 = vmor %vm284_vm3, %vm285_vm4 }
 0x229   :  { %v377_v8 = vunpack.c.l.b16 %v367_v6  ;;  %v280_v50 = vmul.f32 %v3549_v48, %v279_v49 }
 0x22b   :  { %v281_v55 = vmul.f32 0.5, %v280_v50 }
 0x22c   :  { %v354_v5 = vpop.f32.mrf.mxu1 }
 0x22d   :  { %v355_v47 = vadd.f32 %v354_v5, %v4045_v4  ;;  %v282_v58 = vsub.f32 1.5, %v281_v55 }
 0x22f   :  { %v368_v7 = vpack.c.bf16 %v355_v47, %v355_v47  ;;  %v283_v62 = vmul.f32 %v3549_v48, %v282_v58 }
 0x231   :  { %v378_v10 = vunpack.c.l.b16 %v368_v7  ;;  %v287_v1 = vsel %vm286_vm5, %v3549_v48, %v283_v62 }
 0x232   :  { %v302_v5 = vmul.f32 %v287_v1, %v4030_v44 }
 0x233   :  { %v4049_v11 = vpack.c.b16 %v378_v10, %v377_v8 }
 0x234   :  { %v357_v12 = vpop.f32.mrf.mxu1  ;;  %v309_v10 = vmul.f32 %v4021_v27, %v302_v5 }
 0x235   :  { %v358_v14 = vadd.f32 %v357_v12, %v4045_v4  ;;  %490 = vrot.lane.b32.xlu1 %v4049_v11, %s3841_s22  ;;  %382 = vrot.lane.b32.xlu0 %v4049_v11, %s3842_s23 }
 0x237   :  { %v369_v15 = vpack.c.bf16 %v358_v14, %v358_v14  ;;  %v316_v14 = vadd.f32 %v4025_v36, %v309_v10 }
 0x239   :  { %v379_v16 = vunpack.c.l.b16 %v369_v15 }
 0x23b   :  { %v4056_v18 = vpack.c.b16 %v379_v16, %v379_v16 }
 0x23c   :  { %v359_v28 = vpop.f32.mrf.mxu1 }
 0x23d   :  { %591 = vrot.lane.b32.xlu1 %v4049_v11, %s3843_s24  ;;  %700 = vrot.lane.b32.xlu0 %v4049_v11, %s3844_s25 }
 0x23e   :  { %384 = vrot.lane.b32.xlu2 %v4056_v18, %s3842_s23 }
 0x245   :  { %595 = vrot.lane.b32.xlu0 %v4049_v11, %s3845_s26  ;;  %455 = vrot.lane.b32.xlu1 %v4056_v18, %s3846_s27 }
 0x24d   :  { %492 = vrot.lane.b32.xlu0 %v4056_v18, %s3841_s22  ;;  %488 = vrot.lane.b32.xlu1 %v4056_v18, %s3847_s1 }
 0x255   :  { %597 = vrot.lane.b32.xlu1 %v4056_v18, %s3845_s26 }
 0x267   :  { %224 = vadd.xlane.f32.xlu2 %v223_v24 }
 0x27f   :  { %453 = vrot.lane.b32.xlu2 %v4049_v11, %s3846_s27 }
 0x287   :  { %486 = vrot.lane.b32.xlu2 %v4049_v11, %s3847_s1 }
 0x28f   :  { %696 = vrot.lane.b32.xlu2 %v4049_v11, %s3848_s28 }
 0x297   :  { %702 = vrot.lane.b32.xlu2 %v4056_v18, %s3844_s25 }
 0x298   :  { %v385_v25 = vpop.permute.xlu2 %384 }
 0x299   :  { %v397_v26 = vsel %vm386_vm15, %v385_v25, 0 }
 0x29a   :  { %405 = vmatpush.bf16.xpose.msra.mxu2 %v397_v26 }
 0x29f   :  { %698 = vrot.lane.b32.xlu2 %v4056_v18, %s3848_s28 }
 0x2a7   :  { %593 = vrot.lane.b32.xlu2 %v4056_v18, %s3843_s24  ;;  %v491_v30 = vpop.permute.xlu1 %490  ;;  %v383_v31 = vpop.permute.xlu0 %382 }
 0x2a8   :  { %v394_v33 = vsel %vm386_vm15, %v383_v31, 0  ;;  %v501_v3 = vsel %vm386_vm15, %v491_v30, 0  ;;  %v360_v30 = vadd.f32 %v359_v28, %v4045_v4 }
 0x2a9   :  { %406 = vmatpush.bf16.xpose.msra.mxu2 %v394_v33 }
 0x2aa   :  { %v370_v33 = vpack.c.bf16 %v360_v30, %v360_v30 }
 0x2ac   :  { %v850_v32 = vunpack.c.l.b16 %v370_v33 }
 0x2af   :  { %v592_v34 = vpop.permute.xlu1 %591  ;;  %v4102_v40 = vpop.permute.xlu0 %700 }
 0x2b0   :  { %3266 = vmatmul.msk.bf16.vlgmr.msra.gmra.mxu2 %vm386_vm15, %v4049_v11 }
 0x2b7   :  { %v456_v35 = vpop.permute.xlu1 %455  ;;  %v596_v46 = vpop.permute.xlu0 %595 }
 0x2b8   :  { %v466_v38 = vsel %vm464_vm2, %v456_v35, 0  ;;  %v606_v37 = vsel %vm386_vm15, %v596_v46, 0 }
 0x2b9   :  { %474 = vmatpush.bf16.msra.mxu3 %v466_v38 }
 0x2bf   :  { %v4098_v39 = vpop.permute.xlu1 %488  ;;  %v493_v57 = vpop.permute.xlu0 %492 }
 0x2c0   :  { %3267 = vmatmul.msk.bf16.gmra.mxu2 %vm386_vm15, %v4056_v18  ;;  %v504_v60 = vsel %vm386_vm15, %v493_v57, 0 }
 0x2c7   :  { %v598_v41 = vpop.permute.xlu1 %597 }
 0x2c8   :  { %v609_v43 = vsel %vm386_vm15, %v598_v41, 0 }
 0x2c9   :  { %617 = vmatpush.bf16.xpose.msrb.mxu1 %v609_v43 }
 0x2d1   :  { %618 = vmatpush.bf16.xpose.msrb.mxu1 %v606_v37 }
 0x2da   :  { %v225_v51 = vpop.xlane.xlu2 %224 }
 0x2db   :  { %v231_v53 = vmul.f32 %v225_v51, %v3963_v29 }
 0x2dd   :  { %v237_v54 = vadd.f32 1e-05, %v231_v53 }
 0x2df   :  { %3550 = vrsqrt.f32 %v237_v54  ;;  %vm294_vm7 = vweird.f32 %v237_v54 }
 0x2e2   :  { %v454_v59 = vpop.permute.xlu2 %453 }
 0x2e3   :  { %475 = vmatpush.bf16.msra.mxu3 %v454_v59 }
 0x2e5   :  { %v3551_v61 = vpop.eup %3550 }
 0x2e6   :  { %v289_v63 = vmul.f32 %v3551_v61, %v237_v54  ;;  %vm295_vm6 = vweird.f32 %v3551_v61  ;;  %v84_v54 = vld [vmem:[%s5443_s9 + $0x8] sm:$0xff] }
 0x2e7   :  { %512 = vmatpush.bf16.xpose.msrb.mxu3 %v504_v60  ;;  %vm296_vm8 = vmor %vm294_vm7, %vm295_vm6  ;;  %v4161_v55 = vperm.slane %v84_v54, 2 }
 0x2e8   :  { %v290_v0 = vmul.f32 %v3551_v61, %v289_v63 }
 0x2ea   :  { %v291_v2 = vmul.f32 0.5, %v290_v0  ;;  %v4111_v7 = vpop.permute.xlu2 %486 }
 0x2ec   :  { %v292_v42 = vsub.f32 1.5, %v291_v2 }
 0x2ee   :  { %v293_v6 = vmul.f32 %v3551_v61, %v292_v42 }
 0x2ef   :  { %513 = vmatpush.bf16.xpose.msrb.mxu3 %v501_v3 }
 0x2f0   :  { %v297_v47 = vsel %vm296_vm8, %v3551_v61, %v293_v6 }
 0x2f1   :  { %v303_v8 = vmul.f32 %v297_v47, %v4076_v22 }
 0x2f2   :  { %v4119_v44 = vpop.permute.xlu2 %696 }
 0x2f3   :  { %v310_v12 = vmul.f32 %v4021_v27, %v303_v8 }
 0x2f5   :  { %v317_v15 = vadd.f32 %v4025_v36, %v310_v12 }
 0x2f7   :  { %v320_v16 = vpack.c.bf16 %v317_v15, %v316_v14 }
 0x2f9   :  { %3265 = vmatmul.msk.bf16.gmra.mxu1 %vm164_vm1, %v320_v16 }
 0x2fa   :  { %v4121_v19 = vpop.permute.xlu2 %702 }
 0x302   :  { %v4124_v20 = vpop.permute.xlu2 %698 }
 0x309   :  { %3274 = vmatmul.msk.bf16.vlgmr.msrb.gmra.mxu1 %vm386_vm15, %v592_v34 }
 0x30a   :  { %v594_v22 = vpop.permute.xlu2 %593 }
 0x319   :  { %3275 = vmatmul.msk.bf16.gmra.mxu1 %vm386_vm15, %v594_v22 }
 0x333   :  { %v408_v23 = vpop.f32.mrf.mxu2 }
 0x334   :  { %v409_v57 = vadd.f32 %v408_v23, %v4161_v55 }
 0x336   :  { %v418_v58 = vsel %vm417_vm9, %v409_v57, -inf }
 0x33b   :  { %v410_v24 = vpop.f32.mrf.mxu2 }
 0x33c   :  { %v411_v60 = vadd.f32 %v410_v24, %v4161_v55 }
 0x33e   :  { %v421_v62 = vsel %vm417_vm9, %v411_v60, -inf }
 0x343   :  { %v413_v25 = vpop.f32.mrf.mxu2 }
 0x344   :  { %v414_v63 = vadd.f32 %v413_v25, %v4161_v55 }
 0x346   :  { %v424_v0 = vsel %vm417_vm9, %v414_v63, -inf }
 0x34b   :  { %v415_v26 = vpop.f32.mrf.mxu2 }
 0x376   :  { %v362_v31 = vpop.f32.mrf.mxu1 }
 0x377   :  { %v363_v35 = vadd.f32 %v362_v31, %v4045_v4 }
 0x379   :  { %v371_v38 = vpack.c.bf16 %v363_v35, %v363_v35 }
 0x37b   :  { %v851_v41 = vunpack.c.l.b16 %v371_v38 }
 0x37d   :  { %v4129_v34 = vpack.c.b16 %v851_v41, %v850_v32 }
 0x37e   :  { %v364_v43 = vpop.f32.mrf.mxu1 }
 0x37f   :  { %v365_v45 = vadd.f32 %v364_v43, %v4045_v4  ;;  %855 = vrot.lane.b32.xlu2 %v4129_v34, %s3842_s23  ;;  %960 = vrot.lane.b32.xlu1 %v4129_v34, %s3841_s22 }
 0x381   :  { %v372_v46 = vpack.c.bf16 %v365_v45, %v365_v45 }
 0x383   :  { %v852_v37 = vunpack.c.l.b16 %v372_v46 }
 0x385   :  { %v4136_v48 = vpack.c.b16 %v852_v37, %v852_v37 }
 0x386   :  { %v4138_v49 = vpop.f32.mrf.mxu1 }
 0x387   :  { %962 = vrot.lane.b32.xlu0 %v4136_v48, %s3841_s22  ;;  %1170 = vrot.lane.b32.xlu2 %v4129_v34, %s3844_s25 }
 0x388   :  { %956 = vrot.lane.b32.xlu1 %v4129_v34, %s3847_s1 }
 0x38e   :  { %v4146_v50 = vpop.f32.mrf.mxu1 }
 0x38f   :  { %857 = vrot.lane.b32.xlu0 %v4136_v48, %s3842_s23  ;;  %1065 = vrot.lane.b32.xlu2 %v4129_v34, %s3845_s26 }
 0x390   :  { %1172 = vrot.lane.b32.xlu1 %v4136_v48, %s3844_s25 }
 0x396   :  { %v625_v51 = vpop.f32.mrf.mxu1 }
 0x397   :  { %1063 = vrot.lane.b32.xlu2 %v4136_v48, %s3843_s24  ;;  %v4166_v59 = vadd.f32 %v625_v51, %v4161_v55  ;;  %v621_v51 = vadd.f32 %v4138_v49, %v4161_v55 }
 0x398   :  { %1166 = vrot.lane.b32.xlu1 %v4129_v34, %s3848_s28 }
 0x399   :  { %v635_v61 = vsel %vm417_vm9, %v4166_v59, -inf  ;;  %v629_v54 = vsel %vm417_vm9, %v621_v51, -inf }
 0x39e   :  { %v627_v53 = vpop.f32.mrf.mxu1 }
 0x39f   :  { %v623_v53 = vadd.f32 %v4146_v50, %v4161_v55 }
 0x3b9   :  { %419 = vmax.xlane.f32.xlu0 %v418_v58 }
 0x3c0   :  { %636 = vmax.xlane.f32.xlu2 %v635_v61 }
 0x3c2   :  { %422 = vmax.xlane.f32.xlu1 %v421_v62 }
 0x3ca   :  { %425 = vmax.xlane.f32.xlu1 %v424_v0 }
 0x3cd   :  { %958 = vrot.lane.b32.xlu0 %v4136_v48, %s3847_s1 }
 0x3d5   :  { %1067 = vrot.lane.b32.xlu0 %v4136_v48, %s3845_s26 }
 0x3d9   :  { %v856_v42 = vpop.permute.xlu2 %855 }
 0x3da   :  { %v866_v5 = vsel %vm386_vm15, %v856_v42, 0 }
 0x3e1   :  { %v4198_v38 = vpop.permute.xlu2 %1170 }
 0x3e9   :  { %v1066_v46 = vpop.permute.xlu2 %1065 }
 0x3ea   :  { %v1076_v37 = vsel %vm386_vm15, %v1066_v46, 0 }
 0x3f1   :  { %v4182_v6 = vpop.permute.xlu1 %960 }
 0x3f9   :  { %v4178_v1 = vpop.permute.xlu0 %962 }
 0x3fa   :  { %v4186_v47 = vpop.permute.xlu1 %956 }
 0x401   :  { %v858_v2 = vpop.permute.xlu0 %857 }
 0x402   :  { %v869_v3 = vsel %vm386_vm15, %v858_v2, 0  ;;  %v4190_v8 = vpop.permute.xlu1 %1172 }
 0x403   :  { %877 = vmatpush.bf16.xpose.msra.mxu1 %v869_v3 }
 0x40a   :  { %v4192_v12 = vpop.permute.xlu1 %1166 }
 0x40b   :  { %878 = vmatpush.bf16.xpose.msra.mxu1 %v866_v5 }
 0x412   :  { %3282 = vmatmul.msk.bf16.vlgmr.msra.gmra.mxu1 %vm386_vm15, %v4129_v34 }
 0x422   :  { %3283 = vmatmul.msk.bf16.gmra.mxu1 %vm386_vm15, %v4136_v48 }
 0x42c   :  { %v420_v10 = vpop.xlane.xlu0 %419 }
 0x42d   :  { %v427_v14 = vsub.f32 %v409_v57, %v420_v10  ;;  %v632_v57 = vsel %vm417_vm9, %v623_v53, -inf }
 0x42f   :  { %v430_v15 = vmul.f32 1.442695, %v427_v14 }
 0x431   :  { %3552 = vpow2.f32 %v430_v15 }
 0x435   :  { %v423_v16 = vpop.xlane.xlu1 %422 }
 0x436   :  { %v428_v22 = vsub.f32 %v411_v60, %v423_v16 }
 0x437   :  { %v3553_v23 = vpop.eup %3552 }
 0x438   :  { %v432_v24 = vmul.f32 1.442695, %v428_v22  ;;  %v436_v25 = vsel %vm417_vm9, %v3553_v23, 0.0  ;;  %v714_v22 = vsel %vm386_vm15, %v4121_v19, 0  ;;  %v1064_v19 = vpop.permute.xlu2 %1063 }
 0x439   :  { %437 = vadd.xlane.f32.xlu1 %v436_v25 }
 0x43a   :  { %3554 = vpow2.f32 %v432_v24 }
 0x43d   :  { %v426_v26 = vpop.xlane.xlu1 %425 }
 0x43e   :  { %v429_v28 = vsub.f32 %v414_v63, %v426_v26 }
 0x43f   :  { %v4195_v30 = vpop.permute.xlu0 %958 }
 0x440   :  { %v3555_v31 = vpop.eup %3554  ;;  %v434_v33 = vmul.f32 1.442695, %v429_v28  ;;  %v711_v28 = vsel %vm386_vm15, %v4102_v40, 0  ;;  %v971_v40 = vsel %vm386_vm15, %v4182_v6, 0 }
 0x441   :  { %v439_v35 = vsel %vm417_vm9, %v3555_v31, 0.0 }
 0x442   :  { %3556 = vpow2.f32 %v434_v33  ;;  %440 = vadd.xlane.f32.xlu1 %v439_v35  ;;  %v974_v35 = vsel %vm386_vm15, %v4178_v1, 0 }
 0x447   :  { %v1068_v32 = vpop.permute.xlu0 %1067 }
 0x448   :  { %v3557_v41 = vpop.eup %3556  ;;  %v1079_v43 = vsel %vm386_vm15, %v1068_v32, 0 }
 0x449   :  { %v442_v45 = vsel %vm417_vm9, %v3557_v41, 0.0  ;;  %1087 = vmatpush.bf16.xpose.msrb.mxu1 %v1079_v43 }
 0x44a   :  { %443 = vadd.xlane.f32.xlu0 %v442_v45 }
 0x451   :  { %1088 = vmatpush.bf16.xpose.msrb.mxu1 %v1076_v37 }
 0x45b   :  { %1168 = vrot.lane.b32.xlu1 %v4136_v48, %s3848_s28 }
 0x45e   :  { %1061 = vrot.lane.b32.xlu0 %v4129_v34, %s3843_s24 }
 0x485   :  { %630 = vmax.xlane.f32.xlu1 %v629_v54  ;;  %v1181_v54 = vsel %vm386_vm15, %v4198_v38, 0  ;;  %v637_v38 = vpop.xlane.xlu2 %636 }
 0x488   :  { %633 = vmax.xlane.f32.xlu0 %v632_v57 }
 0x48f   :  { %v880_v58 = vpop.f32.mrf.mxu1 }
 0x490   :  { %v4214_v60 = vadd.f32 %v880_v58, %v4161_v55 }
 0x492   :  { %v889_v61 = vsel %vm417_vm9, %v4214_v60, -inf }
 0x493   :  { %890 = vmax.xlane.f32.xlu2 %v889_v61 }
 0x497   :  { %v882_v62 = vpop.f32.mrf.mxu1 }
 0x498   :  { %v883_v24 = vadd.f32 %v882_v62, %v4161_v55 }
 0x49a   :  { %v892_v25 = vsel %vm417_vm9, %v883_v24, -inf }
 0x49c   :  { %559 = vrot.lane.b32.xlu0 %v4049_v11, %s3849_s30 }
 0x49e   :  { %561 = vrot.lane.b32.xlu1 %v4056_v18, %s3849_s30 }
 0x49f   :  { %v885_v49 = vpop.f32.mrf.mxu1 }
 0x4a0   :  { %v4223_v50 = vadd.f32 %v885_v49, %v4161_v55 }
 0x4a2   :  { %v895_v63 = vsel %vm417_vm9, %v4223_v50, -inf }
 0x4a3   :  { %896 = vmax.xlane.f32.xlu2 %v895_v63 }
 0x4a4   :  { %771 = vrot.lane.b32.xlu0 %v4056_v18, %s3850_s11 }
 0x4a7   :  { %v887_v0 = vpop.f32.mrf.mxu1 }
 0x4ac   :  { %v438_v2 = vpop.xlane.xlu1 %437 }
 0x4ad   :  { %3558 = vrcp.f32 %v438_v2 }
 0x4b3   :  { %v3559_v42 = vpop.eup %3558 }
 0x4b4   :  { %v448_v10 = vmul.f32 %v3559_v42, %v3553_v23 }
 0x4b5   :  { %v441_v3 = vpop.xlane.xlu1 %440 }
 0x4b6   :  { %3560 = vrcp.f32 %v441_v3 }
 0x4bc   :  { %v3561_v5 = vpop.eup %3560 }
 0x4bd   :  { %v449_v14 = vmul.f32 %v3561_v5, %v3555_v31  ;;  %v444_v15 = vpop.xlane.xlu0 %443 }
 0x4be   :  { %3562 = vrcp.f32 %v444_v15 }
 0x4bf   :  { %v451_v16 = vpack.c.bf16 %v449_v14, %v448_v10 }
 0x4c1   :  { %3268 = vmatmul.msk.bf16.vlgmr.msra.gmra.mxu3 %vm417_vm9, %v451_v16 }
 0x4c2   :  { %722 = vmatpush.bf16.xpose.msra.mxu3 %v714_v22 }
 0x4c4   :  { %v3563_v26 = vpop.eup %3562 }
 0x4c5   :  { %v450_v23 = vmul.f32 %v3563_v26, %v3557_v41 }
 0x4c7   :  { %v452_v31 = vpack.c.bf16 %v450_v23, %v450_v23 }
 0x4c8   :  { %893 = vmax.xlane.f32.xlu1 %v892_v25 }
 0x4ca   :  { %723 = vmatpush.bf16.xpose.msra.mxu3 %v711_v28 }
 0x4cd   :  { %v1169_v32 = vpop.permute.xlu1 %1168 }
 0x4d0   :  { %v1062_v33 = vpop.permute.xlu0 %1061 }
 0x4d1   :  { %3269 = vmatmul.msk.bf16.gmra.mxu3 %vm417_vm9, %v452_v31  ;;  %3290 = vmatmul.msk.bf16.vlgmr.msrb.gmra.mxu1 %vm386_vm15, %v1062_v33 }
 0x4e1   :  { %3270 = vmatmul.msk.bf16.vlgmr.msrb.gmra.mxu3 %vm386_vm15, %v4111_v7  ;;  %3291 = vmatmul.msk.bf16.gmra.mxu1 %vm386_vm15, %v1064_v19  ;;  %v1184_v7 = vsel %vm386_vm15, %v4190_v8, 0 }
 0x4e2   :  { %982 = vmatpush.bf16.xpose.msrb.mxu3 %v974_v35 }
 0x4ea   :  { %983 = vmatpush.bf16.xpose.msrb.mxu3 %v971_v40 }
 0x4f1   :  { %3271 = vmatmul.msk.bf16.gmra.mxu3 %vm386_vm15, %v4098_v39 }
 0x4f8   :  { %v631_v41 = vpop.xlane.xlu1 %630 }
 0x4f9   :  { %v638_v43 = vsub.f32 %v621_v51, %v631_v41 }
 0x4fb   :  { %v641_v45 = vmul.f32 1.442695, %v638_v43  ;;  %v634_v46 = vpop.xlane.xlu0 %633 }
 0x4fc   :  { %v639_v37 = vsub.f32 %v623_v53, %v634_v46 }
 0x4fd   :  { %3564 = vpow2.f32 %v641_v45 }
 0x4fe   :  { %v643_v1 = vmul.f32 1.442695, %v639_v37 }
 0x500   :  { %3566 = vpow2.f32 %v643_v1 }
 0x501   :  { %3278 = vmatmul.msk.bf16.vlgmr.msra.gmra.mxu3 %vm386_vm15, %v4119_v44 }
 0x502   :  { %1192 = vmatpush.bf16.xpose.msra.mxu3 %v1184_v7 }
 0x503   :  { %v4251_v6 = vpop.eup %3564 }
 0x504   :  { %v647_v39 = vsel %vm417_vm9, %v4251_v6, 0.0 }
 0x505   :  { %648 = vadd.xlane.f32.xlu2 %v647_v39 }
 0x506   :  { %v4255_v51 = vpop.eup %3566  ;;  %v891_v25 = vpop.xlane.xlu2 %890 }
 0x507   :  { %v650_v53 = vsel %vm417_vm9, %v4255_v51, 0.0 }
 0x508   :  { %651 = vadd.xlane.f32.xlu1 %v650_v53 }
 0x50a   :  { %1193 = vmatpush.bf16.xpose.msra.mxu3 %v1181_v54 }
 0x50e   :  { %v560_v8 = vpop.permute.xlu0 %559 }
 0x510   :  { %v562_v57 = vpop.permute.xlu1 %561 }
 0x511   :  { %3279 = vmatmul.msk.bf16.gmra.mxu3 %vm386_vm15, %v4124_v20  ;;  %v571_v44 = vsel %vm464_vm2, %v562_v57, 0  ;;  %v640_v20 = vsub.f32 %v4166_v59, %v637_v38  ;;  %v898_v38 = vsub.f32 %v4214_v60, %v891_v25 }
 0x512   :  { %579 = vmatpush.bf16.msrb.mxu2 %v571_v44 }
 0x513   :  { %v645_v62 = vmul.f32 1.442695, %v640_v20 }
 0x515   :  { %3568 = vpow2.f32 %v645_v62  ;;  %v901_v62 = vmul.f32 1.442695, %v898_v38 }
 0x516   :  { %580 = vmatpush.bf16.msrb.mxu2 %v560_v8  ;;  %v772_v58 = vpop.permute.xlu0 %771  ;;  %v4308_v19 = vpop.xlane.xlu2 %896 }
 0x517   :  { %v781_v61 = vsel %vm464_vm2, %v772_v58, 0 }
 0x51a   :  { %789 = vmatpush.bf16.msra.mxu2 %v781_v61 }
 0x51d   :  { %666 = vrot.lane.b32.xlu2 %v4056_v18, %s3851_s12  ;;  %v4276_v18 = vpop.eup %3568 }
 0x51e   :  { %v653_v2 = vsel %vm417_vm9, %v4276_v18, 0.0 }
 0x521   :  { %3286 = vmatmul.msk.bf16.vlgmr.msrb.gmra.mxu3 %vm386_vm15, %v4186_v47  ;;  %769 = vrot.lane.b32.xlu1 %v4049_v11, %s3850_s11 }
 0x531   :  { %3287 = vmatmul.msk.bf16.gmra.mxu3 %vm386_vm15, %v4195_v30 }
 0x53b   :  { %v894_v49 = vpop.xlane.xlu1 %893 }
 0x53c   :  { %v899_v63 = vsub.f32 %v883_v24, %v894_v49 }
 0x53e   :  { %v903_v0 = vmul.f32 1.442695, %v899_v63 }
 0x540   :  { %3570 = vpow2.f32 %v903_v0 }
 0x541   :  { %3294 = vmatmul.msk.bf16.vlgmr.msra.gmra.mxu3 %vm386_vm15, %v4192_v12  ;;  %3572 = vpow2.f32 %v901_v62 }
 0x544   :  { %v4278_v47 = vpop.f32.mrf.mxu3 }
 0x546   :  { %654 = vadd.xlane.f32.xlu2 %v653_v2  ;;  %v4282_v30 = vpop.eup %3570 }
 0x547   :  { %v910_v3 = vsel %vm417_vm9, %v4282_v30, 0.0 }
 0x54c   :  { %v4284_v59 = vpop.f32.mrf.mxu3 }
 0x54e   :  { %911 = vadd.xlane.f32.xlu2 %v910_v3  ;;  %v1090_v42 = vpop.f32.mrf.mxu1  ;;  %v4346_v3 = vpop.eup %3572 }
 0x54f   :  { %v4299_v26 = vadd.f32 %v1090_v42, %v4161_v55 }
 0x551   :  { %3295 = vmatmul.msk.bf16.gmra.mxu3 %vm386_vm15, %v1169_v32  ;;  %v1099_v31 = vsel %vm417_vm9, %v4299_v26, -inf }
 0x554   :  { %v4289_v12 = vpop.f32.mrf.mxu3 }
 0x556   :  { %v1092_v5 = vpop.f32.mrf.mxu1 }
 0x557   :  { %v4311_v35 = vadd.f32 %v1092_v5, %v4161_v55  ;;  %v907_v5 = vsel %vm417_vm9, %v4346_v3, 0.0 }
 0x559   :  { %v1102_v43 = vsel %vm417_vm9, %v4311_v35, -inf }
 0x55c   :  { %v484_v10 = vpop.f32.mrf.mxu3 }
 0x55e   :  { %v4291_v14 = vpop.f32.mrf.mxu1 }
 0x564   :  { %v515_v15 = vpop.f32.mrf.mxu3 }
 0x565   :  { %v4294_v16 = vadd.f32 %v515_v15, %v4161_v55 }
 0x566   :  { %v1097_v22 = vpop.f32.mrf.mxu1 }
 0x567   :  { %v524_v24 = vsel %vm417_vm9, %v4294_v16, -inf }
 0x568   :  { %525 = vmax.xlane.f32.xlu0 %v524_v24 }
 0x56c   :  { %v517_v28 = vpop.f32.mrf.mxu3 }
 0x56d   :  { %v4302_v23 = vadd.f32 %v517_v28, %v4161_v55 }
 0x56f   :  { %v527_v33 = vsel %vm417_vm9, %v4302_v23, -inf }
 0x570   :  { %1100 = vmax.xlane.f32.xlu0 %v1099_v31  ;;  %528 = vmax.xlane.f32.xlu1 %v527_v33 }
 0x574   :  { %v520_v40 = vpop.f32.mrf.mxu3 }
 0x575   :  { %v4314_v32 = vadd.f32 %v520_v40, %v4161_v55 }
 0x577   :  { %v530_v41 = vsel %vm417_vm9, %v4314_v32, -inf }
 0x578   :  { %v4320_v45 = vpop.xlane.xlu2 %648  ;;  %531 = vmax.xlane.f32.xlu2 %v530_v41  ;;  %1103 = vmax.xlane.f32.xlu0 %v1102_v43 }
 0x57b   :  { %v652_v39 = vpop.xlane.xlu1 %651 }
 0x57c   :  { %v522_v46 = vpop.f32.mrf.mxu3 }
 0x580   :  { %v667_v37 = vpop.permute.xlu2 %666 }
 0x581   :  { %v676_v1 = vsel %vm464_vm2, %v667_v37, 0 }
 0x582   :  { %684 = vmatpush.bf16.msrb.mxu0 %v676_v1 }
 0x584   :  { %v725_v7 = vpop.f32.mrf.mxu3 }
 0x585   :  { %v4351_v60 = vadd.f32 %v725_v7, %v4161_v55 }
 0x587   :  { %v734_v22 = vsel %vm417_vm9, %v4351_v60, -inf }
 0x589   :  { %664 = vrot.lane.b32.xlu1 %v4049_v11, %s3851_s12 }
 0x58c   :  { %v727_v53 = vpop.f32.mrf.mxu3  ;;  %1031 = vrot.lane.b32.xlu0 %v4136_v48, %s3849_s30 }
 0x58d   :  { %v4328_v54 = vadd.f32 %v727_v53, %v4161_v55 }
 0x58f   :  { %v737_v8 = vsel %vm417_vm9, %v4328_v54, -inf }
 0x590   :  { %738 = vmax.xlane.f32.xlu2 %v737_v8 }
 0x593   :  { %v770_v57 = vpop.permute.xlu1 %769 }
 0x594   :  { %v730_v44 = vpop.f32.mrf.mxu3  ;;  %790 = vmatpush.bf16.msra.mxu2 %v770_v57 }
 0x595   :  { %v4333_v58 = vadd.f32 %v730_v44, %v4161_v55 }
 0x597   :  { %v740_v11 = vsel %vm417_vm9, %v4333_v58, -inf }
 0x598   :  { %741 = vmax.xlane.f32.xlu2 %v740_v11 }
 0x59c   :  { %v732_v61 = vpop.f32.mrf.mxu3 }
 0x5a4   :  { %v985_v20 = vpop.f32.mrf.mxu3 }
 0x5a5   :  { %v4339_v49 = vadd.f32 %v985_v20, %v4161_v55 }
 0x5a7   :  { %v994_v63 = vsel %vm417_vm9, %v4339_v49, -inf }
 0x5a8   :  { %995 = vmax.xlane.f32.xlu2 %v994_v63 }
 0x5ac   :  { %v987_v0 = vpop.f32.mrf.mxu3 }
 0x5ad   :  { %v4344_v2 = vadd.f32 %v987_v0, %v4161_v55 }
 0x5af   :  { %v997_v42 = vsel %vm417_vm9, %v4344_v2, -inf }
 0x5b0   :  { %998 = vmax.xlane.f32.xlu2 %v997_v42 }
 0x5b3   :  { %908 = vadd.xlane.f32.xlu1 %v907_v5 }
 0x5b4   :  { %v990_v10 = vpop.f32.mrf.mxu3 }
 0x5b5   :  { %v4356_v15 = vadd.f32 %v990_v10, %v4161_v55 }
 0x5b6   :  { %735 = vmax.xlane.f32.xlu0 %v734_v22 }
 0x5b7   :  { %v1000_v24 = vsel %vm417_vm9, %v4356_v15, -inf }
 0x5b8   :  { %1001 = vmax.xlane.f32.xlu2 %v1000_v24 }
 0x5b9   :  { %v655_v37 = vpop.xlane.xlu2 %654 }
 0x5bc   :  { %v992_v25 = vpop.f32.mrf.mxu3 }
 0x5c1   :  { %v4375_v57 = vpop.xlane.xlu2 %911 }
 0x5c4   :  { %v1195_v28 = vpop.f32.mrf.mxu3 }
 0x5c5   :  { %v4363_v31 = vadd.f32 %v1195_v28, %v4161_v55 }
 0x5c7   :  { %v1204_v33 = vsel %vm417_vm9, %v4363_v31, -inf }
 0x5c8   :  { %1205 = vmax.xlane.f32.xlu0 %v1204_v33 }
 0x5cc   :  { %v1197_v40 = vpop.f32.mrf.mxu3 }
 0x5cd   :  { %v4368_v41 = vadd.f32 %v1197_v40, %v4161_v55 }
 0x5cf   :  { %v1207_v43 = vsel %vm417_vm9, %v4368_v41, -inf }
 0x5d0   :  { %1208 = vmax.xlane.f32.xlu2 %v1207_v43 }
 0x5d4   :  { %v4372_v46 = vpop.f32.mrf.mxu3 }
 0x5db   :  { %v526_v1 = vpop.xlane.xlu0 %525 }
 0x5dc   :  { %v533_v7 = vsub.f32 %v4294_v16, %v526_v1  ;;  %v1202_v53 = vpop.f32.mrf.mxu3 }
 0x5de   :  { %v536_v8 = vmul.f32 1.442695, %v533_v7 }
 0x5e0   :  { %3574 = vpow2.f32 %v536_v8 }
 0x5e3   :  { %v529_v44 = vpop.xlane.xlu1 %528  ;;  %v1101_v40 = vpop.xlane.xlu0 %1100 }
 0x5e4   :  { %v534_v11 = vsub.f32 %v4302_v23, %v529_v44 }
 0x5e6   :  { %v4378_v61 = vpop.eup %3574  ;;  %v538_v38 = vmul.f32 1.442695, %v534_v11 }
 0x5e7   :  { %v542_v20 = vsel %vm417_vm9, %v4378_v61, 0.0 }
 0x5e8   :  { %3576 = vpow2.f32 %v538_v38  ;;  %1029 = vrot.lane.b32.xlu2 %v4129_v34, %s3849_s30  ;;  %543 = vadd.xlane.f32.xlu1 %v542_v20 }
 0x5e9   :  { %3578 = vrcp.f32 %v652_v39 }
 0x5eb   :  { %v532_v16 = vpop.xlane.xlu2 %531  ;;  %v1104_v43 = vpop.xlane.xlu0 %1103 }
 0x5ec   :  { %v535_v62 = vsub.f32 %v4314_v32, %v532_v16 }
 0x5ee   :  { %v4385_v63 = vpop.eup %3576  ;;  %v540_v0 = vmul.f32 1.442695, %v535_v62 }
 0x5ef   :  { %v545_v23 = vsel %vm417_vm9, %v4385_v63, 0.0  ;;  %v3579_v42 = vpop.eup %3578 }
 0x5f0   :  { %3580 = vpow2.f32 %v540_v0  ;;  %546 = vadd.xlane.f32.xlu0 %v545_v23  ;;  %v660_v32 = vmul.f32 %v3579_v42, %v4255_v51  ;;  %v900_v51 = vsub.f32 %v4223_v50, %v4308_v19  ;;  %v1109_v23 = vsub.f32 %v4311_v35, %v1104_v43 }
 0x5f1   :  { %3582 = vrcp.f32 %v4320_v45  ;;  %v4433_v35 = vadd.f32 %v4372_v46, %v4161_v55 }
 0x5f2   :  { %3584 = vrcp.f32 %v655_v37  ;;  %v905_v1 = vmul.f32 1.442695, %v900_v51 }
 0x5f4   :  { %3586 = vpow2.f32 %v905_v1 }
 0x5f6   :  { %v4390_v5 = vpop.eup %3580 }
 0x5f7   :  { %v548_v10 = vsel %vm417_vm9, %v4390_v5, 0.0  ;;  %v3583_v22 = vpop.eup %3582 }
 0x5f8   :  { %549 = vadd.xlane.f32.xlu0 %v548_v10  ;;  %v659_v24 = vmul.f32 %v3583_v22, %v4251_v6  ;;  %v3585_v45 = vpop.eup %3584  ;;  %v1113_v22 = vmul.f32 1.442695, %v1109_v23 }
 0x5f9   :  { %v661_v28 = vmul.f32 %v3585_v45, %v4276_v18  ;;  %v1108_v18 = vsub.f32 %v4299_v26, %v1101_v40 }
 0x5fa   :  { %v662_v25 = vpack.c.bf16 %v660_v32, %v659_v24  ;;  %v4409_v11 = vpop.eup %3586 }
 0x5fb   :  { %v665_v39 = vpop.permute.xlu1 %664  ;;  %v663_v33 = vpack.c.bf16 %v661_v28, %v661_v28  ;;  %v1111_v38 = vmul.f32 1.442695, %v1108_v18  ;;  %v913_v50 = vsel %vm417_vm9, %v4409_v11, 0.0  ;;  %v1210_v28 = vsel %vm417_vm9, %v4433_v35, -inf }
 0x5fc   :  { %685 = vmatpush.bf16.msrb.mxu0 %v665_v39 }
 0x5fe   :  { %v4405_v7 = vpop.permute.xlu0 %1031 }
 0x5ff   :  { %3276 = vmatmul.msk.bf16.vlgmr.msrb.gmra.mxu0 %vm417_vm9, %v662_v25  ;;  %v4437_v25 = vadd.f32 %v4291_v14, %v4161_v55 }
 0x601   :  { %926 = vrot.lane.b32.xlu1 %v4136_v48, %s3846_s27  ;;  %v1105_v46 = vsel %vm417_vm9, %v4437_v25, -inf }
 0x603   :  { %v739_v6 = vpop.xlane.xlu2 %738 }
 0x604   :  { %v744_v19 = vsub.f32 %v4328_v54, %v739_v6 }
 0x606   :  { %v748_v0 = vmul.f32 1.442695, %v744_v19 }
 0x60b   :  { %v742_v37 = vpop.xlane.xlu2 %741 }
 0x60c   :  { %924 = vrot.lane.b32.xlu0 %v4129_v34, %s3846_s27  ;;  %v745_v53 = vsub.f32 %v4333_v58, %v742_v37 }
 0x60e   :  { %v750_v8 = vmul.f32 1.442695, %v745_v53 }
 0x60f   :  { %3277 = vmatmul.msk.bf16.gmra.mxu0 %vm417_vm9, %v663_v33 }
 0x610   :  { %3588 = vpow2.f32 %v750_v8 }
 0x611   :  { %3590 = vpow2.f32 %v1111_v38 }
 0x616   :  { %v4415_v58 = vpop.eup %3588 }
 0x617   :  { %v4420_v42 = vpop.eup %3590 }
 0x618   :  { %v1117_v32 = vsel %vm417_vm9, %v4420_v42, 0.0 }
 0x61b   :  { %v996_v44 = vpop.xlane.xlu2 %995 }
 0x61c   :  { %v1003_v54 = vsub.f32 %v4339_v49, %v996_v44 }
 0x61e   :  { %v1006_v39 = vmul.f32 1.442695, %v1003_v54 }
 0x623   :  { %v4417_v26 = vpop.xlane.xlu2 %998 }
 0x629   :  { %v736_v20 = vpop.xlane.xlu0 %735 }
 0x62a   :  { %v743_v16 = vsub.f32 %v4351_v60, %v736_v20  ;;  %v758_v60 = vsel %vm417_vm9, %v4415_v58, 0.0 }
 0x62b   :  { %914 = vadd.xlane.f32.xlu1 %v913_v50  ;;  %v1002_v49 = vpop.xlane.xlu2 %1001 }
 0x62c   :  { %v746_v62 = vmul.f32 1.442695, %v743_v16  ;;  %v1005_v33 = vsub.f32 %v4356_v15, %v1002_v49 }
 0x62e   :  { %3592 = vpow2.f32 %v746_v62  ;;  %v1010_v6 = vmul.f32 1.442695, %v1005_v33 }
 0x62f   :  { %3594 = vpow2.f32 %v748_v0 }
 0x630   :  { %3596 = vpow2.f32 %v1113_v22 }
 0x631   :  { %3598 = vpow2.f32 %v1006_v39 }
 0x632   :  { %3600 = vpow2.f32 %v1010_v6 }
 0x633   :  { %759 = vadd.xlane.f32.xlu1 %v758_v60  ;;  %v1004_v60 = vsub.f32 %v4344_v2, %v4417_v26 }
 0x634   :  { %v4424_v10 = vpop.eup %3592 }
 0x635   :  { %v752_v24 = vsel %vm417_vm9, %v4424_v10, 0.0  ;;  %v4439_v45 = vpop.eup %3594 }
 0x636   :  { %1118 = vadd.xlane.f32.xlu0 %v1117_v32  ;;  %753 = vadd.xlane.f32.xlu2 %v752_v24  ;;  %v755_v40 = vsel %vm417_vm9, %v4439_v45, 0.0  ;;  %v4448_v14 = vpop.eup %3596  ;;  %v1008_v32 = vmul.f32 1.442695, %v1004_v60 }
 0x637   :  { %v4450_v51 = vpop.eup %3598  ;;  %v1120_v43 = vsel %vm417_vm9, %v4448_v14, 0.0 }
 0x638   :  { %v1012_v37 = vsel %vm417_vm9, %v4450_v51, 0.0  ;;  %v4457_v18 = vpop.eup %3600 }
 0x639   :  { %v1018_v8 = vsel %vm417_vm9, %v4457_v18, 0.0 }
 0x63b   :  { %1211 = vmax.xlane.f32.xlu1 %v1210_v28  ;;  %v1206_v20 = vpop.xlane.xlu0 %1205 }
 0x63e   :  { %1106 = vmax.xlane.f32.xlu0 %v1105_v46  ;;  %756 = vadd.xlane.f32.xlu2 %v755_v40 }
 0x643   :  { %v1209_v1 = vpop.xlane.xlu2 %1208  ;;  %1121 = vadd.xlane.f32.xlu1 %v1120_v43 }
 0x644   :  { %v1214_v15 = vsub.f32 %v4368_v41, %v1209_v1  ;;  %v909_v41 = vpop.xlane.xlu1 %908 }
 0x646   :  { %1013 = vadd.xlane.f32.xlu0 %v1012_v37  ;;  %v1218_v53 = vmul.f32 1.442695, %v1214_v15 }
 0x648   :  { %3602 = vpow2.f32 %v1218_v53 }
 0x64b   :  { %v1030_v24 = vpop.permute.xlu2 %1029 }
 0x64e   :  { %1019 = vadd.xlane.f32.xlu0 %v1018_v8  ;;  %v4461_v44 = vpop.eup %3602 }
 0x64f   :  { %v1225_v38 = vsel %vm417_vm9, %v4461_v44, 0.0 }
 0x656   :  { %1226 = vadd.xlane.f32.xlu0 %v1225_v38  ;;  %1241 = vrot.lane.b32.xlu2 %v4136_v48, %s3850_s11 }
 0x65b   :  { %v544_v16 = vpop.xlane.xlu1 %543 }
 0x65c   :  { %1136 = vrot.lane.b32.xlu1 %v4136_v48, %s3851_s12  ;;  %3604 = vrcp.f32 %v544_v16  ;;  %v1041_v48 = vsel %vm464_vm2, %v4405_v7, 0 }
 0x662   :  { %v3605_v19 = vpop.eup %3604 }
 0x663   :  { %v547_v50 = vpop.xlane.xlu0 %546  ;;  %v554_v0 = vmul.f32 %v3605_v19, %v4378_v61 }
 0x664   :  { %3606 = vrcp.f32 %v547_v50 }
 0x66a   :  { %v3607_v62 = vpop.eup %3606  ;;  %1239 = vrot.lane.b32.xlu0 %v4129_v34, %s3850_s11 }
 0x66b   :  { %v555_v23 = vmul.f32 %v3607_v62, %v4385_v63  ;;  %v550_v54 = vpop.xlane.xlu0 %549  ;;  %v1213_v63 = vsub.f32 %v4363_v31, %v1206_v20 }
 0x66c   :  { %3608 = vrcp.f32 %v550_v54 }
 0x66d   :  { %v557_v22 = vpack.c.bf16 %v555_v23, %v554_v0  ;;  %3610 = vrcp.f32 %v909_v41  ;;  %v1216_v26 = vmul.f32 1.442695, %v1213_v63 }
 0x66e   :  { %3612 = vpow2.f32 %v1008_v32 }
 0x66f   :  { %3272 = vmatmul.msk.bf16.vlgmr.msrb.gmra.mxu2 %vm417_vm9, %v557_v22  ;;  %3614 = vrcp.f32 %v4375_v57 }
 0x670   :  { %1049 = vmatpush.bf16.msrb.mxu2 %v1041_v48  ;;  %3616 = vpow2.f32 %v1216_v26 }
 0x672   :  { %v3609_v2 = vpop.eup %3608 }
 0x673   :  { %v927_v39 = vpop.permute.xlu1 %926  ;;  %v556_v7 = vmul.f32 %v3609_v2, %v4390_v5  ;;  %v3611_v49 = vpop.eup %3610 }
 0x674   :  { %v936_v61 = vsel %vm464_vm2, %v927_v39, 0  ;;  %1050 = vmatpush.bf16.msrb.mxu2 %v1030_v24  ;;  %v4482_v28 = vpop.eup %3612  ;;  %v919_v40 = vmul.f32 %v3611_v49, %v4346_v3 }
 0x675   :  { %944 = vmatpush.bf16.msra.mxu0 %v936_v61  ;;  %v3615_v33 = vpop.eup %3614  ;;  %v558_v6 = vpack.c.bf16 %v556_v7, %v556_v7  ;;  %v1015_v31 = vsel %vm417_vm9, %v4482_v28, 0.0 }
 0x676   :  { %v920_v1 = vmul.f32 %v3615_v33, %v4282_v30  ;;  %v4489_v5 = vpop.eup %3616 }
 0x677   :  { %v1222_v3 = vsel %vm417_vm9, %v4489_v5, 0.0 }
 0x678   :  { %v922_v57 = vpack.c.bf16 %v920_v1, %v919_v40 }
 0x67c   :  { %v687_v46 = vpop.f32.mrf.mxu0 }
 0x67e   :  { %v925_v43 = vpop.permute.xlu0 %924 }
 0x67f   :  { %1016 = vadd.xlane.f32.xlu2 %v1015_v31  ;;  %3273 = vmatmul.msk.bf16.gmra.mxu2 %vm417_vm9, %v558_v6 }
 0x680   :  { %945 = vmatpush.bf16.msra.mxu0 %v925_v43 }
 0x683   :  { %3284 = vmatmul.msk.bf16.vlgmr.msra.gmra.mxu0 %vm417_vm9, %v922_v57 }
 0x684   :  { %v689_v15 = vpop.f32.mrf.mxu0 }
 0x685   :  { %v3448_v37 = vpack.i.bf16 %v689_v15, %v687_v46 }
 0x687   :  { %3449 = vrot.lane.b32.xlu1 %v3448_v37, %s3852_s13  ;;  %1223 = vadd.xlane.f32.xlu2 %v1222_v3 }
 0x68c   :  { %v4495_v53 = vpop.f32.mrf.mxu0 }
 0x694   :  { %v694_v30 = vpop.f32.mrf.mxu0 }
 0x69e   :  { %v915_v8 = vpop.xlane.xlu1 %914 }
 0x69f   :  { %3618 = vrcp.f32 %v915_v8  ;;  %1134 = vrot.lane.b32.xlu2 %v4129_v34, %s3851_s12 }
 0x6a5   :  { %v3619_v38 = vpop.eup %3618 }
 0x6a6   :  { %v921_v41 = vmul.f32 %v3619_v38, %v4409_v11  ;;  %v760_v20 = vpop.xlane.xlu1 %759 }
 0x6a8   :  { %v923_v16 = vpack.c.bf16 %v921_v41, %v921_v41 }
 0x6a9   :  { %v754_v50 = vpop.xlane.xlu2 %753  ;;  %v1119_v19 = vpop.xlane.xlu0 %1118 }
 0x6aa   :  { %3285 = vmatmul.msk.bf16.gmra.mxu0 %vm417_vm9, %v923_v16  ;;  %3620 = vrcp.f32 %v754_v50  ;;  %v3806_v50 = vld [vmem:[%s5436_s2 + $0x8] sm:$0xff] }
 0x6ae   :  { %v1212_v60 = vpop.xlane.xlu1 %1211 }
 0x6af   :  { %v1215_v34 = vsub.f32 %v4433_v35, %v1212_v60 }
 0x6b0   :  { %v3621_v22 = vpop.eup %3620 }
 0x6b1   :  { %v757_v62 = vpop.xlane.xlu2 %756  ;;  %v1107_v0 = vpop.xlane.xlu0 %1106  ;;  %v764_v11 = vmul.f32 %v3621_v22, %v4424_v10  ;;  %v1220_v24 = vmul.f32 1.442695, %v1215_v34 }
 0x6b2   :  { %3622 = vrcp.f32 %v757_v62  ;;  %v1110_v23 = vsub.f32 %v4437_v25, %v1107_v0  ;;  %v3807_v0 = vld [vmem:[%s5436_s2] sm:$0xff]  ;;  %s3854_s2 = smov 24  }
 0x6b4   :  { %v1115_v54 = vmul.f32 1.442695, %v1110_v23 }
 0x6b6   :  { %3624 = vpow2.f32 %v1115_v54 }
 0x6b7   :  { %3626 = vrcp.f32 %v760_v20 }
 0x6b8   :  { %v3623_v48 = vpop.eup %3622  ;;  %3628 = vpow2.f32 %v1220_v24 }
 0x6b9   :  { %v765_v32 = vmul.f32 %v3623_v48, %v4439_v45  ;;  %v1242_v39 = vpop.permute.xlu2 %1241  ;;  %v1014_v35 = vpop.xlane.xlu0 %1013 }
 0x6ba   :  { %v1251_v2 = vsel %vm464_vm2, %v1242_v39, 0  ;;  %v1122_v45 = vpop.xlane.xlu1 %1121  ;;  %3630 = vrcp.f32 %v1014_v35 }
 0x6bb   :  { %v767_v61 = vpack.c.bf16 %v765_v32, %v764_v11 }
 0x6bc   :  { %v4505_v63 = vpop.eup %3624 }
 0x6bd   :  { %3280 = vmatmul.msk.bf16.vlgmr.msra.gmra.mxu2 %vm417_vm9, %v767_v61  ;;  %v1123_v25 = vsel %vm417_vm9, %v4505_v63, 0.0  ;;  %v3627_v10 = vpop.eup %3626 }
 0x6be   :  { %1259 = vmatpush.bf16.msra.mxu2 %v1251_v2  ;;  %1124 = vadd.xlane.f32.xlu0 %v1123_v25  ;;  %v4511_v26 = vpop.eup %3628  ;;  %v766_v49 = vmul.f32 %v3627_v10, %v4415_v58 }
 0x6bf   :  { %v1228_v7 = vsel %vm417_vm9, %v4511_v26, 0.0 }
 0x6c0   :  { %v768_v46 = vpack.c.bf16 %v766_v49, %v766_v49  ;;  %v3631_v15 = vpop.eup %3630 }
 0x6c1   :  { %v1020_v33 = vpop.xlane.xlu0 %1019  ;;  %v1024_v58 = vmul.f32 %v3631_v15, %v4450_v51 }
 0x6c8   :  { %1229 = vadd.xlane.f32.xlu2 %v1228_v7 }
 0x6c9   :  { %v1227_v43 = vpop.xlane.xlu0 %1226 }
 0x6cd   :  { %3281 = vmatmul.msk.bf16.gmra.mxu2 %vm417_vm9, %v768_v46 }
 0x6ce   :  { %v1137_v40 = vpop.permute.xlu1 %1136 }
 0x6cf   :  { %v1146_v6 = vsel %vm464_vm2, %v1137_v40, 0 }
 0x6d0   :  { %1154 = vmatpush.bf16.msrb.mxu0 %v1146_v6 }
 0x6dc   :  { %v1240_v31 = vpop.permute.xlu0 %1239 }
 0x6dd   :  { %1260 = vmatpush.bf16.msra.mxu2 %v1240_v31 }
 0x6f2   :  { %v1017_v1 = vpop.xlane.xlu2 %1016  ;;  %v582_v57 = vpop.f32.mrf.mxu2 }
 0x6f3   :  { %3632 = vrcp.f32 %v1017_v1 }
 0x6f4   :  { %3634 = vrcp.f32 %v1122_v45 }
 0x6f5   :  { %3636 = vrcp.f32 %v1119_v19 }
 0x6f6   :  { %3638 = vrcp.f32 %v1020_v33 }
 0x6f9   :  { %v3633_v37 = vpop.eup %3632 }
 0x6fa   :  { %v1025_v3 = vmul.f32 %v3633_v37, %v4482_v28  ;;  %v1224_v30 = vpop.xlane.xlu2 %1223  ;;  %v584_v8 = vpop.f32.mrf.mxu2 }
 0x6fb   :  { %v3453_v38 = vpack.i.bf16 %v584_v8, %v582_v57  ;;  %v3635_v20 = vpop.eup %3634  ;;  %3640 = vrcp.f32 %v1224_v30 }
 0x6fc   :  { %v1027_v41 = vpack.c.bf16 %v1025_v3, %v1024_v58  ;;  %v3637_v16 = vpop.eup %3636  ;;  %v1130_v51 = vmul.f32 %v3635_v20, %v4448_v14  ;;  %3642 = vrcp.f32 %v1227_v43  ;;  %v3416_v58 = vld [vmem:[%s5437_s3 + $0x8] sm:$0xff]  ;;  %v3415_v3 = vld [vmem:[%s5437_s3] sm:$0xff] }
 0x6fd   :  { %3454 = vrot.lane.b32.xlu1 %v3453_v38, %s3853_s14  ;;  %v1129_v28 = vmul.f32 %v3637_v16, %v4420_v42  ;;  %v3639_v60 = vpop.eup %3638  ;;  %1347 = vmatpush.bf16.msra.mxu1 %v3416_v58 }
 0x6fe   :  { %3288 = vmatmul.msk.bf16.vlgmr.msrb.gmra.mxu2 %vm417_vm9, %v1027_v41  ;;  %v1026_v54 = vmul.f32 %v3639_v60, %v4457_v18 }
 0x6ff   :  { %1849 = vmatpush.bf16.msrb.mxu2 %v3806_v50  ;;  %v1132_v23 = vpack.c.bf16 %v1130_v51, %v1129_v28 }
 0x700   :  { %v1028_v34 = vpack.c.bf16 %v1026_v54, %v1026_v54  ;;  %v4533_v14 = vpop.f32.mrf.mxu0 }
 0x701   :  { %v3641_v42 = vpop.eup %3640  ;;  %1348 = vmatpush.bf16.msra.mxu1 %v3415_v3 }
 0x702   :  { %v1135_v19 = vpop.permute.xlu2 %1134  ;;  %v587_v62 = vpop.f32.mrf.mxu2  ;;  %v1234_v11 = vmul.f32 %v3641_v42, %v4489_v5 }
 0x703   :  { %1155 = vmatpush.bf16.msrb.mxu0 %v1135_v19  ;;  %1850 = vmatpush.bf16.msrb.mxu2 %v3807_v0  ;;  %v3643_v48 = vpop.eup %3642 }
 0x704   :  { %v1235_v32 = vmul.f32 %v3643_v48, %v4461_v44 }
 0x706   :  { %3292 = vmatmul.msk.bf16.vlgmr.msrb.gmra.mxu0 %vm417_vm9, %v1132_v23  ;;  %v1237_v24 = vpack.c.bf16 %v1235_v32, %v1234_v11 }
 0x708   :  { %v4538_v39 = vpop.f32.mrf.mxu0 }
 0x70a   :  { %v589_v22 = vpop.f32.mrf.mxu2 }
 0x70e   :  { %3289 = vmatmul.msk.bf16.gmra.mxu2 %vm417_vm9, %v1028_v34 }
 0x71e   :  { %3296 = vmatmul.msk.bf16.vlgmr.msra.gmra.mxu2 %vm417_vm9, %v1237_v24 }
 0x727   :  { %v4540_v18 = vpop.f32.mrf.mxu0 }
 0x72f   :  { %v954_v61 = vpop.f32.mrf.mxu0 }
 0x731   :  { %v1125_v2 = vpop.xlane.xlu0 %1124 }
 0x732   :  { %3644 = vrcp.f32 %v1125_v2 }
 0x738   :  { %v3645_v25 = vpop.eup %3644 }
 0x739   :  { %v1131_v35 = vmul.f32 %v3645_v25, %v4505_v63 }
 0x73b   :  { %v1230_v10 = vpop.xlane.xlu2 %1229  ;;  %v1133_v45 = vpack.c.bf16 %v1131_v35, %v1131_v35 }
 0x73c   :  { %3646 = vrcp.f32 %v1230_v10 }
 0x73d   :  { %3293 = vmatmul.msk.bf16.gmra.mxu0 %vm417_vm9, %v1133_v45 }
 0x740   :  { %v792_v5 = vpop.f32.mrf.mxu2 }
 0x742   :  { %v3647_v44 = vpop.eup %3646 }
 0x743   :  { %v1236_v7 = vmul.f32 %v3647_v44, %v4511_v26 }
 0x745   :  { %v1238_v49 = vpack.c.bf16 %v1236_v7, %v1236_v7 }
 0x747   :  { %3297 = vmatmul.msk.bf16.gmra.mxu2 %vm417_vm9, %v1238_v49 }
 0x748   :  { %v794_v33 = vpop.f32.mrf.mxu2 }
 0x749   :  { %v3458_v46 = vpack.i.bf16 %v794_v33, %v792_v5 }
 0x74b   :  { %3459 = vrot.lane.b32.xlu1 %v3458_v46, %s3854_s2 }
 0x750   :  { %v797_v40 = vpop.f32.mrf.mxu2 }
 0x758   :  { %v799_v6 = vpop.f32.mrf.mxu2 }
 0x781   :  { %v1052_v63 = vpop.f32.mrf.mxu2 }
 0x782   :  { %v3463_v43 = vpack.i.bf16 %v1052_v63, %v587_v62 }
 0x783   :  { %v1157_v31 = vpop.f32.mrf.mxu0 }
 0x784   :  { %3464 = vrot.lane.b32.xlu1 %v3463_v43, %s3853_s14  ;;  %v3468_v57 = vpack.i.bf16 %v1157_v31, %v4495_v53  ;;  %v3450_v53 = vpop.permute.xlu1 %3449 }
 0x785   :  { %v3452_v62 = vunpack.i.h.bf16 %v3450_v53  ;;  %v3451_v0 = vunpack.i.l.bf16 %v3450_v53 }
 0x789   :  { %v1054_v1 = vpop.f32.mrf.mxu2 }
 0x78b   :  { %v1159_v38 = vpop.f32.mrf.mxu0 }
 0x78c   :  { %3469 = vrot.lane.b32.xlu1 %v3468_v57, %s3852_s13  ;;  %v3455_v41 = vpop.permute.xlu1 %3454 }
 0x78d   :  { %v3457_v20 = vunpack.i.h.bf16 %v3455_v41  ;;  %v3456_v16 = vunpack.i.l.bf16 %v3455_v41 }
 0x78f   :  { %v838_v28 = vsel %vm386_vm15, %v4284_v59, %v3457_v20  ;;  %v837_v19 = vsel %vm386_vm15, %v4278_v47, %v3456_v16 }
 0x790   :  { %v841_v22 = vsel %vm840_vm10, %v837_v19, %v3451_v0  ;;  %v842_v34 = vsel %vm840_vm10, %v838_v28, %v3452_v62 }
 0x791   :  { %v1057_v26 = vpop.f32.mrf.mxu2 }
 0x792   :  { %v3478_v15 = vpack.i.bf16 %v1057_v26, %v1054_v1 }
 0x794   :  { %3479 = vrot.lane.b32.xlu0 %v3478_v15, %s3853_s14 }
 0x799   :  { %v1059_v37 = vpop.f32.mrf.mxu2 }
 0x7a1   :  { %v1262_v30 = vpop.f32.mrf.mxu2 }
 0x7a2   :  { %v3473_v8 = vpack.i.bf16 %v1262_v30, %v797_v40 }
 0x7a4   :  { %3474 = vrot.lane.b32.xlu2 %v3473_v8, %s3854_s2 }
 0x7a9   :  { %v1264_v11 = vpop.f32.mrf.mxu2 }
 0x7ba   :  { %v1162_v50 = vpop.f32.mrf.mxu0 }
 0x7bb   :  { %v3483_v51 = vpack.i.bf16 %v1162_v50, %v1159_v38 }
 0x7bd   :  { %v3460_v23 = vpop.permute.xlu1 %3459  ;;  %3484 = vrot.lane.b32.xlu1 %v3483_v51, %s3852_s13 }
 0x7be   :  { %v3462_v60 = vunpack.i.h.bf16 %v3460_v23  ;;  %v3461_v54 = vunpack.i.l.bf16 %v3460_v23 }
 0x7c0   :  { %v845_v42 = vsel %vm417_vm9, %v842_v34, %v3462_v60  ;;  %v844_v48 = vsel %vm417_vm9, %v841_v22, %v3461_v54 }
 0x7c1   :  { %v1316_v59 = vpack.c.bf16 %v845_v42, %v844_v48 }
 0x7c2   :  { %v1164_v32 = vpop.f32.mrf.mxu0 }
 0x7c3   :  { %3306 = vmatmul.msk.bf16.vlgmr.msra.gmra.mxu1 %vm164_vm1, %v1316_v59 }
 0x7ca   :  { %v1267_v47 = vpop.f32.mrf.mxu2 }
 0x7cb   :  { %v3488_v24 = vpack.i.bf16 %v1267_v47, %v1264_v11 }
 0x7cd   :  { %3489 = vrot.lane.b32.xlu1 %v3488_v24, %s3854_s2 }
 0x7d2   :  { %v1269_v61 = vpop.f32.mrf.mxu2 }
 0x7f6   :  { %v3465_v2 = vpop.permute.xlu1 %3464 }
 0x7f7   :  { %v3467_v25 = vunpack.i.h.bf16 %v3465_v2  ;;  %v3466_v35 = vunpack.i.l.bf16 %v3465_v2 }
 0x7f9   :  { %v1307_v33 = vsel %vm386_vm15, %v4533_v14, %v3467_v25  ;;  %v839_v46 = vsel %vm386_vm15, %v4289_v12, %v3466_v35  ;;  %v4581_v12 = vld [vmem:[%s5443_s9] sm:$0xff] }
 0x7fa   :  { %v4584_v58 = vperm.slane %v4581_v12, 5 }
 0x7fe   :  { %v3470_v10 = vpop.permute.xlu1 %3469  ;;  %v3475_v45 = vpop.permute.xlu2 %3474 }
 0x7ff   :  { %v3472_v5 = vunpack.i.h.bf16 %v3470_v10  ;;  %v3471_v44 = vunpack.i.l.bf16 %v3470_v10  ;;  %v3477_v7 = vunpack.i.h.bf16 %v3475_v45  ;;  %v3476_v49 = vunpack.i.l.bf16 %v3475_v45 }
 0x801   :  { %v843_v40 = vsel %vm840_vm10, %v839_v46, %v3471_v44  ;;  %v1310_v6 = vsel %vm840_vm10, %v1307_v33, %v3472_v5 }
 0x802   :  { %v846_v63 = vsel %vm417_vm9, %v843_v40, %v3476_v49  ;;  %v1313_v43 = vsel %vm417_vm9, %v1310_v6, %v3477_v7 }
 0x803   :  { %v1317_v31 = vpack.c.bf16 %v1313_v43, %v846_v63 }
 0x805   :  { %3307 = vmatmul.msk.bf16.gmra.mxu1 %vm164_vm1, %v1317_v31 }
 0x806   :  { %v3480_v57 = vpop.permute.xlu0 %3479 }
 0x807   :  { %v3482_v26 = vunpack.i.h.bf16 %v3480_v57  ;;  %v3481_v15 = vunpack.i.l.bf16 %v3480_v57 }
 0x809   :  { %v1309_v30 = vsel %vm386_vm15, %v4540_v18, %v3482_v26  ;;  %v1308_v8 = vsel %vm386_vm15, %v4538_v39, %v3481_v15 }
 0x82f   :  { %v3485_v1 = vpop.permute.xlu1 %3484 }
 0x830   :  { %v3487_v37 = vunpack.i.h.bf16 %v3485_v1  ;;  %v3486_v14 = vunpack.i.l.bf16 %v3485_v1 }
 0x832   :  { %v1311_v20 = vsel %vm840_vm10, %v1308_v8, %v3486_v14  ;;  %v1312_v16 = vsel %vm840_vm10, %v1309_v30, %v3487_v37  ;;  %v3418_v37 = vld [vmem:[%s5438_s4 + $0x8] sm:$0xff]  ;;  %v3417_v30 = vld [vmem:[%s5438_s4] sm:$0xff] }
 0x833   :  { %1548 = vmatpush.bf16.msra.mxu0 %v3418_v37 }
 0x837   :  { %1549 = vmatpush.bf16.msra.mxu0 %v3417_v30 }
 0x83f   :  { %v3490_v3 = vpop.permute.xlu1 %3489 }
 0x840   :  { %v3492_v53 = vunpack.i.h.bf16 %v3490_v3  ;;  %v3491_v38 = vunpack.i.l.bf16 %v3490_v3  ;;  %v1350_v41 = vpop.f32.mrf.mxu1 }
 0x841   :  { %v1351_v50 = vadd.f32 %v1350_v41, %v4584_v58 }
 0x842   :  { %v1314_v51 = vsel %vm417_vm9, %v1311_v20, %v3491_v38  ;;  %v1315_v28 = vsel %vm417_vm9, %v1312_v16, %v3492_v53 }
 0x843   :  { %v4596_v19 = vadd.f32 %v1351_v50, %v3938_v9  ;;  %v1318_v18 = vpack.c.bf16 %v1315_v28, %v1314_v51 }
 0x845   :  { %3308 = vmatmul.msk.bf16.gmra.mxu1 %vm164_vm1, %v1318_v18  ;;  %v1371_v39 = vsel %vm164_vm1, %v4596_v19, 0.0 }
 0x846   :  { %1372 = vadd.xlane.f32.xlu1 %v1371_v39 }
 0x848   :  { %v1352_v62 = vpop.f32.mrf.mxu1 }
 0x849   :  { %v1353_v0 = vadd.f32 %v1352_v62, %v4584_v58 }
 0x84b   :  { %v4603_v23 = vadd.f32 %v1353_v0, %v3945_v13 }
 0x84d   :  { %v1374_v60 = vsel %vm164_vm1, %v4603_v23, 0.0 }
 0x84e   :  { %1375 = vadd.xlane.f32.xlu2 %v1374_v60 }
 0x882   :  { %v1355_v54 = vpop.f32.mrf.mxu1 }
 0x883   :  { %v1356_v9 = vadd.f32 %v1355_v54, %v4584_v58 }
 0x885   :  { %v4609_v22 = vadd.f32 %v1356_v9, %v3952_v17 }
 0x887   :  { %v1377_v34 = vsel %vm164_vm1, %v4609_v22, 0.0 }
 0x888   :  { %1378 = vadd.xlane.f32.xlu0 %v1377_v34 }
 0x88a   :  { %v1357_v42 = vpop.f32.mrf.mxu1 }
 0x88b   :  { %v1358_v48 = vadd.f32 %v1357_v42, %v4584_v58 }
 0x88d   :  { %v4615_v13 = vadd.f32 %v1358_v48, %v3959_v21 }
 0x88f   :  { %v1380_v59 = vsel %vm164_vm1, %v4615_v13, 0.0 }
 0x890   :  { %1381 = vadd.xlane.f32.xlu2 %v1380_v59 }
 0x8b9   :  { %v1373_v11 = vpop.xlane.xlu1 %1372 }
 0x8ba   :  { %v1389_v32 = vmul.f32 %v1373_v11, %v3963_v29  ;;  %v4675_v11 = vperm.slane %v4581_v12, 2 }
 0x8bc   :  { %v4621_v17 = vsub.f32 %v4596_v19, %v1389_v32 }
 0x8be   :  { %v1401_v47 = vmul.f32 %v4621_v17, %v4621_v17 }
 0x8c0   :  { %v1407_v24 = vsel %vm164_vm1, %v1401_v47, 0.0 }
 0x8c1   :  { %v1376_v61 = vpop.xlane.xlu2 %1375  ;;  %1408 = vadd.xlane.f32.xlu1 %v1407_v24 }
 0x8c2   :  { %v1390_v21 = vmul.f32 %v1376_v61, %v3963_v29  ;;  %v1360_v25 = vpop.f32.mrf.mxu1  ;;  %v4679_v61 = vperm.slane %v4581_v12, 3 }
 0x8c3   :  { %v1361_v10 = vadd.f32 %v1360_v25, %v4584_v58 }
 0x8c4   :  { %v4628_v2 = vsub.f32 %v4603_v23, %v1390_v21 }
 0x8c5   :  { %v4635_v5 = vadd.f32 %v1361_v10, %v3996_v52 }
 0x8c6   :  { %v1402_v35 = vmul.f32 %v4628_v2, %v4628_v2 }
 0x8c7   :  { %v1383_v44 = vsel %vm164_vm1, %v4635_v5, 0.0 }
 0x8c8   :  { %v1410_v45 = vsel %vm164_vm1, %v1402_v35, 0.0 }
 0x8c9   :  { %1411 = vadd.xlane.f32.xlu0 %v1410_v45 }
 0x8ca   :  { %v1362_v46 = vpop.f32.mrf.mxu1 }
 0x8cb   :  { %v1363_v6 = vadd.f32 %v1362_v46, %v4584_v58 }
 0x8cd   :  { %v4649_v31 = vadd.f32 %v1363_v6, %v4003_v56 }
 0x8cf   :  { %v1386_v15 = vsel %vm164_vm1, %v4649_v31, 0.0 }
 0x8d1   :  { %1384 = vadd.xlane.f32.xlu0 %v1383_v44 }
 0x8fb   :  { %v1379_v7 = vpop.xlane.xlu0 %1378 }
 0x8fc   :  { %v1391_v49 = vmul.f32 %v1379_v7, %v3963_v29 }
 0x8fe   :  { %v4641_v33 = vsub.f32 %v4609_v22, %v1391_v49 }
 0x900   :  { %v1403_v40 = vmul.f32 %v4641_v33, %v4641_v33 }
 0x902   :  { %v1413_v63 = vsel %vm164_vm1, %v1403_v40, 0.0 }
 0x903   :  { %v1382_v52 = vpop.xlane.xlu2 %1381  ;;  %1414 = vadd.xlane.f32.xlu2 %v1413_v63 }
 0x904   :  { %v1392_v43 = vmul.f32 %v1382_v52, %v3963_v29 }
 0x906   :  { %v4652_v1 = vsub.f32 %v4615_v13, %v1392_v43 }
 0x908   :  { %v1404_v57 = vmul.f32 %v4652_v1, %v4652_v1 }
 0x90a   :  { %v1416_v26 = vsel %vm164_vm1, %v1404_v57, 0.0 }
 0x90b   :  { %1417 = vadd.xlane.f32.xlu1 %v1416_v26  ;;  %1387 = vadd.xlane.f32.xlu2 %v1386_v15 }
 0x934   :  { %v1409_v14 = vpop.xlane.xlu1 %1408 }
 0x935   :  { %v1425_v56 = vmul.f32 %v1409_v14, %v3963_v29 }
 0x937   :  { %v1431_v3 = vadd.f32 1e-05, %v1425_v56 }
 0x939   :  { %3648 = vrsqrt.f32 %v1431_v3  ;;  %vm1443_vm12 = vweird.f32 %v1431_v3 }
 0x93c   :  { %v1412_v8 = vpop.xlane.xlu0 %1411 }
 0x93d   :  { %v1426_v53 = vmul.f32 %v1412_v8, %v3963_v29 }
 0x93f   :  { %v3649_v38 = vpop.eup %3648  ;;  %v1432_v41 = vadd.f32 1e-05, %v1426_v53 }
 0x940   :  { %v1438_v20 = vmul.f32 %v3649_v38, %v1431_v3  ;;  %vm1444_vm11 = vweird.f32 %v3649_v38 }
 0x941   :  { %3650 = vrsqrt.f32 %v1432_v41  ;;  %vm1445_vm13 = vmor %vm1443_vm12, %vm1444_vm11  ;;  %vm1453_vm3 = vweird.f32 %v1432_v41 }
 0x942   :  { %v1439_v16 = vmul.f32 %v3649_v38, %v1438_v20 }
 0x944   :  { %v1440_v50 = vmul.f32 0.5, %v1439_v16  ;;  %v1385_v51 = vpop.xlane.xlu0 %1384 }
 0x945   :  { %v1393_v28 = vmul.f32 %v1385_v51, %v3963_v29 }
 0x946   :  { %v1441_v18 = vsub.f32 1.5, %v1440_v50 }
 0x947   :  { %v3651_v39 = vpop.eup %3650  ;;  %v4669_v62 = vsub.f32 %v4635_v5, %v1393_v28 }
 0x948   :  { %v1442_v0 = vmul.f32 %v3649_v38, %v1441_v18  ;;  %v1448_v60 = vmul.f32 %v3651_v39, %v1432_v41  ;;  %vm1454_vm14 = vweird.f32 %v3651_v39 }
 0x949   :  { %v1405_v54 = vmul.f32 %v4669_v62, %v4669_v62  ;;  %vm1455_vm4 = vmor %vm1453_vm3, %vm1454_vm14 }
 0x94a   :  { %v1449_v9 = vmul.f32 %v3651_v39, %v1448_v60  ;;  %v1446_v42 = vsel %vm1445_vm13, %v3649_v38, %v1442_v0 }
 0x94b   :  { %v1419_v34 = vsel %vm164_vm1, %v1405_v54, 0.0  ;;  %v1497_v32 = vmul.f32 %v1446_v42, %v4621_v17 }
 0x94c   :  { %v1450_v48 = vmul.f32 0.5, %v1449_v9  ;;  %1420 = vadd.xlane.f32.xlu1 %v1419_v34  ;;  %v4718_v9 = vld [vmem:[%s5439_s5 + $0x8] sm:$0xff]  ;;  %v4721_v34 = vperm.slane %v4581_v12, 6 }
 0x94d   :  { %v1504_v21 = vmul.f32 %v4675_v11, %v1497_v32 }
 0x94e   :  { %v1451_v59 = vsub.f32 1.5, %v1450_v48  ;;  %v4727_v48 = vld [vmem:[%s5439_s5] sm:$0xff] }
 0x94f   :  { %v1511_v10 = vadd.f32 %v4679_v61, %v1504_v21 }
 0x950   :  { %v1452_v47 = vmul.f32 %v3651_v39, %v1451_v59 }
 0x952   :  { %v1456_v24 = vsel %vm1455_vm4, %v3651_v39, %v1452_v47 }
 0x953   :  { %v1498_v25 = vmul.f32 %v1456_v24, %v4628_v2 }
 0x955   :  { %v1505_v35 = vmul.f32 %v4675_v11, %v1498_v25 }
 0x957   :  { %v1512_v45 = vadd.f32 %v4679_v61, %v1505_v35 }
 0x959   :  { %v1517_v44 = vpack.c.bf16 %v1512_v45, %v1511_v10 }
 0x95b   :  { %3317 = vmatmul.msk.bf16.vlgmr.msra.gmra.mxu0 %vm164_vm1, %v1517_v44 }
 0x976   :  { %v1415_v17 = vpop.xlane.xlu2 %1414 }
 0x977   :  { %v1427_v7 = vmul.f32 %v1415_v17, %v3963_v29 }
 0x979   :  { %v1433_v49 = vadd.f32 1e-05, %v1427_v7 }
 0x97b   :  { %3652 = vrsqrt.f32 %v1433_v49  ;;  %vm1463_vm6 = vweird.f32 %v1433_v49 }
 0x97e   :  { %v1418_v46 = vpop.xlane.xlu1 %1417  ;;  %v1388_v40 = vpop.xlane.xlu2 %1387 }
 0x97f   :  { %v1428_v6 = vmul.f32 %v1418_v46, %v3963_v29  ;;  %v1394_v2 = vmul.f32 %v1388_v40, %v3963_v29 }
 0x981   :  { %v3653_v63 = vpop.eup %3652  ;;  %v1434_v52 = vadd.f32 1e-05, %v1428_v6  ;;  %v4691_v43 = vsub.f32 %v4649_v31, %v1394_v2 }
 0x982   :  { %v1458_v57 = vmul.f32 %v3653_v63, %v1433_v49  ;;  %vm1464_vm5 = vweird.f32 %v3653_v63 }
 0x983   :  { %3654 = vrsqrt.f32 %v1434_v52  ;;  %v1406_v26 = vmul.f32 %v4691_v43, %v4691_v43  ;;  %vm1465_vm7 = vmor %vm1463_vm6, %vm1464_vm5  ;;  %vm1473_vm11 = vweird.f32 %v1434_v52 }
 0x984   :  { %v1459_v15 = vmul.f32 %v3653_v63, %v1458_v57 }
 0x985   :  { %v1422_v37 = vsel %vm164_vm1, %v1406_v26, 0.0 }
 0x986   :  { %v1460_v14 = vmul.f32 0.5, %v1459_v15  ;;  %1423 = vadd.xlane.f32.xlu0 %v1422_v37 }
 0x988   :  { %v1461_v56 = vsub.f32 1.5, %v1460_v14 }
 0x989   :  { %v3655_v3 = vpop.eup %3654 }
 0x98a   :  { %v1462_v30 = vmul.f32 %v3653_v63, %v1461_v56  ;;  %v1468_v8 = vmul.f32 %v3655_v3, %v1434_v52  ;;  %vm1474_vm8 = vweird.f32 %v3655_v3 }
 0x98b   :  { %vm1475_vm12 = vmor %vm1473_vm11, %vm1474_vm8 }
 0x98c   :  { %v1469_v53 = vmul.f32 %v3655_v3, %v1468_v8  ;;  %v1466_v38 = vsel %vm1465_vm7, %v3653_v63, %v1462_v30 }
 0x98d   :  { %v1499_v16 = vmul.f32 %v1466_v38, %v4641_v33  ;;  %v4706_v33 = vld [vmem:[%s5439_s5 + $0x18] sm:$0xff] }
 0x98e   :  { %v1470_v41 = vmul.f32 0.5, %v1469_v53  ;;  %1661 = vmatpush.bf16.msrb.mxu3 %v4706_v33 }
 0x98f   :  { %v1506_v18 = vmul.f32 %v4675_v11, %v1499_v16 }
 0x990   :  { %v1471_v20 = vsub.f32 1.5, %v1470_v41 }
 0x991   :  { %v1513_v0 = vadd.f32 %v4679_v61, %v1506_v18 }
 0x992   :  { %v1472_v50 = vmul.f32 %v3655_v3, %v1471_v20 }
 0x994   :  { %v1476_v51 = vsel %vm1475_vm12, %v3655_v3, %v1472_v50 }
 0x995   :  { %v1500_v28 = vmul.f32 %v1476_v51, %v4652_v1  ;;  %v4712_v1 = vld [vmem:[%s5439_s5 + $0x10] sm:$0xff] }
 0x996   :  { %1662 = vmatpush.bf16.msrb.mxu3 %v4712_v1 }
 0x997   :  { %v1507_v39 = vmul.f32 %v4675_v11, %v1500_v28 }
 0x999   :  { %v1514_v60 = vadd.f32 %v4679_v61, %v1507_v39 }
 0x99a   :  { %1663 = vmatpush.bf16.msrb.mxu3 %v4718_v9 }
 0x99b   :  { %v1518_v54 = vpack.c.bf16 %v1514_v60, %v1513_v0 }
 0x99d   :  { %3318 = vmatmul.msk.bf16.gmra.mxu0 %vm164_vm1, %v1518_v54 }
 0x99e   :  { %1664 = vmatpush.bf16.msrb.mxu3 %v4727_v48 }
 0x9bf   :  { %v1421_v25 = vpop.xlane.xlu1 %1420 }
 0x9c0   :  { %v1429_v17 = vmul.f32 %v1421_v25, %v3963_v29 }
 0x9c2   :  { %v1435_v46 = vadd.f32 1e-05, %v1429_v17 }
 0x9c4   :  { %vm1483_vm14 = vweird.f32 %v1435_v46 }
 0x9d8   :  { %v1551_v42 = vpop.f32.mrf.mxu0 }
 0x9d9   :  { %v1552_v59 = vadd.f32 %v1551_v42, %v4721_v34 }
 0x9db   :  { %v1566_v32 = vmul.f32 %v1552_v59, %v1552_v59 }
 0x9dd   :  { %v1572_v47 = vmul.f32 %v1566_v32, %v1552_v59 }
 0x9df   :  { %v1578_v24 = vmul.f32 0.044715, %v1572_v47 }
 0x9e0   :  { %v1553_v21 = vpop.f32.mrf.mxu0 }
 0x9e1   :  { %v1584_v35 = vadd.f32 %v1578_v24, %v1552_v59  ;;  %v1554_v10 = vadd.f32 %v1553_v21, %v4721_v34 }
 0x9e3   :  { %v1590_v45 = vmul.f32 0.7978846, %v1584_v35  ;;  %v1567_v44 = vmul.f32 %v1554_v10, %v1554_v10 }
 0x9e5   :  { %v1573_v7 = vmul.f32 %v1567_v44, %v1554_v10  ;;  %3656 = vtanh.f32 %v1590_v45 }
 0x9e6   :  { %3658 = vrsqrt.f32 %v1435_v46 }
 0x9e7   :  { %v1579_v49 = vmul.f32 0.044715, %v1573_v7 }
 0x9e9   :  { %v1585_v40 = vadd.f32 %v1579_v49, %v1554_v10 }
 0x9eb   :  { %v1591_v6 = vmul.f32 0.7978846, %v1585_v40  ;;  %v3657_v2 = vpop.eup %3656 }
 0x9ec   :  { %v1602_v63 = vadd.f32 1.0, %v3657_v2  ;;  %v3659_v52 = vpop.eup %3658 }
 0x9ed   :  { %3660 = vtanh.f32 %v1591_v6  ;;  %v1478_v37 = vmul.f32 %v3659_v52, %v1435_v46  ;;  %vm1484_vm13 = vweird.f32 %v3659_v52 }
 0x9ee   :  { %v1608_v26 = vmul.f32 0.5, %v1602_v63  ;;  %vm1485_vm3 = vmor %vm1483_vm14, %vm1484_vm13 }
 0x9ef   :  { %v1479_v30 = vmul.f32 %v3659_v52, %v1478_v37 }
 0x9f0   :  { %v1614_v56 = vmul.f32 %v1608_v26, %v1552_v59 }
 0x9f1   :  { %v1480_v20 = vmul.f32 0.5, %v1479_v30 }
 0x9f3   :  { %v3661_v57 = vpop.eup %3660  ;;  %v1481_v16 = vsub.f32 1.5, %v1480_v20 }
 0x9f4   :  { %v1603_v15 = vadd.f32 1.0, %v3661_v57 }
 0x9f5   :  { %v1482_v51 = vmul.f32 %v3659_v52, %v1481_v16 }
 0x9f6   :  { %v1609_v14 = vmul.f32 0.5, %v1603_v15 }
 0x9f7   :  { %v1486_v39 = vsel %vm1485_vm3, %v3659_v52, %v1482_v51 }
 0x9f8   :  { %v1615_v3 = vmul.f32 %v1609_v14, %v1554_v10  ;;  %v1501_v54 = vmul.f32 %v1486_v39, %v4669_v62 }
 0x9f9   :  { %v1424_v8 = vpop.xlane.xlu0 %1423 }
 0x9fa   :  { %v1620_v53 = vpack.c.bf16 %v1615_v3, %v1614_v56  ;;  %v1430_v38 = vmul.f32 %v1424_v8, %v3963_v29  ;;  %v1508_v47 = vmul.f32 %v4675_v11, %v1501_v54 }
 0x9fc   :  { %v1436_v41 = vadd.f32 1e-05, %v1430_v38  ;;  %3336 = vmatmul.msk.bf16.vlgmr.msrb.gmra.mxu3 %vm130_vm0, %v1620_v53  ;;  %v1515_v21 = vadd.f32 %v4679_v61, %v1508_v47  ;;  %v4746_v53 = vperm.slane %v4581_v12, 7 }
 0x9fe   :  { %3662 = vrsqrt.f32 %v1436_v41  ;;  %vm1493_vm5 = vweird.f32 %v1436_v41 }
 0xa04   :  { %v3663_v50 = vpop.eup %3662 }
 0xa05   :  { %v1488_v28 = vmul.f32 %v3663_v50, %v1436_v41  ;;  %vm1494_vm4 = vweird.f32 %v3663_v50 }
 0xa06   :  { %vm1495_vm6 = vmor %vm1493_vm5, %vm1494_vm4 }
 0xa07   :  { %v1489_v18 = vmul.f32 %v3663_v50, %v1488_v28 }
 0xa09   :  { %v1490_v0 = vmul.f32 0.5, %v1489_v18 }
 0xa0b   :  { %v1491_v60 = vsub.f32 1.5, %v1490_v0 }
 0xa0d   :  { %v1492_v42 = vmul.f32 %v3663_v50, %v1491_v60 }
 0xa0f   :  { %v1496_v59 = vsel %vm1495_vm6, %v3663_v50, %v1492_v42 }
 0xa10   :  { %v1502_v32 = vmul.f32 %v1496_v59, %v4691_v43 }
 0xa12   :  { %v1509_v24 = vmul.f32 %v4675_v11, %v1502_v32 }
 0xa14   :  { %v1516_v25 = vadd.f32 %v4679_v61, %v1509_v24 }
 0xa16   :  { %v1519_v35 = vpack.c.bf16 %v1516_v25, %v1515_v21 }
 0xa18   :  { %3319 = vmatmul.msk.bf16.gmra.mxu0 %vm164_vm1, %v1519_v35 }
 0xa1a   :  { %v1556_v10 = vpop.f32.mrf.mxu0 }
 0xa1b   :  { %v1557_v62 = vadd.f32 %v1556_v10, %v4721_v34 }
 0xa1d   :  { %v1568_v45 = vmul.f32 %v1557_v62, %v1557_v62 }
 0xa1f   :  { %v1574_v44 = vmul.f32 %v1568_v45, %v1557_v62 }
 0xa21   :  { %v1580_v17 = vmul.f32 0.044715, %v1574_v44 }
 0xa22   :  { %v1558_v7 = vpop.f32.mrf.mxu0 }
 0xa23   :  { %v1586_v49 = vadd.f32 %v1580_v17, %v1557_v62  ;;  %v1559_v43 = vadd.f32 %v1558_v7, %v4721_v34 }
 0xa25   :  { %v1592_v46 = vmul.f32 0.7978846, %v1586_v49  ;;  %v1569_v40 = vmul.f32 %v1559_v43, %v1559_v43 }
 0xa27   :  { %v1575_v6 = vmul.f32 %v1569_v40, %v1559_v43  ;;  %3664 = vtanh.f32 %v1592_v46 }
 0xa29   :  { %v1581_v2 = vmul.f32 0.044715, %v1575_v6 }
 0xa2b   :  { %v1587_v63 = vadd.f32 %v1581_v2, %v1559_v43 }
 0xa2d   :  { %v1593_v52 = vmul.f32 0.7978846, %v1587_v63  ;;  %v3665_v57 = vpop.eup %3664 }
 0xa2e   :  { %v1604_v26 = vadd.f32 1.0, %v3665_v57 }
 0xa2f   :  { %3666 = vtanh.f32 %v1593_v52 }
 0xa30   :  { %v1610_v14 = vmul.f32 0.5, %v1604_v26 }
 0xa32   :  { %v1616_v3 = vmul.f32 %v1610_v14, %v1557_v62 }
 0xa35   :  { %v3667_v15 = vpop.eup %3666 }
 0xa36   :  { %v1605_v37 = vadd.f32 1.0, %v3667_v15 }
 0xa38   :  { %v1611_v56 = vmul.f32 0.5, %v1605_v37 }
 0xa3a   :  { %v1617_v30 = vmul.f32 %v1611_v56, %v1559_v43 }
 0xa3c   :  { %v1621_v8 = vpack.c.bf16 %v1617_v30, %v1616_v3 }
 0xa3e   :  { %3337 = vmatmul.msk.bf16.gmra.mxu3 %vm130_vm0, %v1621_v8 }
 0xa7f   :  { %v1666_v38 = vpop.f32.mrf.mxu3 }
 0xa80   :  { %v1667_v41 = vadd.f32 %v1666_v38, %v4746_v53 }
 0xa82   :  { %v4750_v20 = vadd.f32 %v1667_v41, %v4596_v19 }
 0xa84   :  { %v1687_v16 = vsel %vm164_vm1, %v4750_v20, 0.0 }
 0xa85   :  { %1688 = vadd.xlane.f32.xlu2 %v1687_v16 }
 0xa87   :  { %v1668_v50 = vpop.f32.mrf.mxu3 }
 0xa88   :  { %v1669_v51 = vadd.f32 %v1668_v50, %v4746_v53 }
 0xa8a   :  { %v4756_v28 = vadd.f32 %v1669_v51, %v4603_v23 }
 0xa8c   :  { %v1690_v12 = vsel %vm164_vm1, %v4756_v28, 0.0 }
 0xa8d   :  { %1691 = vadd.xlane.f32.xlu1 %v1690_v12 }
 0xa95   :  { %v1561_v18 = vpop.f32.mrf.mxu0 }
 0xa96   :  { %v1562_v39 = vadd.f32 %v1561_v18, %v4721_v34 }
 0xa98   :  { %v1570_v0 = vmul.f32 %v1562_v39, %v1562_v39 }
 0xa9a   :  { %v1576_v19 = vmul.f32 %v1570_v0, %v1562_v39 }
 0xa9c   :  { %v1582_v60 = vmul.f32 0.044715, %v1576_v19 }
 0xa9d   :  { %v1563_v54 = vpop.f32.mrf.mxu0 }
 0xa9e   :  { %v1588_v42 = vadd.f32 %v1582_v60, %v1562_v39  ;;  %v1564_v59 = vadd.f32 %v1563_v54, %v4721_v34 }
 0xaa0   :  { %v1594_v32 = vmul.f32 0.7978846, %v1588_v42  ;;  %v1571_v47 = vmul.f32 %v1564_v59, %v1564_v59 }
 0xaa2   :  { %v1577_v24 = vmul.f32 %v1571_v47, %v1564_v59  ;;  %3668 = vtanh.f32 %v1594_v32 }
 0xaa4   :  { %v1583_v23 = vmul.f32 0.044715, %v1577_v24 }
 0xaa6   :  { %v1589_v21 = vadd.f32 %v1583_v23, %v1564_v59 }
 0xaa8   :  { %v1595_v25 = vmul.f32 0.7978846, %v1589_v21  ;;  %v3669_v35 = vpop.eup %3668 }
 0xaa9   :  { %v1606_v10 = vadd.f32 1.0, %v3669_v35 }
 0xaaa   :  { %3670 = vtanh.f32 %v1595_v25 }
 0xaab   :  { %v1612_v45 = vmul.f32 0.5, %v1606_v10 }
 0xaad   :  { %v1618_v7 = vmul.f32 %v1612_v45, %v1562_v39 }
 0xab0   :  { %v3671_v62 = vpop.eup %3670 }
 0xab1   :  { %v1607_v44 = vadd.f32 1.0, %v3671_v62 }
 0xab3   :  { %v1613_v17 = vmul.f32 0.5, %v1607_v44 }
 0xab5   :  { %v1619_v49 = vmul.f32 %v1613_v17, %v1564_v59 }
 0xab7   :  { %v1622_v43 = vpack.c.bf16 %v1619_v49, %v1618_v7 }
 0xab9   :  { %3338 = vmatmul.msk.bf16.gmra.mxu3 %vm130_vm0, %v1622_v43 }
 0xac1   :  { %v1671_v46 = vpop.f32.mrf.mxu3 }
 0xac2   :  { %v1672_v40 = vadd.f32 %v1671_v46, %v4746_v53 }
 0xac4   :  { %v4765_v6 = vadd.f32 %v1672_v40, %v4609_v22 }
 0xac6   :  { %v1693_v2 = vsel %vm164_vm1, %v4765_v6, 0.0 }
 0xac7   :  { %1694 = vadd.xlane.f32.xlu0 %v1693_v2 }
 0xac9   :  { %v1673_v63 = vpop.f32.mrf.mxu3 }
 0xaca   :  { %v1674_v52 = vadd.f32 %v1673_v63, %v4746_v53 }
 0xacc   :  { %v4771_v57 = vadd.f32 %v1674_v52, %v4615_v13 }
 0xace   :  { %v1696_v26 = vsel %vm164_vm1, %v4771_v57, 0.0 }
 0xacf   :  { %1697 = vadd.xlane.f32.xlu2 %v1696_v26 }
 0xaf8   :  { %v1689_v15 = vpop.xlane.xlu2 %1688 }
 0xaf9   :  { %v1705_v37 = vmul.f32 %v1689_v15, %v3963_v29 }
 0xafb   :  { %v1711_v22 = vsub.f32 %v4750_v20, %v1705_v37 }
 0xafd   :  { %v1717_v14 = vmul.f32 %v1711_v22, %v1711_v22 }
 0xaff   :  { %v1723_v56 = vsel %vm164_vm1, %v1717_v14, 0.0 }
 0xb00   :  { %1724 = vadd.xlane.f32.xlu1 %v1723_v56  ;;  %v1692_v3 = vpop.xlane.xlu1 %1691 }
 0xb01   :  { %v1706_v30 = vmul.f32 %v1692_v3, %v3963_v29 }
 0xb03   :  { %v1712_v8 = vsub.f32 %v4756_v28, %v1706_v30 }
 0xb05   :  { %v1718_v13 = vmul.f32 %v1712_v8, %v1712_v8 }
 0xb07   :  { %v1726_v38 = vsel %vm164_vm1, %v1718_v13, 0.0 }
 0xb08   :  { %1727 = vadd.xlane.f32.xlu0 %v1726_v38 }
 0xb3a   :  { %v1695_v41 = vpop.xlane.xlu0 %1694 }
 0xb3b   :  { %v1707_v16 = vmul.f32 %v1695_v41, %v3963_v29 }
 0xb3c   :  { %v1676_v50 = vpop.f32.mrf.mxu3 }
 0xb3d   :  { %v4783_v51 = vsub.f32 %v4765_v6, %v1707_v16  ;;  %v1677_v12 = vadd.f32 %v1676_v50, %v4746_v53 }
 0xb3f   :  { %v4787_v18 = vadd.f32 %v1677_v12, %v4635_v5  ;;  %v1719_v39 = vmul.f32 %v4783_v51, %v4783_v51 }
 0xb41   :  { %v1699_v0 = vsel %vm164_vm1, %v4787_v18, 0.0  ;;  %v1729_v19 = vsel %vm164_vm1, %v1719_v39, 0.0 }
 0xb42   :  { %v1698_v60 = vpop.xlane.xlu2 %1697  ;;  %1700 = vadd.xlane.f32.xlu0 %v1699_v0  ;;  %1730 = vadd.xlane.f32.xlu2 %v1729_v19 }
 0xb43   :  { %v1708_v54 = vmul.f32 %v1698_v60, %v3963_v29 }
 0xb44   :  { %v1678_v42 = vpop.f32.mrf.mxu3 }
 0xb45   :  { %v4796_v59 = vsub.f32 %v4771_v57, %v1708_v54  ;;  %v1679_v5 = vadd.f32 %v1678_v42, %v4746_v53 }
 0xb47   :  { %v4800_v32 = vadd.f32 %v1679_v5, %v4649_v31  ;;  %v1720_v47 = vmul.f32 %v4796_v59, %v4796_v59 }
 0xb49   :  { %v1732_v24 = vsel %vm164_vm1, %v1720_v47, 0.0  ;;  %v1702_v23 = vsel %vm164_vm1, %v4800_v32, 0.0 }
 0xb4a   :  { %1733 = vadd.xlane.f32.xlu1 %v1732_v24  ;;  %1703 = vadd.xlane.f32.xlu2 %v1702_v23 }
 0xb73   :  { %v1725_v21 = vpop.xlane.xlu1 %1724 }
 0xb74   :  { %v1741_v25 = vmul.f32 %v1725_v21, %v3963_v29 }
 0xb76   :  { %v1747_v35 = vadd.f32 1e-05, %v1741_v25 }
 0xb78   :  { %3672 = vrsqrt.f32 %v1747_v35  ;;  %vm1759_vm8 = vweird.f32 %v1747_v35 }
 0xb7b   :  { %v1728_v10 = vpop.xlane.xlu0 %1727 }
 0xb7c   :  { %v1742_v62 = vmul.f32 %v1728_v10, %v3963_v29 }
 0xb7e   :  { %v3673_v31 = vpop.eup %3672  ;;  %v1748_v45 = vadd.f32 1e-05, %v1742_v62 }
 0xb7f   :  { %v1754_v44 = vmul.f32 %v3673_v31, %v1747_v35  ;;  %vm1760_vm7 = vweird.f32 %v3673_v31 }
 0xb80   :  { %3674 = vrsqrt.f32 %v1748_v45  ;;  %vm1761_vm11 = vmor %vm1759_vm8, %vm1760_vm7  ;;  %vm1769_vm13 = vweird.f32 %v1748_v45 }
 0xb81   :  { %v1755_v17 = vmul.f32 %v3673_v31, %v1754_v44 }
 0xb83   :  { %v1756_v7 = vmul.f32 0.5, %v1755_v17 }
 0xb85   :  { %v1757_v49 = vsub.f32 1.5, %v1756_v7 }
 0xb86   :  { %v3675_v43 = vpop.eup %3674 }
 0xb87   :  { %v1758_v46 = vmul.f32 %v3673_v31, %v1757_v49  ;;  %v1764_v40 = vmul.f32 %v3675_v43, %v1748_v45  ;;  %vm1770_vm12 = vweird.f32 %v3675_v43 }
 0xb88   :  { %vm1771_vm14 = vmor %vm1769_vm13, %vm1770_vm12 }
 0xb89   :  { %v1765_v2 = vmul.f32 %v3675_v43, %v1764_v40  ;;  %v1762_v63 = vsel %vm1761_vm11, %v3673_v31, %v1758_v46 }
 0xb8a   :  { %v1813_v15 = vmul.f32 %v1762_v63, %v1711_v22 }
 0xb8b   :  { %v1766_v52 = vmul.f32 0.5, %v1765_v2 }
 0xb8c   :  { %v1819_v56 = vmul.f32 %v1813_v15, %v4021_v27 }
 0xb8d   :  { %v1767_v26 = vsub.f32 1.5, %v1766_v52 }
 0xb8e   :  { %v1825_v13 = vadd.f32 %v1819_v56, %v4025_v36 }
 0xb8f   :  { %v1768_v37 = vmul.f32 %v3675_v43, %v1767_v26 }
 0xb91   :  { %v1772_v14 = vsel %vm1771_vm14, %v3675_v43, %v1768_v37 }
 0xb92   :  { %v1814_v3 = vmul.f32 %v1772_v14, %v1712_v8 }
 0xb94   :  { %v1820_v30 = vmul.f32 %v1814_v3, %v4021_v27 }
 0xb96   :  { %v1826_v38 = vadd.f32 %v1820_v30, %v4025_v36 }
 0xb98   :  { %v1831_v41 = vpack.c.bf16 %v1826_v38, %v1825_v13 }
 0xb9a   :  { %3339 = vmatmul.msk.bf16.vlgmr.msrb.gmra.mxu2 %vm164_vm1, %v1831_v41 }
 0xbb5   :  { %v1731_v16 = vpop.xlane.xlu2 %1730  ;;  %v1701_v50 = vpop.xlane.xlu0 %1700 }
 0xbb6   :  { %v1743_v22 = vmul.f32 %v1731_v16, %v3963_v29  ;;  %v1709_v12 = vmul.f32 %v1701_v50, %v3963_v29 }
 0xbb8   :  { %v1749_v39 = vadd.f32 1e-05, %v1743_v22  ;;  %v4817_v0 = vsub.f32 %v4787_v18, %v1709_v12 }
 0xbba   :  { %3676 = vrsqrt.f32 %v1749_v39  ;;  %v1721_v8 = vmul.f32 %v4817_v0, %v4817_v0  ;;  %vm1779_vm4 = vweird.f32 %v1749_v39 }
 0xbbc   :  { %v1735_v19 = vsel %vm164_vm1, %v1721_v8, 0.0 }
 0xbbd   :  { %v1734_v60 = vpop.xlane.xlu1 %1733  ;;  %v1704_v54 = vpop.xlane.xlu2 %1703  ;;  %1736 = vadd.xlane.f32.xlu1 %v1735_v19 }
 0xbbe   :  { %v1744_v42 = vmul.f32 %v1734_v60, %v3963_v29  ;;  %v1710_v5 = vmul.f32 %v1704_v54, %v3963_v29 }
 0xbc0   :  { %v3677_v47 = vpop.eup %3676  ;;  %v1750_v24 = vadd.f32 1e-05, %v1744_v42  ;;  %v4825_v23 = vsub.f32 %v4800_v32, %v1710_v5 }
 0xbc1   :  { %v1774_v21 = vmul.f32 %v3677_v47, %v1749_v39  ;;  %vm1780_vm3 = vweird.f32 %v3677_v47 }
 0xbc2   :  { %3678 = vrsqrt.f32 %v1750_v24  ;;  %v1722_v25 = vmul.f32 %v4825_v23, %v4825_v23  ;;  %vm1781_vm5 = vmor %vm1779_vm4, %vm1780_vm3  ;;  %vm1789_vm7 = vweird.f32 %v1750_v24 }
 0xbc3   :  { %v1775_v35 = vmul.f32 %v3677_v47, %v1774_v21 }
 0xbc4   :  { %v1738_v10 = vsel %vm164_vm1, %v1722_v25, 0.0 }
 0xbc5   :  { %v1776_v62 = vmul.f32 0.5, %v1775_v35  ;;  %1739 = vadd.xlane.f32.xlu0 %v1738_v10 }
 0xbc7   :  { %v1777_v31 = vsub.f32 1.5, %v1776_v62 }
 0xbc8   :  { %v3679_v45 = vpop.eup %3678 }
 0xbc9   :  { %v1778_v44 = vmul.f32 %v3677_v47, %v1777_v31  ;;  %v1784_v17 = vmul.f32 %v3679_v45, %v1750_v24  ;;  %vm1790_vm6 = vweird.f32 %v3679_v45 }
 0xbca   :  { %vm1791_vm8 = vmor %vm1789_vm7, %vm1790_vm6 }
 0xbcb   :  { %v1785_v7 = vmul.f32 %v3679_v45, %v1784_v17  ;;  %v1782_v49 = vsel %vm1781_vm5, %v3677_v47, %v1778_v44 }
 0xbcc   :  { %v1815_v40 = vmul.f32 %v1782_v49, %v4783_v51 }
 0xbcd   :  { %v1786_v43 = vmul.f32 0.5, %v1785_v7 }
 0xbce   :  { %v1821_v26 = vmul.f32 %v1815_v40, %v4021_v27 }
 0xbcf   :  { %v1787_v46 = vsub.f32 1.5, %v1786_v43 }
 0xbd0   :  { %v1827_v37 = vadd.f32 %v1821_v26, %v4025_v36 }
 0xbd1   :  { %v1788_v2 = vmul.f32 %v3679_v45, %v1787_v46 }
 0xbd3   :  { %v1792_v63 = vsel %vm1791_vm8, %v3679_v45, %v1788_v2 }
 0xbd4   :  { %v1816_v52 = vmul.f32 %v1792_v63, %v4796_v59 }
 0xbd6   :  { %v1822_v15 = vmul.f32 %v1816_v52, %v4021_v27 }
 0xbd8   :  { %v1828_v14 = vadd.f32 %v1822_v15, %v4025_v36 }
 0xbda   :  { %v1832_v56 = vpack.c.bf16 %v1828_v14, %v1827_v37 }
 0xbdc   :  { %3340 = vmatmul.msk.bf16.gmra.mxu2 %vm164_vm1, %v1832_v56 }
 0xc1d   :  { %v1852_v3 = vpop.f32.mrf.mxu2 }
 0xc1e   :  { %v1853_v51 = vadd.f32 %v1852_v3, %v4045_v4 }
 0xc20   :  { %v1867_v13 = vpack.c.bf16 %v1853_v51, %v1853_v51 }
 0xc22   :  { %v1876_v59 = vunpack.c.l.b16 %v1867_v13 }
 0xc25   :  { %v1854_v30 = vpop.f32.mrf.mxu2 }
 0xc26   :  { %v1855_v38 = vadd.f32 %v1854_v30, %v4045_v4 }
 0xc28   :  { %v1868_v41 = vpack.c.bf16 %v1855_v38, %v1855_v38 }
 0xc2a   :  { %v1877_v16 = vunpack.c.l.b16 %v1868_v41 }
 0xc2c   :  { %v4839_v50 = vpack.c.b16 %v1877_v16, %v1876_v59 }
 0xc2e   :  { %1986 = vrot.lane.b32.xlu1 %v4839_v50, %s3841_s22 }
 0xc30   :  { %v1737_v22 = vpop.xlane.xlu1 %1736 }
 0xc31   :  { %v1745_v12 = vmul.f32 %v1737_v22, %v3963_v29 }
 0xc33   :  { %v1751_v39 = vadd.f32 1e-05, %v1745_v12 }
 0xc35   :  { %3680 = vrsqrt.f32 %v1751_v39  ;;  %vm1799_vm12 = vweird.f32 %v1751_v39 }
 0xc38   :  { %v1740_v8 = vpop.xlane.xlu0 %1739 }
 0xc39   :  { %v1746_v19 = vmul.f32 %v1740_v8, %v3963_v29 }
 0xc3b   :  { %v3681_v60 = vpop.eup %3680  ;;  %v1752_v54 = vadd.f32 1e-05, %v1746_v19 }
 0xc3c   :  { %v1794_v42 = vmul.f32 %v3681_v60, %v1751_v39  ;;  %vm1800_vm11 = vweird.f32 %v3681_v60 }
 0xc3d   :  { %3682 = vrsqrt.f32 %v1752_v54  ;;  %vm1801_vm13 = vmor %vm1799_vm12, %vm1800_vm11  ;;  %vm1809_vm3 = vweird.f32 %v1752_v54 }
 0xc3e   :  { %v1795_v5 = vmul.f32 %v3681_v60, %v1794_v42 }
 0xc40   :  { %v1796_v47 = vmul.f32 0.5, %v1795_v5 }
 0xc42   :  { %v1797_v24 = vsub.f32 1.5, %v1796_v47 }
 0xc43   :  { %v3683_v21 = vpop.eup %3682 }
 0xc44   :  { %v1798_v25 = vmul.f32 %v3681_v60, %v1797_v24  ;;  %v1804_v35 = vmul.f32 %v3683_v21, %v1752_v54  ;;  %vm1810_vm14 = vweird.f32 %v3683_v21 }
 0xc45   :  { %vm1811_vm4 = vmor %vm1809_vm3, %vm1810_vm14 }
 0xc46   :  { %v1805_v10 = vmul.f32 %v3683_v21, %v1804_v35  ;;  %v1802_v62 = vsel %vm1801_vm13, %v3681_v60, %v1798_v25 }
 0xc47   :  { %v1817_v44 = vmul.f32 %v1802_v62, %v4817_v0 }
 0xc48   :  { %v1806_v31 = vmul.f32 0.5, %v1805_v10 }
 0xc49   :  { %v1823_v43 = vmul.f32 %v1817_v44, %v4021_v27 }
 0xc4a   :  { %v1807_v45 = vsub.f32 1.5, %v1806_v31 }
 0xc4b   :  { %v1829_v40 = vadd.f32 %v1823_v43, %v4025_v36 }
 0xc4c   :  { %v1808_v17 = vmul.f32 %v3683_v21, %v1807_v45 }
 0xc4e   :  { %v1812_v7 = vsel %vm1811_vm4, %v3683_v21, %v1808_v17 }
 0xc4f   :  { %v1818_v49 = vmul.f32 %v1812_v7, %v4825_v23 }
 0xc51   :  { %v1824_v46 = vmul.f32 %v1818_v49, %v4021_v27 }
 0xc53   :  { %v1830_v2 = vadd.f32 %v1824_v46, %v4025_v36 }
 0xc55   :  { %v1833_v63 = vpack.c.bf16 %v1830_v2, %v1829_v40 }
 0xc57   :  { %3341 = vmatmul.msk.bf16.gmra.mxu2 %vm164_vm1, %v1833_v63 }
 0xc5f   :  { %v1857_v52 = vpop.f32.mrf.mxu2 }
 0xc60   :  { %v1858_v0 = vadd.f32 %v1857_v52, %v4045_v4 }
 0xc62   :  { %v1869_v26 = vpack.c.bf16 %v1858_v0, %v1858_v0 }
 0xc64   :  { %v1878_v15 = vunpack.c.l.b16 %v1869_v26 }
 0xc66   :  { %v4853_v37 = vpack.c.b16 %v1878_v15, %v1878_v15 }
 0xc67   :  { %v1859_v56 = vpop.f32.mrf.mxu2 }
 0xc68   :  { %1883 = vrot.lane.b32.xlu0 %v4853_v37, %s3842_s23  ;;  %1988 = vrot.lane.b32.xlu2 %v4853_v37, %s3841_s22  ;;  %v1860_v51 = vadd.f32 %v1859_v56, %v4045_v4 }
 0xc69   :  { %1984 = vrot.lane.b32.xlu1 %v4853_v37, %s3847_s1 }
 0xc6a   :  { %v1870_v13 = vpack.c.bf16 %v1860_v51, %v1860_v51 }
 0xc6c   :  { %v2345_v12 = vunpack.c.l.b16 %v1870_v13 }
 0xc70   :  { %1881 = vrot.lane.b32.xlu2 %v4839_v50, %s3842_s23  ;;  %1982 = vrot.lane.b32.xlu0 %v4839_v50, %s3847_s1 }
 0xc71   :  { %2093 = vrot.lane.b32.xlu1 %v4853_v37, %s3845_s26 }
 0xc78   :  { %2196 = vrot.lane.b32.xlu2 %v4839_v50, %s3844_s25  ;;  %2198 = vrot.lane.b32.xlu0 %v4853_v37, %s3844_s25 }
 0xc79   :  { %2087 = vrot.lane.b32.xlu1 %v4839_v50, %s3843_s24 }
 0xc80   :  { %2091 = vrot.lane.b32.xlu2 %v4839_v50, %s3845_s26  ;;  %2192 = vrot.lane.b32.xlu0 %v4839_v50, %s3848_s28 }
 0xc88   :  { %2194 = vrot.lane.b32.xlu0 %v4853_v37, %s3848_s28 }
 0xc90   :  { %2089 = vrot.lane.b32.xlu0 %v4853_v37, %s3843_s24 }
 0xca0   :  { %v1987_v23 = vpop.permute.xlu1 %1986 }
 0xca1   :  { %v1997_v14 = vsel %vm386_vm15, %v1987_v23, 0 }
 0xcc2   :  { %v1989_v27 = vpop.permute.xlu2 %1988 }
 0xcc3   :  { %v2000_v36 = vsel %vm386_vm15, %v1989_v27, 0 }
 0xcc4   :  { %2008 = vmatpush.bf16.xpose.msra.mxu3 %v2000_v36 }
 0xcca   :  { %v1882_v3 = vpop.permute.xlu2 %1881 }
 0xccb   :  { %v1892_v47 = vsel %vm386_vm15, %v1882_v3, 0 }
 0xccc   :  { %2009 = vmatpush.bf16.xpose.msra.mxu3 %v1997_v14 }
 0xcd2   :  { %v2197_v8 = vpop.permute.xlu2 %2196 }
 0xcd3   :  { %v2207_v45 = vsel %vm386_vm15, %v2197_v8, 0 }
 0xcda   :  { %v1862_v30 = vpop.f32.mrf.mxu2  ;;  %v1884_v59 = vpop.permute.xlu0 %1883 }
 0xcdb   :  { %v1985_v38 = vpop.permute.xlu1 %1984  ;;  %v1863_v41 = vadd.f32 %v1862_v30, %v4045_v4  ;;  %v1895_v16 = vsel %vm386_vm15, %v1884_v59, 0  ;;  %v2092_v35 = vpop.permute.xlu2 %2091 }
 0xcdc   :  { %1903 = vmatpush.bf16.xpose.msrb.mxu1 %v1895_v16  ;;  %v2102_v31 = vsel %vm386_vm15, %v2092_v35, 0 }
 0xcdd   :  { %v1871_v22 = vpack.c.bf16 %v1863_v41, %v1863_v41 }
 0xcdf   :  { %v2346_v39 = vunpack.c.l.b16 %v1871_v22 }
 0xce1   :  { %v4886_v19 = vpack.c.b16 %v2346_v39, %v2345_v12 }
 0xce2   :  { %v1864_v60 = vpop.f32.mrf.mxu2  ;;  %v1983_v5 = vpop.permute.xlu0 %1982 }
 0xce3   :  { %v2094_v54 = vpop.permute.xlu1 %2093  ;;  %v1865_v42 = vadd.f32 %v1864_v60, %v4045_v4  ;;  %2556 = vrot.lane.b32.xlu2 %v4886_v19, %s3843_s24  ;;  %2350 = vrot.lane.b32.xlu0 %v4886_v19, %s3842_s23 }
 0xce4   :  { %v2105_v24 = vsel %vm386_vm15, %v2094_v54, 0  ;;  %2455 = vrot.lane.b32.xlu1 %v4886_v19, %s3841_s22  ;;  %3346 = vmatmul.msk.bf16.vlgmr.msra.gmra.mxu3 %vm386_vm15, %v1983_v5 }
 0xce5   :  { %v1872_v21 = vpack.c.bf16 %v1865_v42, %v1865_v42  ;;  %1904 = vmatpush.bf16.xpose.msrb.mxu1 %v1892_v47 }
 0xce7   :  { %v2347_v4 = vunpack.c.l.b16 %v1872_v21 }
 0xce9   :  { %v4898_v25 = vpack.c.b16 %v2347_v4, %v2347_v4 }
 0xcea   :  { %v2199_v10 = vpop.permute.xlu0 %2198 }
 0xceb   :  { %2457 = vrot.lane.b32.xlu2 %v4898_v25, %s3841_s22  ;;  %2057 = vrot.lane.b32.xlu0 %v4853_v37, %s3849_s30  ;;  %v2210_v62 = vsel %vm386_vm15, %v2199_v10, 0  ;;  %v2088_v17 = vpop.permute.xlu1 %2087 }
 0xcec   :  { %2451 = vrot.lane.b32.xlu1 %v4886_v19, %s3847_s1  ;;  %3342 = vmatmul.msk.bf16.vlgmr.msrb.gmra.mxu1 %vm386_vm15, %v4839_v50 }
 0xced   :  { %2113 = vmatpush.bf16.xpose.msra.mxu1 %v2105_v24  ;;  %2218 = vmatpush.bf16.xpose.msrb.mxu3 %v2210_v62 }
 0xcf2   :  { %v2193_v44 = vpop.permute.xlu0 %2192 }
 0xcf3   :  { %2352 = vrot.lane.b32.xlu2 %v4898_v25, %s3842_s23  ;;  %2665 = vrot.lane.b32.xlu0 %v4886_v19, %s3844_s25 }
 0xcf4   :  { %2661 = vrot.lane.b32.xlu1 %v4886_v19, %s3848_s28  ;;  %3347 = vmatmul.msk.bf16.gmra.mxu3 %vm386_vm15, %v1985_v38 }
 0xcf5   :  { %2114 = vmatpush.bf16.xpose.msra.mxu1 %v2102_v31  ;;  %2219 = vmatpush.bf16.xpose.msrb.mxu3 %v2207_v45 }
 0xcfa   :  { %v2195_v7 = vpop.permute.xlu0 %2194 }
 0xcfb   :  { %2453 = vrot.lane.b32.xlu2 %v4898_v25, %s3847_s1  ;;  %2560 = vrot.lane.b32.xlu0 %v4886_v19, %s3845_s26 }
 0xcfc   :  { %2667 = vrot.lane.b32.xlu1 %v4898_v25, %s3844_s25  ;;  %3343 = vmatmul.msk.bf16.gmra.mxu1 %vm386_vm15, %v4853_v37 }
 0xd02   :  { %v2090_v49 = vpop.permute.xlu0 %2089 }
 0xd03   :  { %2055 = vrot.lane.b32.xlu2 %v4839_v50, %s3849_s30  ;;  %2162 = vrot.lane.b32.xlu0 %v4853_v37, %s3851_s12 }
 0xd04   :  { %1952 = vrot.lane.b32.xlu1 %v4853_v37, %s3846_s27  ;;  %3354 = vmatmul.msk.bf16.vlgmr.msrb.gmra.mxu3 %vm386_vm15, %v2193_v44 }
 0xd0b   :  { %1950 = vrot.lane.b32.xlu2 %v4839_v50, %s3846_s27 }
 0xd0c   :  { %2267 = vrot.lane.b32.xlu1 %v4853_v37, %s3850_s11  ;;  %3350 = vmatmul.msk.bf16.vlgmr.msra.gmra.mxu1 %vm386_vm15, %v2088_v17 }
 0xd13   :  { %2265 = vrot.lane.b32.xlu2 %v4839_v50, %s3850_s11 }
 0xd14   :  { %3355 = vmatmul.msk.bf16.gmra.mxu3 %vm386_vm15, %v2195_v7 }
 0xd1b   :  { %2160 = vrot.lane.b32.xlu2 %v4839_v50, %s3851_s12 }
 0xd1c   :  { %3351 = vmatmul.msk.bf16.gmra.mxu1 %vm386_vm15, %v2090_v49 }
 0xd23   :  { %2562 = vrot.lane.b32.xlu2 %v4898_v25, %s3845_s26 }
 0xd2b   :  { %2526 = vrot.lane.b32.xlu2 %v4898_v25, %s3849_s30 }
 0xd3d   :  { %v4948_v43 = vpop.permute.xlu2 %2556 }
 0xd45   :  { %v2458_v46 = vpop.permute.xlu2 %2457 }
 0xd46   :  { %v2469_v40 = vsel %vm386_vm15, %v2458_v46, 0 }
 0xd47   :  { %2477 = vmatpush.bf16.xpose.msra.mxu3 %v2469_v40 }
 0xd4d   :  { %v2353_v2 = vpop.permute.xlu2 %2352 }
 0xd4e   :  { %v2364_v63 = vsel %vm386_vm15, %v2353_v2, 0 }
 0xd4f   :  { %2372 = vmatpush.bf16.xpose.msrb.mxu1 %v2364_v63 }
 0xd55   :  { %v2454_v52 = vpop.permute.xlu2 %2453  ;;  %v2351_v50 = vpop.permute.xlu0 %2350 }
 0xd56   :  { %v2456_v0 = vpop.permute.xlu1 %2455  ;;  %v2361_v26 = vsel %vm386_vm15, %v2351_v50, 0 }
 0xd57   :  { %v2466_v15 = vsel %vm386_vm15, %v2456_v0, 0  ;;  %2373 = vmatpush.bf16.xpose.msrb.mxu1 %v2361_v26  ;;  %v3809_v26 = vld [vmem:[%s5437_s3 + $0x8] sm:$0xff] }
 0xd58   :  { %2478 = vmatpush.bf16.xpose.msra.mxu3 %v2466_v15 }
 0xd5d   :  { %v2056_v37 = vpop.permute.xlu2 %2055  ;;  %v2058_v27 = vpop.permute.xlu0 %2057 }
 0xd5e   :  { %v2452_v36 = vpop.permute.xlu1 %2451  ;;  %v2067_v23 = vsel %vm464_vm2, %v2058_v27, 0  ;;  %3358 = vmatmul.msk.bf16.vlgmr.msrb.gmra.mxu1 %vm386_vm15, %v4886_v19  ;;  %v3810_v27 = vld [vmem:[%s5437_s3] sm:$0xff] }
 0xd5f   :  { %3362 = vmatmul.msk.bf16.vlgmr.msra.gmra.mxu3 %vm386_vm15, %v2452_v36  ;;  %2075 = vmatpush.bf16.msra.mxu2 %v2067_v23 }
 0xd63   :  { %2076 = vmatpush.bf16.msra.mxu2 %v2056_v37 }
 0xd65   :  { %v1951_v14 = vpop.permute.xlu2 %1950  ;;  %v2666_v56 = vpop.permute.xlu0 %2665 }
 0xd66   :  { %v2662_v3 = vpop.permute.xlu1 %2661  ;;  %v2676_v4 = vsel %vm386_vm15, %v2666_v56, 0 }
 0xd67   :  { %v2011_v51 = vpop.f32.mrf.mxu3 }
 0xd68   :  { %v4959_v30 = vadd.f32 %v2011_v51, %v4161_v55 }
 0xd69   :  { %v1906_v13 = vpop.f32.mrf.mxu1 }
 0xd6a   :  { %v4962_v38 = vadd.f32 %v1906_v13, %v4161_v55  ;;  %v2020_v41 = vsel %vm417_vm9, %v4959_v30, -inf }
 0xd6b   :  { %2021 = vmax.xlane.f32.xlu1 %v2020_v41 }
 0xd6c   :  { %v1915_v59 = vsel %vm417_vm9, %v4962_v38, -inf }
 0xd6d   :  { %1916 = vmax.xlane.f32.xlu2 %v1915_v59  ;;  %v2266_v16 = vpop.permute.xlu2 %2265  ;;  %v2561_v39 = vpop.permute.xlu0 %2560 }
 0xd6e   :  { %v2668_v22 = vpop.permute.xlu1 %2667  ;;  %3359 = vmatmul.msk.bf16.gmra.mxu1 %vm386_vm15, %v4898_v25  ;;  %v2571_v50 = vsel %vm386_vm15, %v2561_v39, 0 }
 0xd6f   :  { %v2679_v12 = vsel %vm386_vm15, %v2668_v22, 0  ;;  %v2013_v8 = vpop.f32.mrf.mxu3  ;;  %3363 = vmatmul.msk.bf16.gmra.mxu3 %vm386_vm15, %v2454_v52 }
 0xd70   :  { %v4973_v60 = vadd.f32 %v2013_v8, %v4161_v55  ;;  %2687 = vmatpush.bf16.xpose.msrb.mxu3 %v2679_v12 }
 0xd71   :  { %v1908_v54 = vpop.f32.mrf.mxu1 }
 0xd72   :  { %v4976_v42 = vadd.f32 %v1908_v54, %v4161_v55  ;;  %v2023_v5 = vsel %vm417_vm9, %v4973_v60, -inf }
 0xd73   :  { %2024 = vmax.xlane.f32.xlu0 %v2023_v5 }
 0xd74   :  { %v1918_v47 = vsel %vm417_vm9, %v4976_v42, -inf }
 0xd75   :  { %1919 = vmax.xlane.f32.xlu1 %v1918_v47  ;;  %v2161_v24 = vpop.permute.xlu2 %2160  ;;  %v2163_v31 = vpop.permute.xlu0 %2162 }
 0xd76   :  { %v1953_v21 = vpop.permute.xlu1 %1952  ;;  %v2172_v7 = vsel %vm464_vm2, %v2163_v31, 0 }
 0xd77   :  { %v1962_v35 = vsel %vm464_vm2, %v1953_v21, 0  ;;  %v2016_v10 = vpop.f32.mrf.mxu3 }
 0xd78   :  { %v4985_v62 = vadd.f32 %v2016_v10, %v4161_v55  ;;  %1970 = vmatpush.bf16.msrb.mxu0 %v1962_v35  ;;  %2688 = vmatpush.bf16.xpose.msrb.mxu3 %v2676_v4 }
 0xd79   :  { %v1911_v45 = vpop.f32.mrf.mxu1 }
 0xd7a   :  { %v4989_v44 = vadd.f32 %v1911_v45, %v4161_v55  ;;  %v2026_v17 = vsel %vm417_vm9, %v4985_v62, -inf }
 0xd7b   :  { %2027 = vmax.xlane.f32.xlu2 %v2026_v17 }
 0xd7c   :  { %1971 = vmatpush.bf16.msrb.mxu0 %v1951_v14  ;;  %v1921_v49 = vsel %vm417_vm9, %v4989_v44, -inf }
 0xd7d   :  { %1922 = vmax.xlane.f32.xlu0 %v1921_v49  ;;  %v2563_v46 = vpop.permute.xlu2 %2562 }
 0xd7e   :  { %v2574_v40 = vsel %vm386_vm15, %v2563_v46, 0  ;;  %v2268_v2 = vpop.permute.xlu1 %2267 }
 0xd7f   :  { %v2018_v63 = vpop.f32.mrf.mxu3  ;;  %3370 = vmatmul.msk.bf16.vlgmr.msrb.gmra.mxu3 %vm386_vm15, %v2662_v3  ;;  %2582 = vmatpush.bf16.xpose.msra.mxu1 %v2574_v40 }
 0xd80   :  { %3103 = vmatpush.bf16.msra.mxu3 %v4706_v33  ;;  %2180 = vmatpush.bf16.msra.mxu0 %v2172_v7  ;;  %v2277_v33 = vsel %vm464_vm2, %v2268_v2, 0 }
 0xd81   :  { %2285 = vmatpush.bf16.msrb.mxu2 %v2277_v33  ;;  %v1913_v52 = vpop.f32.mrf.mxu1 }
 0xd84   :  { %3104 = vmatpush.bf16.msra.mxu3 %v4712_v1  ;;  %2181 = vmatpush.bf16.msra.mxu0 %v2161_v24 }
 0xd85   :  { %2286 = vmatpush.bf16.msrb.mxu2 %v2266_v16 }
 0xd87   :  { %v2221_v0 = vpop.f32.mrf.mxu3  ;;  %2583 = vmatpush.bf16.xpose.msra.mxu1 %v2571_v50 }
 0xd88   :  { %3105 = vmatpush.bf16.msra.mxu3 %v4718_v9  ;;  %v5004_v1 = vadd.f32 %v2221_v0, %v4161_v55 }
 0xd89   :  { %v2116_v15 = vpop.f32.mrf.mxu1 }
 0xd8a   :  { %v5010_v37 = vadd.f32 %v2116_v15, %v4161_v55  ;;  %v2230_v9 = vsel %vm417_vm9, %v5004_v1, -inf }
 0xd8b   :  { %2231 = vmax.xlane.f32.xlu1 %v2230_v9 }
 0xd8c   :  { %3106 = vmatpush.bf16.msra.mxu3 %v4727_v48  ;;  %v2125_v48 = vsel %vm417_vm9, %v5010_v37, -inf }
 0xd8d   :  { %2126 = vmax.xlane.f32.xlu0 %v2125_v48  ;;  %v5076_v48 = vpop.permute.xlu2 %2526 }
 0xd8e   :  { %3366 = vmatmul.msk.bf16.vlgmr.msra.gmra.mxu1 %vm386_vm15, %v4948_v43 }
 0xd8f   :  { %2829 = vmatpush.bf16.msrb.mxu1 %v3809_v26  ;;  %v2223_v36 = vpop.f32.mrf.mxu3 }
 0xd90   :  { %v5022_v23 = vadd.f32 %v2223_v36, %v4161_v55 }
 0xd91   :  { %v2118_v14 = vpop.f32.mrf.mxu1 }
 0xd92   :  { %v5025_v56 = vadd.f32 %v2118_v14, %v4161_v55  ;;  %v2233_v3 = vsel %vm417_vm9, %v5022_v23, -inf }
 0xd93   :  { %2830 = vmatpush.bf16.msrb.mxu1 %v3810_v27  ;;  %2234 = vmax.xlane.f32.xlu2 %v2233_v3 }
 0xd94   :  { %v2128_v51 = vsel %vm417_vm9, %v5025_v56, -inf }
 0xd95   :  { %2129 = vmax.xlane.f32.xlu1 %v2128_v51 }
 0xd97   :  { %v2226_v13 = vpop.f32.mrf.mxu3 }
 0xd98   :  { %v5037_v22 = vadd.f32 %v2226_v13, %v4161_v55 }
 0xd99   :  { %v2121_v41 = vpop.f32.mrf.mxu1 }
 0xd9a   :  { %v5032_v43 = vadd.f32 %v2121_v41, %v4161_v55  ;;  %v2236_v39 = vsel %vm417_vm9, %v5037_v22, -inf }
 0xd9c   :  { %v2131_v59 = vsel %vm417_vm9, %v5032_v43, -inf }
 0xd9d   :  { %2132 = vmax.xlane.f32.xlu2 %v2131_v59 }
 0xd9f   :  { %v2228_v16 = vpop.f32.mrf.mxu3 }
 0xda1   :  { %v2123_v12 = vpop.f32.mrf.mxu1 }
 0xda5   :  { %2237 = vmax.xlane.f32.xlu2 %v2236_v39 }
 0xddb   :  { %v2375_v8 = vpop.f32.mrf.mxu1 }
 0xddc   :  { %v5042_v54 = vadd.f32 %v2375_v8, %v4161_v55 }
 0xdde   :  { %v2384_v5 = vsel %vm417_vm9, %v5042_v54, -inf  ;;  %v2022_v47 = vpop.xlane.xlu1 %2021 }
 0xddf   :  { %2385 = vmax.xlane.f32.xlu0 %v2384_v5  ;;  %v2029_v39 = vsub.f32 %v4959_v30, %v2022_v47 }
 0xde0   :  { %v1917_v27 = vpop.xlane.xlu2 %1916 }
 0xde1   :  { %v1924_v3 = vsub.f32 %v4962_v38, %v1917_v27 }
 0xde2   :  { %v2480_v24 = vpop.f32.mrf.mxu3 }
 0xde3   :  { %v5047_v21 = vadd.f32 %v2480_v24, %v4161_v55  ;;  %v2377_v4 = vpop.f32.mrf.mxu1  ;;  %v1927_v41 = vmul.f32 1.442695, %v1924_v3 }
 0xde4   :  { %v5053_v45 = vadd.f32 %v2377_v4, %v4161_v55 }
 0xde5   :  { %v2489_v35 = vsel %vm417_vm9, %v5047_v21, -inf }
 0xde6   :  { %v2387_v33 = vsel %vm417_vm9, %v5053_v45, -inf  ;;  %v2025_v59 = vpop.xlane.xlu0 %2024 }
 0xde7   :  { %2490 = vmax.xlane.f32.xlu0 %v2489_v35  ;;  %v2030_v38 = vsub.f32 %v4973_v60, %v2025_v59  ;;  %v2032_v35 = vmul.f32 1.442695, %v2029_v39 }
 0xde8   :  { %v1920_v10 = vpop.xlane.xlu1 %1919 }
 0xde9   :  { %v1925_v31 = vsub.f32 %v4976_v42, %v1920_v10  ;;  %v2034_v10 = vmul.f32 1.442695, %v2030_v38 }
 0xdea   :  { %v2482_v17 = vpop.f32.mrf.mxu3 }
 0xdeb   :  { %v1929_v7 = vmul.f32 1.442695, %v1925_v31  ;;  %v5056_v49 = vadd.f32 %v2482_v17, %v4161_v55  ;;  %v2380_v46 = vpop.f32.mrf.mxu1 }
 0xdec   :  { %v5059_v40 = vadd.f32 %v2380_v46, %v4161_v55 }
 0xded   :  { %3684 = vpow2.f32 %v1929_v7  ;;  %v2492_v2 = vsel %vm417_vm9, %v5056_v49, -inf }
 0xdee   :  { %2493 = vmax.xlane.f32.xlu1 %v2492_v2  ;;  %v2390_v42 = vsel %vm417_vm9, %v5059_v40, -inf  ;;  %3686 = vpow2.f32 %v1927_v41  ;;  %v2028_v31 = vpop.xlane.xlu2 %2027 }
 0xdef   :  { %2391 = vmax.xlane.f32.xlu2 %v2390_v42  ;;  %2388 = vmax.xlane.f32.xlu0 %v2387_v33  ;;  %3688 = vpow2.f32 %v2032_v35  ;;  %v2031_v33 = vsub.f32 %v4985_v62, %v2028_v31 }
 0xdf0   :  { %3690 = vpow2.f32 %v2034_v10 }
 0xdf2   :  { %v2485_v63 = vpop.f32.mrf.mxu3 }
 0xdf3   :  { %v5067_v52 = vpop.eup %3684  ;;  %v5070_v50 = vadd.f32 %v2485_v63, %v4161_v55  ;;  %v2382_v0 = vpop.f32.mrf.mxu1 }
 0xdf4   :  { %v1936_v26 = vsel %vm417_vm9, %v5067_v52, 0.0  ;;  %v5101_v47 = vpop.eup %3686 }
 0xdf5   :  { %v2495_v15 = vsel %vm417_vm9, %v5070_v50, -inf  ;;  %v1933_v17 = vsel %vm417_vm9, %v5101_v47, 0.0  ;;  %v5107_v46 = vpop.eup %3688 }
 0xdf6   :  { %v5109_v2 = vpop.eup %3690  ;;  %v2038_v63 = vsel %vm417_vm9, %v5107_v46, 0.0 }
 0xdf7   :  { %1937 = vadd.xlane.f32.xlu2 %v1936_v26  ;;  %2496 = vmax.xlane.f32.xlu0 %v2495_v15  ;;  %v2041_v0 = vsel %vm417_vm9, %v5109_v2, 0.0  ;;  %v2036_v15 = vmul.f32 1.442695, %v2031_v33 }
 0xdf9   :  { %3692 = vpow2.f32 %v2036_v15 }
 0xdfa   :  { %v2487_v9 = vpop.f32.mrf.mxu3 }
 0xdfe   :  { %v2232_v42 = vpop.xlane.xlu1 %2231 }
 0xdff   :  { %v2239_v33 = vsub.f32 %v5004_v1, %v2232_v42 }
 0xe02   :  { %v2690_v51 = vpop.f32.mrf.mxu3 }
 0xe03   :  { %v5087_v16 = vadd.f32 %v2690_v51, %v4161_v55  ;;  %v5117_v51 = vpop.eup %3692 }
 0xe05   :  { %v2699_v24 = vsel %vm417_vm9, %v5087_v16, -inf }
 0xe06   :  { %v2235_v7 = vpop.xlane.xlu2 %2234 }
 0xe07   :  { %v2240_v10 = vsub.f32 %v5022_v23, %v2235_v7 }
 0xe08   :  { %v2130_v9 = vpop.xlane.xlu1 %2129 }
 0xe09   :  { %v2135_v27 = vsub.f32 %v5025_v56, %v2130_v9 }
 0xe0a   :  { %v2692_v4 = vpop.f32.mrf.mxu3 }
 0xe0b   :  { %v2585_v36 = vpop.f32.mrf.mxu1  ;;  %v5099_v30 = vadd.f32 %v2692_v4, %v4161_v55 }
 0xe0c   :  { %v5079_v14 = vadd.f32 %v2585_v36, %v4161_v55  ;;  %v2139_v36 = vmul.f32 1.442695, %v2135_v27 }
 0xe0d   :  { %v2702_v60 = vsel %vm417_vm9, %v5099_v30, -inf }
 0xe0e   :  { %v2594_v13 = vsel %vm417_vm9, %v5079_v14, -inf  ;;  %3694 = vpow2.f32 %v2139_v36 }
 0xe0f   :  { %2419 = vrot.lane.b32.xlu2 %v4886_v19, %s3846_s27  ;;  %2595 = vmax.xlane.f32.xlu1 %v2594_v13  ;;  %v2044_v13 = vsel %vm417_vm9, %v5117_v51, 0.0 }
 0xe10   :  { %v2133_v26 = vpop.xlane.xlu2 %2132 }
 0xe11   :  { %v2136_v1 = vsub.f32 %v5032_v43, %v2133_v26 }
 0xe13   :  { %v2587_v12 = vpop.f32.mrf.mxu1  ;;  %v2141_v27 = vmul.f32 1.442695, %v2136_v1 }
 0xe14   :  { %v5091_v8 = vadd.f32 %v2587_v12, %v4161_v55  ;;  %v5124_v59 = vpop.eup %3694  ;;  %v1923_v12 = vpop.xlane.xlu0 %1922 }
 0xe15   :  { %v2146_v56 = vsel %vm417_vm9, %v5124_v59, 0.0  ;;  %v1926_v35 = vsub.f32 %v4989_v44, %v1923_v12 }
 0xe16   :  { %v2597_v5 = vsel %vm417_vm9, %v5091_v8, -inf }
 0xe17   :  { %2598 = vmax.xlane.f32.xlu0 %v2597_v5  ;;  %2700 = vmax.xlane.f32.xlu1 %v2699_v24  ;;  %v1931_v31 = vmul.f32 1.442695, %v1926_v35 }
 0xe18   :  { %v2238_v3 = vpop.xlane.xlu2 %2237 }
 0xe19   :  { %v2241_v62 = vsub.f32 %v5037_v22, %v2238_v3 }
 0xe1b   :  { %v2246_v41 = vmul.f32 1.442695, %v2241_v62 }
 0xe1c   :  { %v2127_v38 = vpop.xlane.xlu0 %2126 }
 0xe1d   :  { %3696 = vpow2.f32 %v2246_v41  ;;  %v2134_v24 = vsub.f32 %v5010_v37, %v2127_v38 }
 0xe1f   :  { %2703 = vmax.xlane.f32.xlu0 %v2702_v60  ;;  %1934 = vadd.xlane.f32.xlu1 %v1933_v17  ;;  %v2137_v4 = vmul.f32 1.442695, %v2134_v24  ;;  %v2244_v17 = vmul.f32 1.442695, %v2240_v10 }
 0xe21   :  { %3698 = vpow2.f32 %v2137_v4 }
 0xe22   :  { %3700 = vpow2.f32 %v1931_v31 }
 0xe23   :  { %v5130_v22 = vpop.eup %3696  ;;  %3702 = vpow2.f32 %v2244_v17 }
 0xe24   :  { %v2254_v39 = vsel %vm417_vm9, %v5130_v22, 0.0 }
 0xe27   :  { %2039 = vadd.xlane.f32.xlu0 %v2038_v63  ;;  %2042 = vadd.xlane.f32.xlu1 %v2041_v0  ;;  %v5140_v63 = vpop.eup %3698  ;;  %v2242_v0 = vmul.f32 1.442695, %v2239_v33 }
 0xe28   :  { %v2143_v44 = vsel %vm417_vm9, %v5140_v63, 0.0  ;;  %v5145_v23 = vpop.eup %3700 }
 0xe29   :  { %3704 = vpow2.f32 %v2242_v0  ;;  %v5148_v42 = vpop.eup %3702  ;;  %v1939_v9 = vsel %vm417_vm9, %v5145_v23, 0.0 }
 0xe2a   :  { %v2251_v36 = vsel %vm417_vm9, %v5148_v42, 0.0 }
 0xe2f   :  { %v5155_v3 = vpop.eup %3704 }
 0xe30   :  { %v2248_v41 = vsel %vm417_vm9, %v5155_v3, 0.0 }
 0xe38   :  { %2045 = vadd.xlane.f32.xlu2 %v2044_v13 }
 0xe3b   :  { %2421 = vrot.lane.b32.xlu0 %v4898_v25, %s3846_s27 }
 0xe40   :  { %2147 = vadd.xlane.f32.xlu2 %v2146_v56  ;;  %2524 = vrot.lane.b32.xlu1 %v4886_v19, %s3849_s30 }
 0xe48   :  { %2255 = vadd.xlane.f32.xlu2 %v2254_v39 }
 0xe52   :  { %v2386_v5 = vpop.xlane.xlu0 %2385 }
 0xe53   :  { %v2393_v37 = vsub.f32 %v5042_v54, %v2386_v5 }
 0xe55   :  { %v2396_v15 = vmul.f32 1.442695, %v2393_v37 }
 0xe57   :  { %3706 = vpow2.f32 %v2396_v15 }
 0xe58   :  { %3708 = vpow2.f32 %v2141_v27 }
 0xe5a   :  { %v2491_v60 = vpop.xlane.xlu0 %2490 }
 0xe5b   :  { %v2498_v54 = vsub.f32 %v5047_v21, %v2491_v60 }
 0xe5d   :  { %v2501_v62 = vmul.f32 1.442695, %v2498_v54  ;;  %v5158_v13 = vpop.eup %3706 }
 0xe5e   :  { %v2402_v39 = vsel %vm417_vm9, %v5158_v13, 0.0  ;;  %v5165_v5 = vpop.eup %3708 }
 0xe5f   :  { %3710 = vpow2.f32 %v2501_v62 }
 0xe60   :  { %2736 = vrot.lane.b32.xlu2 %v4898_v25, %s3850_s11 }
 0xe61   :  { %v2494_v38 = vpop.xlane.xlu1 %2493 }
 0xe62   :  { %v2389_v7 = vpop.xlane.xlu0 %2388  ;;  %v2392_v56 = vpop.xlane.xlu2 %2391  ;;  %v2499_v4 = vsub.f32 %v5056_v49, %v2494_v38 }
 0xe63   :  { %v2394_v43 = vsub.f32 %v5053_v45, %v2389_v7  ;;  %v2395_v45 = vsub.f32 %v5059_v40, %v2392_v56 }
 0xe64   :  { %v2503_v31 = vmul.f32 1.442695, %v2499_v4 }
 0xe65   :  { %2144 = vadd.xlane.f32.xlu0 %v2143_v44  ;;  %v2398_v12 = vmul.f32 1.442695, %v2394_v43  ;;  %v5169_v35 = vpop.eup %3710  ;;  %v2400_v10 = vmul.f32 1.442695, %v2395_v45 }
 0xe66   :  { %v2507_v60 = vsel %vm417_vm9, %v5169_v35, 0.0 }
 0xe67   :  { %3712 = vpow2.f32 %v2398_v12 }
 0xe6a   :  { %1940 = vadd.xlane.f32.xlu1 %v1939_v9  ;;  %v2497_v26 = vpop.xlane.xlu0 %2496 }
 0xe6b   :  { %v2500_v21 = vsub.f32 %v5070_v50, %v2497_v26  ;;  %v2149_v50 = vsel %vm417_vm9, %v5165_v5, 0.0  ;;  %v1938_v26 = vpop.xlane.xlu2 %1937 }
 0xe6d   :  { %2252 = vadd.xlane.f32.xlu0 %v2251_v36  ;;  %v2505_v24 = vmul.f32 1.442695, %v2500_v21  ;;  %v5175_v17 = vpop.eup %3712 }
 0xe6e   :  { %v2405_v49 = vsel %vm417_vm9, %v5175_v17, 0.0 }
 0xe6f   :  { %3714 = vpow2.f32 %v2505_v24 }
 0xe70   :  { %3716 = vpow2.f32 %v2400_v10 }
 0xe71   :  { %3718 = vpow2.f32 %v2503_v31 }
 0xe72   :  { %2249 = vadd.xlane.f32.xlu1 %v2248_v41 }
 0xe75   :  { %2403 = vadd.xlane.f32.xlu0 %v2402_v39  ;;  %v5177_v40 = vpop.eup %3714 }
 0xe76   :  { %v2513_v0 = vsel %vm417_vm9, %v5177_v40, 0.0  ;;  %v5184_v44 = vpop.eup %3716 }
 0xe77   :  { %v5186_v15 = vpop.eup %3718  ;;  %v2408_v1 = vsel %vm417_vm9, %v5184_v44, 0.0 }
 0xe78   :  { %v2510_v9 = vsel %vm417_vm9, %v5186_v15, 0.0 }
 0xe7a   :  { %2150 = vadd.xlane.f32.xlu1 %v2149_v50 }
 0xe7d   :  { %2508 = vadd.xlane.f32.xlu0 %v2507_v60 }
 0xe82   :  { %v2596_v33 = vpop.xlane.xlu1 %2595  ;;  %2406 = vadd.xlane.f32.xlu1 %v2405_v49 }
 0xe83   :  { %v2603_v37 = vsub.f32 %v5079_v14, %v2596_v33 }
 0xe85   :  { %v2606_v7 = vmul.f32 1.442695, %v2603_v37  ;;  %2514 = vadd.xlane.f32.xlu0 %v2513_v0 }
 0xe87   :  { %3720 = vpow2.f32 %v2606_v7  ;;  %v2420_v7 = vpop.permute.xlu2 %2419 }
 0xe89   :  { %2409 = vadd.xlane.f32.xlu2 %v2408_v1 }
 0xe8a   :  { %v2701_v54 = vpop.xlane.xlu1 %2700  ;;  %2511 = vadd.xlane.f32.xlu1 %v2510_v9  ;;  %v2599_v14 = vpop.xlane.xlu0 %2598 }
 0xe8b   :  { %v2708_v27 = vsub.f32 %v5087_v16, %v2701_v54  ;;  %v2604_v43 = vsub.f32 %v5091_v8, %v2599_v14  ;;  %v2536_v54 = vsel %vm464_vm2, %v5076_v48, 0 }
 0xe8d   :  { %v5193_v36 = vpop.eup %3720  ;;  %v2711_v62 = vmul.f32 1.442695, %v2708_v27  ;;  %v2608_v21 = vmul.f32 1.442695, %v2604_v43 }
 0xe8e   :  { %v2612_v41 = vsel %vm417_vm9, %v5193_v36, 0.0 }
 0xe8f   :  { %3722 = vpow2.f32 %v2711_v62  ;;  %2613 = vadd.xlane.f32.xlu0 %v2612_v41 }
 0xe90   :  { %3724 = vrcp.f32 %v1938_v26 }
 0xe92   :  { %v1935_v56 = vpop.xlane.xlu1 %1934  ;;  %v2704_v12 = vpop.xlane.xlu0 %2703 }
 0xe93   :  { %3726 = vrcp.f32 %v1935_v56  ;;  %v2709_v39 = vsub.f32 %v5099_v30, %v2704_v12 }
 0xe94   :  { %3728 = vpow2.f32 %v2608_v21 }
 0xe95   :  { %v5199_v38 = vpop.eup %3722  ;;  %v2713_v16 = vmul.f32 1.442695, %v2709_v39 }
 0xe96   :  { %v2717_v8 = vsel %vm417_vm9, %v5199_v38, 0.0  ;;  %v3725_v45 = vpop.eup %3724 }
 0xe97   :  { %3730 = vpow2.f32 %v2713_v16  ;;  %2718 = vadd.xlane.f32.xlu1 %v2717_v8  ;;  %v1946_v4 = vmul.f32 %v3725_v45, %v5067_v52 }
 0xe99   :  { %v3727_v24 = vpop.eup %3726 }
 0xe9a   :  { %v1945_v50 = vmul.f32 %v3727_v24, %v5101_v47  ;;  %v2043_v10 = vpop.xlane.xlu1 %2042  ;;  %v2040_v31 = vpop.xlane.xlu0 %2039 }
 0xe9b   :  { %v5205_v60 = vpop.eup %3728  ;;  %3732 = vrcp.f32 %v2043_v10 }
 0xe9c   :  { %v1948_v30 = vpack.c.bf16 %v1946_v4, %v1945_v50  ;;  %3734 = vrcp.f32 %v2040_v31  ;;  %v2615_v33 = vsel %vm417_vm9, %v5205_v60, 0.0 }
 0xe9d   :  { %v5207_v49 = vpop.eup %3730 }
 0xe9e   :  { %3344 = vmatmul.msk.bf16.vlgmr.msrb.gmra.mxu0 %vm417_vm9, %v1948_v30  ;;  %v2720_v37 = vsel %vm417_vm9, %v5207_v49, 0.0 }
 0xe9f   :  { %2616 = vadd.xlane.f32.xlu1 %v2615_v33  ;;  %2721 = vadd.xlane.f32.xlu0 %v2720_v37 }
 0xea1   :  { %v3733_v52 = vpop.eup %3732  ;;  %2629 = vrot.lane.b32.xlu2 %v4886_v19, %s3851_s12 }
 0xea2   :  { %v3735_v47 = vpop.eup %3734  ;;  %v2051_v0 = vmul.f32 %v3733_v52, %v5109_v2 }
 0xea3   :  { %v2050_v1 = vmul.f32 %v3735_v47, %v5107_v46 }
 0xea5   :  { %v2053_v9 = vpack.c.bf16 %v2051_v0, %v2050_v1 }
 0xea7   :  { %3348 = vmatmul.msk.bf16.vlgmr.msra.gmra.mxu2 %vm417_vm9, %v2053_v9 }
 0xea8   :  { %2544 = vmatpush.bf16.msra.mxu2 %v2536_v54 }
 0xea9   :  { %2663 = vrot.lane.b32.xlu2 %v4898_v25, %s3848_s28 }
 0xeab   :  { %v2046_v14 = vpop.xlane.xlu2 %2045 }
 0xeac   :  { %3736 = vrcp.f32 %v2046_v14 }
 0xead   :  { %v2422_v27 = vpop.permute.xlu0 %2421 }
 0xeae   :  { %v2431_v62 = vsel %vm464_vm2, %v2422_v27, 0 }
 0xeaf   :  { %2439 = vmatpush.bf16.msrb.mxu0 %v2431_v62 }
 0xeb2   :  { %v3737_v2 = vpop.eup %3736  ;;  %v2525_v43 = vpop.permute.xlu1 %2524 }
 0xeb3   :  { %v2052_v46 = vmul.f32 %v3737_v2, %v5117_v51  ;;  %2631 = vrot.lane.b32.xlu0 %v4898_v25, %s3851_s12  ;;  %2440 = vmatpush.bf16.msrb.mxu0 %v2420_v7  ;;  %v2148_v41 = vpop.xlane.xlu2 %2147 }
 0xeb4   :  { %2545 = vmatpush.bf16.msra.mxu2 %v2525_v43 }
 0xeb5   :  { %v2054_v48 = vpack.c.bf16 %v2052_v46, %v2052_v46 }
 0xeb7   :  { %3349 = vmatmul.msk.bf16.gmra.mxu2 %vm417_vm9, %v2054_v48 }
 0xeb8   :  { %2734 = vrot.lane.b32.xlu1 %v4886_v19, %s3850_s11 }
 0xebb   :  { %2558 = vrot.lane.b32.xlu0 %v4898_v25, %s3843_s24  ;;  %v2256_v12 = vpop.xlane.xlu2 %2255 }
 0xec3   :  { %v2737_v50 = vpop.permute.xlu2 %2736 }
 0xec4   :  { %v2746_v30 = vsel %vm464_vm2, %v2737_v50, 0 }
 0xed8   :  { %v2145_v26 = vpop.xlane.xlu0 %2144 }
 0xedd   :  { %v1941_v21 = vpop.xlane.xlu1 %1940 }
 0xede   :  { %3738 = vrcp.f32 %v1941_v21 }
 0xee0   :  { %v2253_v56 = vpop.xlane.xlu0 %2252 }
 0xee1   :  { %3740 = vrcp.f32 %v2253_v56 }
 0xee4   :  { %v3739_v51 = vpop.eup %3738 }
 0xee5   :  { %v1947_v39 = vmul.f32 %v3739_v51, %v5145_v23  ;;  %v2250_v16 = vpop.xlane.xlu1 %2249 }
 0xee6   :  { %3742 = vrcp.f32 %v2250_v16 }
 0xee7   :  { %v1949_v8 = vpack.c.bf16 %v1947_v39, %v1947_v39  ;;  %v3741_v45 = vpop.eup %3740  ;;  %3744 = vrcp.f32 %v2145_v26 }
 0xee8   :  { %3746 = vrcp.f32 %v2148_v41  ;;  %v2261_v25 = vmul.f32 %v3741_v45, %v5148_v42  ;;  %v2404_v42 = vpop.xlane.xlu0 %2403 }
 0xee9   :  { %3345 = vmatmul.msk.bf16.gmra.mxu0 %vm417_vm9, %v1949_v8  ;;  %3748 = vrcp.f32 %v2256_v12 }
 0xeec   :  { %v3743_v19 = vpop.eup %3742 }
 0xeed   :  { %v2260_v24 = vmul.f32 %v3743_v19, %v5155_v3  ;;  %v2151_v4 = vpop.xlane.xlu1 %2150  ;;  %v3745_v31 = vpop.eup %3744 }
 0xeee   :  { %v3747_v23 = vpop.eup %3746  ;;  %v2155_v33 = vmul.f32 %v3745_v31, %v5140_v63  ;;  %3750 = vrcp.f32 %v2151_v4 }
 0xeef   :  { %v2263_v10 = vpack.c.bf16 %v2261_v25, %v2260_v24  ;;  %v2156_v37 = vmul.f32 %v3747_v23, %v5124_v59  ;;  %v3749_v0 = vpop.eup %3748 }
 0xef0   :  { %v2262_v3 = vmul.f32 %v3749_v0, %v5130_v22  ;;  %v2509_v14 = vpop.xlane.xlu0 %2508 }
 0xef1   :  { %3356 = vmatmul.msk.bf16.vlgmr.msrb.gmra.mxu2 %vm417_vm9, %v2263_v10  ;;  %v2158_v47 = vpack.c.bf16 %v2156_v37, %v2155_v33 }
 0xef2   :  { %2754 = vmatpush.bf16.msrb.mxu2 %v2746_v30  ;;  %v2264_v9 = vpack.c.bf16 %v2262_v3, %v2262_v3 }
 0xef4   :  { %v3751_v54 = vpop.eup %3750 }
 0xef5   :  { %v2407_v52 = vpop.xlane.xlu1 %2406  ;;  %v2157_v63 = vmul.f32 %v3751_v54, %v5165_v5 }
 0xef7   :  { %v2159_v27 = vpack.c.bf16 %v2157_v63, %v2157_v63 }
 0xef8   :  { %v2515_v48 = vpop.xlane.xlu0 %2514 }
 0xef9   :  { %3352 = vmatmul.msk.bf16.vlgmr.msra.gmra.mxu0 %vm417_vm9, %v2158_v47 }
 0xefc   :  { %v2410_v7 = vpop.xlane.xlu2 %2409 }
 0xefd   :  { %v2512_v1 = vpop.xlane.xlu1 %2511 }
 0xefe   :  { %3752 = vrcp.f32 %v2512_v1 }
 0xeff   :  { %3754 = vrcp.f32 %v2509_v14 }
 0xf00   :  { %3756 = vrcp.f32 %v2407_v52  ;;  %v3812_v52 = vld [vmem:[%s5438_s4] sm:$0xff] }
 0xf01   :  { %3357 = vmatmul.msk.bf16.gmra.mxu2 %vm417_vm9, %v2264_v9  ;;  %3758 = vrcp.f32 %v2404_v42 }
 0xf02   :  { %3760 = vrcp.f32 %v2515_v48  ;;  %v2614_v51 = vpop.xlane.xlu0 %2613 }
 0xf03   :  { %3762 = vrcp.f32 %v2410_v7 }
 0xf04   :  { %v2630_v59 = vpop.permute.xlu2 %2629  ;;  %v3753_v62 = vpop.eup %3752 }
 0xf05   :  { %v3755_v2 = vpop.eup %3754  ;;  %v2520_v22 = vmul.f32 %v3753_v62, %v5186_v15 }
 0xf06   :  { %v2519_v46 = vmul.f32 %v3755_v2, %v5169_v35  ;;  %v3757_v41 = vpop.eup %3756 }
 0xf07   :  { %v3759_v5 = vpop.eup %3758  ;;  %v2415_v21 = vmul.f32 %v3757_v41, %v5175_v17 }
 0xf08   :  { %v2522_v26 = vpack.c.bf16 %v2520_v22, %v2519_v46  ;;  %v2414_v56 = vmul.f32 %v3759_v5, %v5158_v13  ;;  %v3761_v15 = vpop.eup %3760 }
 0xf09   :  { %3353 = vmatmul.msk.bf16.gmra.mxu0 %vm417_vm9, %v2159_v27  ;;  %v2521_v35 = vmul.f32 %v3761_v15, %v5177_v40  ;;  %v3763_v45 = vpop.eup %3762 }
 0xf0a   :  { %v2417_v12 = vpack.c.bf16 %v2415_v21, %v2414_v56  ;;  %v2719_v39 = vpop.xlane.xlu1 %2718  ;;  %v2416_v17 = vmul.f32 %v3763_v45, %v5184_v44  ;;  %v3811_v44 = vld [vmem:[%s5438_s4 + $0x8] sm:$0xff] }
 0xf0b   :  { %v2523_v8 = vpack.c.bf16 %v2521_v35, %v2521_v35 }
 0xf0c   :  { %v2664_v43 = vpop.permute.xlu2 %2663  ;;  %v2418_v24 = vpack.c.bf16 %v2416_v17, %v2416_v17 }
 0xf0d   :  { %3371 = vmatmul.msk.bf16.gmra.mxu3 %vm386_vm15, %v2664_v43 }
 0xf11   :  { %3364 = vmatmul.msk.bf16.vlgmr.msra.gmra.mxu2 %vm417_vm9, %v2522_v26 }
 0xf12   :  { %v2722_v16 = vpop.xlane.xlu0 %2721  ;;  %v2617_v19 = vpop.xlane.xlu1 %2616 }
 0xf13   :  { %3764 = vrcp.f32 %v2722_v16 }
 0xf14   :  { %3766 = vrcp.f32 %v2719_v39 }
 0xf15   :  { %3768 = vrcp.f32 %v2617_v19 }
 0xf16   :  { %3770 = vrcp.f32 %v2614_v51 }
 0xf19   :  { %3360 = vmatmul.msk.bf16.vlgmr.msrb.gmra.mxu0 %vm417_vm9, %v2417_v12  ;;  %v3765_v4 = vpop.eup %3764 }
 0xf1a   :  { %v3767_v50 = vpop.eup %3766  ;;  %v2730_v31 = vmul.f32 %v3765_v4, %v5207_v49 }
 0xf1b   :  { %v2729_v30 = vmul.f32 %v3767_v50, %v5199_v38  ;;  %v3769_v37 = vpop.eup %3768  ;;  %v1973_v9 = vpop.f32.mrf.mxu0 }
 0xf1c   :  { %v3771_v49 = vpop.eup %3770  ;;  %v2625_v42 = vmul.f32 %v3769_v37, %v5205_v60 }
 0xf1d   :  { %v2732_v33 = vpack.c.bf16 %v2730_v31, %v2729_v30  ;;  %v2624_v3 = vmul.f32 %v3771_v49, %v5193_v36 }
 0xf1f   :  { %v2627_v38 = vpack.c.bf16 %v2625_v42, %v2624_v3 }
 0xf21   :  { %3365 = vmatmul.msk.bf16.gmra.mxu2 %vm417_vm9, %v2523_v8 }
 0xf23   :  { %v1975_v54 = vpop.f32.mrf.mxu0 }
 0xf25   :  { %v2632_v13 = vpop.permute.xlu0 %2631 }
 0xf26   :  { %v2641_v25 = vsel %vm464_vm2, %v2632_v13, 0 }
 0xf27   :  { %2649 = vmatpush.bf16.msra.mxu0 %v2641_v25 }
 0xf29   :  { %3361 = vmatmul.msk.bf16.gmra.mxu0 %vm417_vm9, %v2418_v24 }
 0xf2a   :  { %v2078_v40 = vpop.f32.mrf.mxu2  ;;  %v2735_v10 = vpop.permute.xlu1 %2734 }
 0xf2b   :  { %2650 = vmatpush.bf16.msra.mxu0 %v2630_v59  ;;  %2755 = vmatpush.bf16.msrb.mxu2 %v2735_v10 }
 0xf2d   :  { %v2559_v23 = vpop.permute.xlu0 %2558 }
 0xf2e   :  { %3367 = vmatmul.msk.bf16.gmra.mxu1 %vm386_vm15, %v2559_v23 }
 0xf2f   :  { %3015 = vmatpush.bf16.msrb.mxu0 %v3811_v44 }
 0xf31   :  { %3372 = vmatmul.msk.bf16.vlgmr.msrb.gmra.mxu2 %vm417_vm9, %v2732_v33 }
 0xf32   :  { %v2080_v47 = vpop.f32.mrf.mxu2 }
 0xf33   :  { %3016 = vmatpush.bf16.msrb.mxu0 %v3812_v52  ;;  %v3493_v0 = vpack.i.bf16 %v2080_v47, %v2078_v40 }
 0xf35   :  { %3494 = vrot.lane.b32.xlu2 %v3493_v0, %s3853_s14 }
 0xf39   :  { %3368 = vmatmul.msk.bf16.vlgmr.msra.gmra.mxu0 %vm417_vm9, %v2627_v38 }
 0xf3a   :  { %v2083_v7 = vpop.f32.mrf.mxu2 }
 0xf42   :  { %v2085_v1 = vpop.f32.mrf.mxu2 }
 0xf66   :  { %v5271_v14 = vpop.f32.mrf.mxu0 }
 0xf6e   :  { %v1980_v63 = vpop.f32.mrf.mxu0 }
 0xf74   :  { %v2288_v59 = vpop.f32.mrf.mxu2 }
 0xf76   :  { %v2183_v27 = vpop.f32.mrf.mxu0 }
 0xf7c   :  { %v2290_v62 = vpop.f32.mrf.mxu2 }
 0xf7d   :  { %v3503_v2 = vpack.i.bf16 %v2290_v62, %v2288_v59 }
 0xf7e   :  { %v2185_v60 = vpop.f32.mrf.mxu0 }
 0xf7f   :  { %v3498_v22 = vpack.i.bf16 %v2185_v60, %v2183_v27  ;;  %3504 = vrot.lane.b32.xlu0 %v3503_v2, %s3854_s2 }
 0xf81   :  { %3499 = vrot.lane.b32.xlu1 %v3498_v22, %s3852_s13 }
 0xf84   :  { %v2293_v36 = vpop.f32.mrf.mxu2 }
 0xf86   :  { %v2188_v43 = vpop.f32.mrf.mxu0 }
 0xf8c   :  { %v2295_v46 = vpop.f32.mrf.mxu2 }
 0xf8e   :  { %v2190_v48 = vpop.f32.mrf.mxu0 }
 0xf8f   :  { %v3495_v31 = vpop.permute.xlu2 %3494 }
 0xf90   :  { %v2695_v26 = vpop.f32.mrf.mxu3  ;;  %v3497_v44 = vunpack.i.h.bf16 %v3495_v31  ;;  %v3496_v30 = vunpack.i.l.bf16 %v3495_v31 }
 0xf91   :  { %v2696_v4 = vadd.f32 %v2695_v26, %v4161_v55 }
 0xf92   :  { %v2334_v49 = vsel %vm386_vm15, %v1975_v54, %v3497_v44  ;;  %v2333_v47 = vsel %vm386_vm15, %v1973_v9, %v3496_v30 }
 0xf93   :  { %v2705_v50 = vsel %vm417_vm9, %v2696_v4, -inf }
 0xf94   :  { %v2547_v41 = vpop.f32.mrf.mxu2 }
 0xf95   :  { %v3508_v5 = vpack.i.bf16 %v2547_v41, %v2083_v7 }
 0xf96   :  { %v2442_v21 = vpop.f32.mrf.mxu0 }
 0xf97   :  { %3509 = vrot.lane.b32.xlu2 %v3508_v5, %s3853_s14 }
 0xf98   :  { %v2697_v56 = vpop.f32.mrf.mxu3 }
 0xf9c   :  { %v5276_v51 = vpop.f32.mrf.mxu2 }
 0xf9e   :  { %v5278_v12 = vpop.f32.mrf.mxu0 }
 0xfa4   :  { %v5280_v15 = vpop.f32.mrf.mxu2 }
 0xfa5   :  { %v3523_v39 = vpack.i.bf16 %v5280_v15, %v5276_v51 }
 0xfa6   :  { %v5284_v35 = vpop.f32.mrf.mxu0 }
 0xfab   :  { %v2590_v16 = vpop.f32.mrf.mxu1 }
 0xfac   :  { %v2554_v8 = vpop.f32.mrf.mxu2  ;;  %v2591_v40 = vadd.f32 %v2590_v16, %v4161_v55 }
 0xfae   :  { %v2449_v45 = vpop.f32.mrf.mxu0  ;;  %v2600_v10 = vsel %vm417_vm9, %v2591_v40, -inf }
 0xfb3   :  { %v2592_v19 = vpop.f32.mrf.mxu1 }
 0xfb4   :  { %v2757_v17 = vpop.f32.mrf.mxu2 }
 0xfb5   :  { %v3518_v13 = vpack.i.bf16 %v2757_v17, %v2293_v36 }
 0xfb6   :  { %v2652_v25 = vpop.f32.mrf.mxu0 }
 0xfb7   :  { %v3513_v24 = vpack.i.bf16 %v2652_v25, %v2188_v43  ;;  %3519 = vrot.lane.b32.xlu0 %v3518_v13, %s3854_s2 }
 0xfb9   :  { %3514 = vrot.lane.b32.xlu1 %v3513_v24, %s3852_s13 }
 0xfc0   :  { %2706 = vmax.xlane.f32.xlu2 %v2705_v50 }
 0xfe3   :  { %2601 = vmax.xlane.f32.xlu1 %v2600_v10 }
 0xff1   :  { %v3505_v23 = vpop.permute.xlu0 %3504  ;;  %v3510_v63 = vpop.permute.xlu2 %3509 }
 0xff2   :  { %v3507_v42 = vunpack.i.h.bf16 %v3505_v23  ;;  %v3506_v0 = vunpack.i.l.bf16 %v3505_v23  ;;  %v3512_v59 = vunpack.i.h.bf16 %v3510_v63  ;;  %v3511_v27 = vunpack.i.l.bf16 %v3510_v63 }
 0xff3   :  { %v3500_v33 = vpop.permute.xlu1 %3499 }
 0xff4   :  { %v3502_v37 = vunpack.i.h.bf16 %v3500_v33  ;;  %v3501_v52 = vunpack.i.l.bf16 %v3500_v33  ;;  %v2802_v60 = vsel %vm386_vm15, %v2442_v21, %v3512_v59  ;;  %v2335_v22 = vsel %vm386_vm15, %v5271_v14, %v3511_v27 }
 0xff6   :  { %v2337_v3 = vsel %vm840_vm10, %v2334_v49, %v3502_v37  ;;  %v2336_v55 = vsel %vm840_vm10, %v2333_v47, %v3501_v52 }
 0xff7   :  { %v2339_v38 = vsel %vm417_vm9, %v2336_v55, %v3506_v0  ;;  %v2340_v7 = vsel %vm417_vm9, %v2337_v3, %v3507_v42 }
 0xff8   :  { %v2811_v1 = vpack.c.bf16 %v2340_v7, %v2339_v38 }
 0xffa   :  { %3374 = vmatmul.msk.bf16.vlgmr.msrb.gmra.mxu1 %vm164_vm1, %v2811_v1 }
0x1029   :  { %v3520_v62 = vpop.permute.xlu0 %3519 }
0x102a   :  { %v3522_v36 = vunpack.i.h.bf16 %v3520_v62  ;;  %v3521_v43 = vunpack.i.l.bf16 %v3520_v62 }
0x102b   :  { %v3515_v54 = vpop.permute.xlu1 %3514 }
0x102c   :  { %v3517_v2 = vunpack.i.h.bf16 %v3515_v54  ;;  %v3516_v9 = vunpack.i.l.bf16 %v3515_v54 }
0x102e   :  { %v2805_v46 = vsel %vm840_vm10, %v2802_v60, %v3517_v2  ;;  %v2338_v48 = vsel %vm840_vm10, %v2335_v22, %v3516_v9 }
0x102f   :  { %v2341_v26 = vsel %vm417_vm9, %v2338_v48, %v3521_v43  ;;  %v2808_v41 = vsel %vm417_vm9, %v2805_v46, %v3522_v36 }
0x1030   :  { %v2812_v5 = vpack.c.bf16 %v2808_v41, %v2341_v26 }
0x1032   :  { %3375 = vmatmul.msk.bf16.gmra.mxu1 %vm164_vm1, %v2812_v5 }
0x1033   :  { %v2707_v56 = vpop.xlane.xlu2 %2706 }
0x1034   :  { %v2710_v16 = vsub.f32 %v2696_v4, %v2707_v56 }
0x1036   :  { %v2715_v8 = vmul.f32 1.442695, %v2710_v16 }
0x1038   :  { %3772 = vpow2.f32 %v2715_v8 }
0x103e   :  { %v3773_v21 = vpop.eup %3772 }
0x103f   :  { %v2723_v14 = vsel %vm417_vm9, %v3773_v21, 0.0 }
0x1040   :  { %2724 = vadd.xlane.f32.xlu0 %v2723_v14  ;;  %v2654_v14 = vpop.f32.mrf.mxu0 }
0x1056   :  { %v2602_v45 = vpop.xlane.xlu1 %2601 }
0x1057   :  { %v2605_v19 = vsub.f32 %v2591_v40, %v2602_v45 }
0x1059   :  { %v2610_v17 = vmul.f32 1.442695, %v2605_v19 }
0x105b   :  { %3774 = vpow2.f32 %v2610_v17 }
0x1061   :  { %v3775_v13 = vpop.eup %3774 }
0x1062   :  { %v2618_v25 = vsel %vm417_vm9, %v3775_v13, 0.0 }
0x1063   :  { %2619 = vadd.xlane.f32.xlu2 %v2618_v25 }
0x1077   :  { %v2832_v24 = vpop.f32.mrf.mxu1 }
0x1078   :  { %v2833_v50 = vadd.f32 %v2832_v24, %v4584_v58 }
0x107a   :  { %v5311_v10 = vadd.f32 %v2833_v50, %v4750_v20 }
0x107c   :  { %v2853_v4 = vsel %vm164_vm1, %v5311_v10, 0.0 }
0x107d   :  { %2854 = vadd.xlane.f32.xlu1 %v2853_v4 }
0x107f   :  { %v2834_v31 = vpop.f32.mrf.mxu1 }
0x1080   :  { %v2835_v44 = vadd.f32 %v2834_v31, %v4584_v58 }
0x1082   :  { %v2848_v40 = vadd.f32 %v2835_v44, %v4756_v28 }
0x1084   :  { %v2856_v30 = vsel %vm164_vm1, %v2848_v40, 0.0 }
0x1085   :  { %2857 = vadd.xlane.f32.xlu0 %v2856_v30 }
0x10af   :  { %v2837_v23 = vpop.f32.mrf.mxu1 }
0x10b0   :  { %v2838_v33 = vadd.f32 %v2837_v23, %v4584_v58 }
0x10b2   :  { %v2849_v37 = vadd.f32 %v2838_v33, %v4765_v6 }
0x10b3   :  { %v2725_v52 = vpop.xlane.xlu0 %2724 }
0x10b4   :  { %3776 = vrcp.f32 %v2725_v52  ;;  %v2859_v20 = vsel %vm164_vm1, %v2849_v37, 0.0 }
0x10b5   :  { %2860 = vadd.xlane.f32.xlu2 %v2859_v20 }
0x10b7   :  { %v2839_v49 = vpop.f32.mrf.mxu1 }
0x10b8   :  { %v2840_v47 = vadd.f32 %v2839_v49, %v4584_v58 }
0x10ba   :  { %v3777_v42 = vpop.eup %3776  ;;  %v5323_v0 = vadd.f32 %v2840_v47, %v4771_v57 }
0x10bb   :  { %v2731_v28 = vmul.f32 %v3777_v42, %v3773_v21 }
0x10bc   :  { %v2862_v3 = vsel %vm164_vm1, %v5323_v0, 0.0 }
0x10bd   :  { %2863 = vadd.xlane.f32.xlu1 %v2862_v3  ;;  %v2733_v55 = vpack.c.bf16 %v2731_v28, %v2731_v28 }
0x10bf   :  { %3373 = vmatmul.msk.bf16.gmra.mxu2 %vm417_vm9, %v2733_v55 }
0x10d6   :  { %v2620_v6 = vpop.xlane.xlu2 %2619 }
0x10d7   :  { %3778 = vrcp.f32 %v2620_v6 }
0x10dd   :  { %v3779_v38 = vpop.eup %3778 }
0x10de   :  { %v2626_v7 = vmul.f32 %v3779_v38, %v3775_v13 }
0x10e0   :  { %v2628_v1 = vpack.c.bf16 %v2626_v7, %v2626_v7 }
0x10e2   :  { %3369 = vmatmul.msk.bf16.gmra.mxu0 %vm417_vm9, %v2628_v1 }
0x10f0   :  { %v2855_v63 = vpop.xlane.xlu1 %2854 }
0x10f1   :  { %v2871_v59 = vmul.f32 %v2855_v63, %v3963_v29 }
0x10f3   :  { %v2877_v57 = vsub.f32 %v5311_v10, %v2871_v59 }
0x10f5   :  { %v2883_v27 = vmul.f32 %v2877_v57, %v2877_v57 }
0x10f7   :  { %v2889_v62 = vsel %vm164_vm1, %v2883_v27, 0.0 }
0x10f8   :  { %v2858_v54 = vpop.xlane.xlu0 %2857  ;;  %2890 = vadd.xlane.f32.xlu0 %v2889_v62 }
0x10f9   :  { %v2872_v2 = vmul.f32 %v2858_v54, %v3963_v29 }
0x10fb   :  { %v2878_v9 = vsub.f32 %v2848_v40, %v2872_v2 }
0x10fd   :  { %v2884_v60 = vmul.f32 %v2878_v9, %v2878_v9 }
0x10ff   :  { %v2892_v22 = vsel %vm164_vm1, %v2884_v60, 0.0 }
0x1100   :  { %2893 = vadd.xlane.f32.xlu2 %v2892_v22 }
0x1118   :  { %3524 = vrot.lane.b32.xlu2 %v3523_v39, %s3853_s14  ;;  %v2759_v39 = vpop.f32.mrf.mxu2 }
0x1128   :  { %v2861_v36 = vpop.xlane.xlu2 %2860 }
0x1129   :  { %v2873_v43 = vmul.f32 %v2861_v36, %v3963_v29 }
0x112b   :  { %v5339_v46 = vsub.f32 %v2849_v37, %v2873_v43 }
0x112d   :  { %v2885_v48 = vmul.f32 %v5339_v46, %v5339_v46 }
0x112f   :  { %v2895_v26 = vsel %vm164_vm1, %v2885_v48, 0.0 }
0x1130   :  { %2896 = vadd.xlane.f32.xlu1 %v2895_v26  ;;  %v2864_v41 = vpop.xlane.xlu1 %2863 }
0x1131   :  { %v2874_v5 = vmul.f32 %v2864_v41, %v3963_v29 }
0x1133   :  { %v5346_v56 = vsub.f32 %v5323_v0, %v2874_v5 }
0x1135   :  { %v2886_v51 = vmul.f32 %v5346_v56, %v5346_v56 }
0x1137   :  { %v2898_v15 = vsel %vm164_vm1, %v2886_v51, 0.0 }
0x1138   :  { %2899 = vadd.xlane.f32.xlu0 %v2898_v15 }
0x1142   :  { %v2762_v16 = vpop.f32.mrf.mxu2 }
0x1143   :  { %v3533_v8 = vpack.i.bf16 %v2762_v16, %v2759_v39 }
0x114a   :  { %v2764_v21 = vpop.f32.mrf.mxu2 }
0x114c   :  { %3534 = vrot.lane.b32.xlu0 %v3533_v8, %s3854_s2 }
0x115f   :  { %v2657_v45 = vpop.f32.mrf.mxu0 }
0x1160   :  { %v3528_v19 = vpack.i.bf16 %v2657_v45, %v2654_v14 }
0x1162   :  { %3529 = vrot.lane.b32.xlu1 %v3528_v19, %s3852_s13 }
0x1167   :  { %v2659_v17 = vpop.f32.mrf.mxu0 }
0x116b   :  { %v2891_v13 = vpop.xlane.xlu0 %2890 }
0x116c   :  { %v2907_v25 = vmul.f32 %v2891_v13, %v3963_v29 }
0x116e   :  { %v2913_v24 = vadd.f32 1e-05, %v2907_v25 }
0x1170   :  { %3780 = vrsqrt.f32 %v2913_v24  ;;  %vm2925_vm5 = vweird.f32 %v2913_v24 }
0x1173   :  { %v2894_v50 = vpop.xlane.xlu2 %2893 }
0x1174   :  { %v2908_v4 = vmul.f32 %v2894_v50, %v3963_v29 }
0x1176   :  { %v3781_v31 = vpop.eup %3780  ;;  %v2914_v44 = vadd.f32 1e-05, %v2908_v4 }
0x1177   :  { %v2920_v40 = vmul.f32 %v3781_v31, %v2913_v24  ;;  %vm2926_vm2 = vweird.f32 %v3781_v31 }
0x1178   :  { %3782 = vrsqrt.f32 %v2914_v44  ;;  %vm2927_vm6 = vmor %vm2925_vm5, %vm2926_vm2  ;;  %vm2935_vm8 = vweird.f32 %v2914_v44 }
0x1179   :  { %v2921_v30 = vmul.f32 %v3781_v31, %v2920_v40 }
0x117b   :  { %v2922_v23 = vmul.f32 0.5, %v2921_v30  ;;  %v3525_v4 = vpop.permute.xlu2 %3524 }
0x117d   :  { %v2923_v33 = vsub.f32 1.5, %v2922_v23 }
0x117e   :  { %v3783_v37 = vpop.eup %3782 }
0x117f   :  { %v2924_v52 = vmul.f32 %v3781_v31, %v2923_v33  ;;  %v2930_v20 = vmul.f32 %v3783_v37, %v2914_v44  ;;  %vm2936_vm7 = vweird.f32 %v3783_v37 }
0x1180   :  { %vm2937_vm11 = vmor %vm2935_vm8, %vm2936_vm7 }
0x1181   :  { %v2931_v49 = vmul.f32 %v3783_v37, %v2930_v20  ;;  %v2928_v47 = vsel %vm2927_vm6, %v3781_v31, %v2924_v52  ;;  %v3527_v31 = vunpack.i.h.bf16 %v3525_v4 }
0x1182   :  { %v2979_v3 = vmul.f32 %v2928_v47, %v2877_v57 }
0x1183   :  { %v2932_v42 = vmul.f32 0.5, %v2931_v49 }
0x1184   :  { %v2985_v38 = vmul.f32 %v2979_v3, %v4675_v11 }
0x1185   :  { %v2933_v28 = vsub.f32 1.5, %v2932_v42 }
0x1186   :  { %v2991_v63 = vadd.f32 %v2985_v38, %v4679_v61 }
0x1187   :  { %v2934_v55 = vmul.f32 %v3783_v37, %v2933_v28 }
0x1189   :  { %v2938_v6 = vsel %vm2937_vm11, %v3783_v37, %v2934_v55 }
0x118a   :  { %v2980_v7 = vmul.f32 %v2938_v6, %v2878_v9 }
0x118c   :  { %v2986_v1 = vmul.f32 %v2980_v7, %v4675_v11 }
0x118e   :  { %v2992_v59 = vadd.f32 %v2986_v1, %v4679_v61 }
0x1190   :  { %v2997_v27 = vpack.c.bf16 %v2992_v59, %v2991_v63 }
0x1192   :  { %3377 = vmatmul.msk.bf16.vlgmr.msrb.gmra.mxu0 %vm164_vm1, %v2997_v27 }
0x11a3   :  { %v2897_v62 = vpop.xlane.xlu1 %2896 }
0x11a4   :  { %v2909_v54 = vmul.f32 %v2897_v62, %v3963_v29 }
0x11a6   :  { %v2915_v57 = vadd.f32 1e-05, %v2909_v54 }
0x11a8   :  { %3784 = vrsqrt.f32 %v2915_v57  ;;  %vm2945_vm13 = vweird.f32 %v2915_v57 }
0x11ab   :  { %v2900_v2 = vpop.xlane.xlu0 %2899 }
0x11ac   :  { %v2910_v60 = vmul.f32 %v2900_v2, %v3963_v29 }
0x11ae   :  { %v3785_v22 = vpop.eup %3784  ;;  %v2916_v36 = vadd.f32 1e-05, %v2910_v60 }
0x11af   :  { %v2940_v9 = vmul.f32 %v3785_v22, %v2915_v57  ;;  %vm2946_vm12 = vweird.f32 %v3785_v22 }
0x11b0   :  { %3786 = vrsqrt.f32 %v2916_v36  ;;  %vm2947_vm14 = vmor %vm2945_vm13, %vm2946_vm12  ;;  %vm2955_vm4 = vweird.f32 %v2916_v36 }
0x11b1   :  { %v2941_v43 = vmul.f32 %v3785_v22, %v2940_v9 }
0x11b3   :  { %v2942_v48 = vmul.f32 0.5, %v2941_v43 }
0x11b5   :  { %v2943_v26 = vsub.f32 1.5, %v2942_v48 }
0x11b6   :  { %v3787_v41 = vpop.eup %3786 }
0x11b7   :  { %v2944_v5 = vmul.f32 %v3785_v22, %v2943_v26  ;;  %v2950_v51 = vmul.f32 %v3787_v41, %v2916_v36  ;;  %vm2956_vm3 = vweird.f32 %v3787_v41 }
0x11b8   :  { %vm2957_vm2 = vmor %vm2955_vm4, %vm2956_vm3 }
0x11b9   :  { %v2951_v15 = vmul.f32 %v3787_v41, %v2950_v51  ;;  %v2948_v39 = vsel %vm2947_vm14, %v3785_v22, %v2944_v5 }
0x11ba   :  { %v2981_v21 = vmul.f32 %v2948_v39, %v5339_v46  ;;  %v3526_v46 = vunpack.i.l.bf16 %v3525_v4 }
0x11bb   :  { %v2952_v16 = vmul.f32 0.5, %v2951_v15 }
0x11bc   :  { %v2987_v17 = vmul.f32 %v2981_v21, %v4675_v11  ;;  %v2803_v33 = vsel %vm386_vm15, %v5278_v12, %v3526_v46 }
0x11bd   :  { %v2953_v8 = vsub.f32 1.5, %v2952_v16 }
0x11be   :  { %v2993_v25 = vadd.f32 %v2987_v17, %v4679_v61  ;;  %v3535_v44 = vpop.permute.xlu0 %3534 }
0x11bf   :  { %v2954_v14 = vmul.f32 %v3787_v41, %v2953_v8  ;;  %v3537_v37 = vunpack.i.h.bf16 %v3535_v44  ;;  %v3536_v52 = vunpack.i.l.bf16 %v3535_v44 }
0x11c1   :  { %v2958_v45 = vsel %vm2957_vm2, %v3787_v41, %v2954_v14 }
0x11c2   :  { %v2982_v19 = vmul.f32 %v2958_v45, %v5346_v56  ;;  %v2804_v56 = vsel %vm386_vm15, %v5284_v35, %v3527_v31  ;;  %vm3124_vm15 = vcmask 1040384  }
0x11c4   :  { %v2988_v13 = vmul.f32 %v2982_v19, %v4675_v11 }
0x11c6   :  { %v2994_v24 = vadd.f32 %v2988_v13, %v4679_v61 }
0x11c8   :  { %v2998_v50 = vpack.c.bf16 %v2994_v24, %v2993_v25 }
0x11ca   :  { %3378 = vmatmul.msk.bf16.gmra.mxu0 %vm164_vm1, %v2998_v50 }
0x11d4   :  { %v3530_v40 = vpop.permute.xlu1 %3529 }
0x11d5   :  { %v3532_v30 = vunpack.i.h.bf16 %v3530_v40  ;;  %v3531_v23 = vunpack.i.l.bf16 %v3530_v40 }
0x11d7   :  { %v2807_v20 = vsel %vm840_vm10, %v2804_v56, %v3532_v30  ;;  %v2806_v49 = vsel %vm840_vm10, %v2803_v33, %v3531_v23 }
0x11d8   :  { %v2809_v47 = vsel %vm417_vm9, %v2806_v49, %v3536_v52  ;;  %v2810_v42 = vsel %vm417_vm9, %v2807_v20, %v3537_v37 }
0x11d9   :  { %v2813_v28 = vpack.c.bf16 %v2810_v42, %v2809_v47 }
0x11db   :  { %3376 = vmatmul.msk.bf16.gmra.mxu1 %vm164_vm1, %v2813_v28 }
0x120f   :  { %v3018_v3 = vpop.f32.mrf.mxu0 }
0x1210   :  { %v3019_v55 = vadd.f32 %v3018_v3, %v4721_v34 }
0x1212   :  { %v3033_v35 = vmul.f32 %v3019_v55, %v3019_v55 }
0x1214   :  { %v3039_v6 = vmul.f32 %v3033_v35, %v3019_v55 }
0x1216   :  { %v3045_v38 = vmul.f32 0.044715, %v3039_v6 }
0x1217   :  { %v3020_v12 = vpop.f32.mrf.mxu0 }
0x1218   :  { %v3051_v7 = vadd.f32 %v3045_v38, %v3019_v55  ;;  %v3021_v1 = vadd.f32 %v3020_v12, %v4721_v34 }
0x121a   :  { %v3057_v63 = vmul.f32 0.7978846, %v3051_v7  ;;  %v3034_v59 = vmul.f32 %v3021_v1, %v3021_v1 }
0x121c   :  { %v3040_v27 = vmul.f32 %v3034_v59, %v3021_v1  ;;  %3788 = vtanh.f32 %v3057_v63  ;;  %v3423_v63 = vld [vmem:[%s5440_s6] sm:$0xff] }
0x121e   :  { %v3046_v62 = vmul.f32 0.044715, %v3040_v27 }
0x1220   :  { %v3052_v54 = vadd.f32 %v3046_v62, %v3021_v1 }
0x1222   :  { %v3058_v57 = vmul.f32 0.7978846, %v3052_v54  ;;  %v3789_v2 = vpop.eup %3788 }
0x1223   :  { %v3069_v60 = vadd.f32 1.0, %v3789_v2 }
0x1224   :  { %3790 = vtanh.f32 %v3058_v57 }
0x1225   :  { %v3075_v36 = vmul.f32 0.5, %v3069_v60 }
0x1227   :  { %v3081_v48 = vmul.f32 %v3075_v36, %v3019_v55 }
0x122a   :  { %v3791_v22 = vpop.eup %3790 }
0x122b   :  { %v3070_v9 = vadd.f32 1.0, %v3791_v22 }
0x122d   :  { %v3076_v43 = vmul.f32 0.5, %v3070_v9 }
0x122f   :  { %v3082_v26 = vmul.f32 %v3076_v43, %v3021_v1 }
0x1231   :  { %v3087_v41 = vpack.c.bf16 %v3082_v26, %v3081_v48 }
0x1233   :  { %3380 = vmatmul.msk.bf16.vlgmr.msra.gmra.mxu3 %vm130_vm0, %v3087_v41 }
0x1247   :  { %v3023_v5 = vpop.f32.mrf.mxu0 }
0x1248   :  { %v3024_v51 = vadd.f32 %v3023_v5, %v4721_v34 }
0x124a   :  { %v3035_v15 = vmul.f32 %v3024_v51, %v3024_v51 }
0x124c   :  { %v3041_v39 = vmul.f32 %v3035_v15, %v3024_v51 }
0x124e   :  { %v3047_v16 = vmul.f32 0.044715, %v3041_v39 }
0x124f   :  { %v3025_v8 = vpop.f32.mrf.mxu0 }
0x1250   :  { %v3053_v21 = vadd.f32 %v3047_v16, %v3024_v51  ;;  %v3026_v14 = vadd.f32 %v3025_v8, %v4721_v34 }
0x1252   :  { %v3059_v45 = vmul.f32 0.7978846, %v3053_v21  ;;  %v3036_v19 = vmul.f32 %v3026_v14, %v3026_v14 }
0x1254   :  { %v3042_v17 = vmul.f32 %v3036_v19, %v3026_v14  ;;  %3792 = vtanh.f32 %v3059_v45 }
0x1256   :  { %v3048_v13 = vmul.f32 0.044715, %v3042_v17 }
0x1258   :  { %v3054_v25 = vadd.f32 %v3048_v13, %v3026_v14  ;;  %v2842_v24 = vpop.f32.mrf.mxu1 }
0x1259   :  { %v2843_v50 = vadd.f32 %v2842_v24, %v4584_v58 }
0x125a   :  { %v3060_v4 = vmul.f32 0.7978846, %v3054_v25  ;;  %v3793_v46 = vpop.eup %3792 }
0x125b   :  { %v2851_v31 = vadd.f32 %v2843_v50, %v4787_v18  ;;  %v3071_v40 = vadd.f32 1.0, %v3793_v46 }
0x125c   :  { %3794 = vtanh.f32 %v3060_v4 }
0x125d   :  { %v2865_v44 = vsel %vm164_vm1, %v2851_v31, 0.0  ;;  %v3077_v33 = vmul.f32 0.5, %v3071_v40  ;;  %v3428_v40 = vld [vmem:[%s5441_s7 + $0x18] sm:$0xff] }
0x125e   :  { %2866 = vadd.xlane.f32.xlu2 %v2865_v44 }
0x125f   :  { %v3083_v47 = vmul.f32 %v3077_v33, %v3024_v51 }
0x1260   :  { %v2844_v30 = vpop.f32.mrf.mxu1 }
0x1261   :  { %v2845_v23 = vadd.f32 %v2844_v30, %v4584_v58 }
0x1262   :  { %v3795_v56 = vpop.eup %3794 }
0x1263   :  { %v3072_v37 = vadd.f32 1.0, %v3795_v56  ;;  %v2852_v52 = vadd.f32 %v2845_v23, %v4800_v32  ;;  %v3424_v32 = vld [vmem:[%s5440_s6 + $0x8] sm:$0xff]  ;;  %v3427_v23 = vld [vmem:[%s5441_s7 + $0x10] sm:$0xff] }
0x1264   :  { %3149 = vmatpush.bf16.msra.mxu2 %v3424_v32  ;;  %v3813_v56 = vld [vmem:[%s5443_s9 + $0x8] sm:$0xff] }
0x1265   :  { %v3078_v20 = vmul.f32 0.5, %v3072_v37  ;;  %v2868_v49 = vsel %vm164_vm1, %v2852_v52, 0.0  ;;  %v3127_v33 = vperm.slane %v3813_v56, 0 }
0x1266   :  { %2869 = vadd.xlane.f32.xlu0 %v2868_v49 }
0x1267   :  { %v3084_v18 = vmul.f32 %v3078_v20, %v3026_v14 }
0x1268   :  { %3150 = vmatpush.bf16.msra.mxu2 %v3423_v63 }
0x1269   :  { %v3088_v42 = vpack.c.bf16 %v3084_v18, %v3083_v47 }
0x126b   :  { %3381 = vmatmul.msk.bf16.gmra.mxu3 %vm130_vm0, %v3088_v42 }
0x126c   :  { %3198 = vmatpush.bf16.msrb.mxu2 %v3428_v40 }
0x1270   :  { %3199 = vmatpush.bf16.msrb.mxu2 %v3427_v23 }
0x12b6   :  { %v3108_v28 = vpop.f32.mrf.mxu3 }
0x12b7   :  { %v3109_v57 = vadd.f32 %v3108_v28, %v4746_v53 }
0x12b9   :  { %v3119_v22 = vadd.f32 %v3109_v57, %v5311_v10 }
0x12be   :  { %v3110_v3 = vpop.f32.mrf.mxu3 }
0x12d1   :  { %v2867_v55 = vpop.xlane.xlu2 %2866 }
0x12d2   :  { %v2875_v35 = vmul.f32 %v2867_v55, %v3963_v29 }
0x12d4   :  { %v2881_v58 = vsub.f32 %v2851_v31, %v2875_v35 }
0x12d6   :  { %v2887_v6 = vmul.f32 %v2881_v58, %v2881_v58 }
0x12d8   :  { %v2901_v38 = vsel %vm164_vm1, %v2887_v6, 0.0 }
0x12d9   :  { %v2870_v12 = vpop.xlane.xlu0 %2869  ;;  %2902 = vadd.xlane.f32.xlu1 %v2901_v38 }
0x12da   :  { %v2876_v7 = vmul.f32 %v2870_v12, %v3963_v29 }
0x12dc   :  { %v2882_v1 = vsub.f32 %v2852_v52, %v2876_v7 }
0x12de   :  { %v2888_v59 = vmul.f32 %v2882_v1, %v2882_v1 }
0x12e0   :  { %v2904_v27 = vsel %vm164_vm1, %v2888_v59, 0.0 }
0x12e1   :  { %2905 = vadd.xlane.f32.xlu2 %v2904_v27 }
0x12ee   :  { %v3112_v62 = vpop.f32.mrf.mxu3 }
0x12f6   :  { %v3113_v54 = vpop.f32.mrf.mxu3 }
0x12f7   :  { %v3114_v2 = vadd.f32 %v3113_v54, %v4746_v53 }
0x12f9   :  { %v3120_v60 = vadd.f32 %v3114_v2, %v5323_v0 }
0x12fb   :  { %v3122_v36 = vrot.slane %v3120_v60, 7 }
0x12fd   :  { %v3125_v9 = vsel %vm3124_vm15, %v3119_v22, %v3122_v36 }
0x12fe   :  { %v3126_v43 = vpack.c.bf16 %v3125_v9, %v3125_v9 }
0x1300   :  { %3391 = vmatmul.msk.bf16.vlgmr.msra.gmra.mxu2 %vm164_vm1, %v3126_v43 }
0x134c   :  { %v2903_v48 = vpop.xlane.xlu1 %2902 }
0x134d   :  { %v2911_v26 = vmul.f32 %v2903_v48, %v3963_v29 }
0x134f   :  { %v2917_v41 = vadd.f32 1e-05, %v2911_v26 }
0x1351   :  { %3796 = vrsqrt.f32 %v2917_v41  ;;  %vm2965_vm10 = vweird.f32 %v2917_v41 }
0x1354   :  { %v2906_v5 = vpop.xlane.xlu2 %2905 }
0x1355   :  { %v2912_v51 = vmul.f32 %v2906_v5, %v3963_v29 }
0x1357   :  { %v3797_v15 = vpop.eup %3796  ;;  %v2918_v53 = vadd.f32 1e-05, %v2912_v51 }
0x1358   :  { %v2960_v39 = vmul.f32 %v3797_v15, %v2917_v41  ;;  %vm2966_vm9 = vweird.f32 %v3797_v15 }
0x1359   :  { %3798 = vrsqrt.f32 %v2918_v53  ;;  %vm2967_vm5 = vmor %vm2965_vm10, %vm2966_vm9  ;;  %vm2975_vm7 = vweird.f32 %v2918_v53 }
0x135a   :  { %v2961_v0 = vmul.f32 %v3797_v15, %v2960_v39 }
0x135c   :  { %v2962_v16 = vmul.f32 0.5, %v2961_v0 }
0x135e   :  { %v2963_v10 = vsub.f32 1.5, %v2962_v16 }
0x135f   :  { %v3799_v8 = vpop.eup %3798 }
0x1360   :  { %v2964_v21 = vmul.f32 %v3797_v15, %v2963_v10  ;;  %v2970_v14 = vmul.f32 %v3799_v8, %v2918_v53  ;;  %vm2976_vm6 = vweird.f32 %v3799_v8 }
0x1361   :  { %vm2977_vm8 = vmor %vm2975_vm7, %vm2976_vm6 }
0x1362   :  { %v2971_v45 = vmul.f32 %v3799_v8, %v2970_v14  ;;  %v2968_v19 = vsel %vm2967_vm5, %v3797_v15, %v2964_v21 }
0x1363   :  { %v2983_v25 = vmul.f32 %v2968_v19, %v2881_v58 }
0x1364   :  { %v2972_v17 = vmul.f32 0.5, %v2971_v45 }
0x1365   :  { %v2989_v4 = vmul.f32 %v2983_v25, %v4675_v11 }
0x1366   :  { %v2973_v13 = vsub.f32 1.5, %v2972_v17 }
0x1367   :  { %v2995_v46 = vadd.f32 %v2989_v4, %v4679_v61 }
0x1368   :  { %v2974_v29 = vmul.f32 %v3799_v8, %v2973_v13 }
0x136a   :  { %v2978_v24 = vsel %vm2977_vm8, %v3799_v8, %v2974_v29 }
0x136b   :  { %v2984_v50 = vmul.f32 %v2978_v24, %v2882_v1 }
0x136d   :  { %v2990_v31 = vmul.f32 %v2984_v50, %v4675_v11  ;;  %v3426_v11 = vld [vmem:[%s5441_s7 + $0x8] sm:$0xff] }
0x136e   :  { %3200 = vmatpush.bf16.msrb.mxu2 %v3426_v11 }
0x136f   :  { %v2996_v44 = vadd.f32 %v2990_v31, %v4679_v61  ;;  %v3425_v61 = vld [vmem:[%s5441_s7] sm:$0xff]  ;;  %s3855_s7 = smov [#allocation2]  }
0x1370   :  { %s3213_s9 = sshll.u32 %s3855_s7, 4  ;;  %s3214_s9 = int_to_ptr.vmem [resolvable:$true] %s3213_s9 }
0x1371   :  { %v2999_v30 = vpack.c.bf16 %v2996_v44, %v2995_v46 }
0x1372   :  { %3201 = vmatpush.bf16.msrb.mxu2 %v3425_v61 }
0x1373   :  { %3379 = vmatmul.msk.bf16.gmra.mxu0 %vm164_vm1, %v2999_v30 }
0x1383   :  { %v3152_v37 = vpop.f32.mrf.mxu2 }
0x1384   :  { %v3153_v52 = vadd.f32 %v3152_v37, %v3127_v33 }
0x1386   :  { %v3156_v20 = vmul.f32 %v3153_v52, %v3153_v52 }
0x1388   :  { %v3157_v49 = vmul.f32 %v3156_v20, %v3153_v52 }
0x138a   :  { %v3158_v47 = vmul.f32 0.044715, %v3157_v49 }
0x138b   :  { %v3154_v18 = vpop.f32.mrf.mxu2 }
0x138c   :  { %v3159_v42 = vadd.f32 %v3158_v47, %v3153_v52 }
0x138e   :  { %v3160_v28 = vmul.f32 0.7978846, %v3159_v42 }
0x1390   :  { %3800 = vtanh.f32 %v3160_v28 }
0x1396   :  { %v3801_v3 = vpop.eup %3800 }
0x1397   :  { %v3162_v55 = vadd.f32 1.0, %v3801_v3 }
0x1399   :  { %v3163_v35 = vmul.f32 0.5, %v3162_v55 }
0x139b   :  { %v3164_v58 = vmul.f32 %v3163_v35, %v3153_v52 }
0x139d   :  { %v3165_v6 = vpack.c.bf16 %v3164_v58, %v3164_v58 }
0x139f   :  { %3408 = vmatmul.msk.bf16.vlgmr.msrb.gmra.mxu2 %vm130_vm0, %v3165_v6 }
0x13f0   :  { %v3028_v38 = vpop.f32.mrf.mxu0 }
0x13f1   :  { %v3029_v12 = vadd.f32 %v3028_v38, %v4721_v34 }
0x13f3   :  { %v3037_v32 = vmul.f32 %v3029_v12, %v3029_v12 }
0x13f5   :  { %v3043_v7 = vmul.f32 %v3037_v32, %v3029_v12 }
0x13f7   :  { %v3049_v1 = vmul.f32 0.044715, %v3043_v7 }
0x13f8   :  { %v3030_v63 = vpop.f32.mrf.mxu0 }
0x13f9   :  { %v3055_v59 = vadd.f32 %v3049_v1, %v3029_v12  ;;  %v3031_v27 = vadd.f32 %v3030_v63, %v4721_v34  ;;  %v3166_v34 = vperm.slane %v3813_v56, 1 }
0x13fb   :  { %v3061_v62 = vmul.f32 0.7978846, %v3055_v59  ;;  %v3038_v54 = vmul.f32 %v3031_v27, %v3031_v27 }
0x13fd   :  { %v3044_v57 = vmul.f32 %v3038_v54, %v3031_v27  ;;  %3802 = vtanh.f32 %v3061_v62 }
0x13ff   :  { %v3050_v2 = vmul.f32 0.044715, %v3044_v57 }
0x1401   :  { %v3056_v60 = vadd.f32 %v3050_v2, %v3031_v27 }
0x1403   :  { %v3062_v22 = vmul.f32 0.7978846, %v3056_v60  ;;  %v3803_v36 = vpop.eup %3802 }
0x1404   :  { %v3073_v9 = vadd.f32 1.0, %v3803_v36 }
0x1405   :  { %3804 = vtanh.f32 %v3062_v22 }
0x1406   :  { %v3079_v48 = vmul.f32 0.5, %v3073_v9 }
0x1408   :  { %v3085_v5 = vmul.f32 %v3079_v48, %v3029_v12 }
0x140b   :  { %v3805_v43 = vpop.eup %3804 }
0x140c   :  { %v3074_v26 = vadd.f32 1.0, %v3805_v43 }
0x140e   :  { %v3080_v41 = vmul.f32 0.5, %v3074_v26 }
0x1410   :  { %v3086_v51 = vmul.f32 %v3080_v41, %v3031_v27 }
0x1412   :  { %v3089_v15 = vpack.c.bf16 %v3086_v51, %v3085_v5 }
0x1414   :  { %3382 = vmatmul.msk.bf16.gmra.mxu3 %vm130_vm0, %v3089_v15 }
0x1422   :  { %v3203_v53 = vpop.f32.mrf.mxu2 }
0x1423   :  { %v3204_v39 = vadd.f32 %v3203_v53, %v3166_v34 }
0x1425   :  { %3207 = vst [vmem:[#allocation2] sm:$0x3] %v3204_v39 }
0x1426   :  { %3218 = dma.vmem_to_hbm [thread:$0]  %s3214_s9, 32, %s3216_s29, [#allocation3]  }
0x142a   :  { %v3205_v0 = vpop.f32.mrf.mxu2 }
0x1497   :  { %v3116_v16 = vpop.f32.mrf.mxu3 }
0x149f   :  { %v3117_v10 = vpop.f32.mrf.mxu3 }
0x14a0   :  { %3838 = dma.done.wait [#allocation3], 32  }
0x14a1   :  { %3839 = vsyncadd [#allocation3], 4294967264 }
0x14a2   :  { %3223 = vsyncpa [#allocation3], 1 }

</bundles_post_ra>
